<compile_context>
chip_gen: v6e
topology: v6e:2x2x1
jax: 0.10.0
libtpu: 0.0.40
codegen_flags: <defaults>
</compile_context>

<pallas_src>
import functools

import jax
import jax.numpy as jnp
import numpy as np
from jax import lax
from jax.experimental import pallas as pl
from jax.experimental.pallas import tpu as pltpu

LANE = 128


def _round_up(x, m):
    return ((x + m - 1) // m) * m


def _choose_tm(batch):
    """Largest batch tile in {128, 256, 512} that leaves >= 2 grid steps so
    dimension_semantics=("parallel",) can shard across v7x's 2 TensorCores;
    v5e/v6e (1 TC) simply get fewer, larger steps."""
    for tm in (512, 256, 128):
        if batch >= 2 * tm:
            return tm
    return 128


def movie_mlp_kernel(ids_ref, inv_len_ref, num_ref,
                     emb_ref, wn_ref, bn_ref,
                     w1a_ref, w1b_ref, b1_ref,
                     w2_ref, b2_ref,
                     w3_ref, b3_ref,
                     w4_ref, b4_ref,
                     out_ref):
    tm, L = ids_ref.shape
    vp = emb_ref.shape[0]
    bf16 = jnp.bfloat16

    # ---- fused embedding lookup + mean-pool ----------------------------------
    # counts[i, v] = #occurrences of token v in row i.  PAD tokens are id 0 and
    # embedding row 0 is zero (padding_idx=0), so they contribute nothing.
    ids = ids_ref[...]                                             # (TM, L) i32
    vocab_iota = lax.broadcasted_iota(jnp.int32, (tm, vp), 1)      # lane ids
    counts = jnp.zeros((tm, vp), jnp.float32)
    for l in range(L):                                             # static, L=8
        counts = counts + (ids[:, l:l + 1] == vocab_iota).astype(jnp.float32)
    # (TM, Vp) @ (Vp, E) f32 MXU dot == sum of embedding rows per sentence.
    sent_sum = jnp.dot(counts, emb_ref[...],
                       preferred_element_type=jnp.float32)         # (TM, E)
    sentence = sent_sum * inv_len_ref[...]                         # exact 1/len

    # ---- numeric_out = relu(numeric @ Wn + bn), K=2 -> keep on the VPU -------
    num = num_ref[...]                                             # (TM, 2)
    wn = wn_ref[...]                                               # (2,  Hn)
    numeric_out = jnp.maximum(
        num[:, 0:1] * wn[0:1, :] + num[:, 1:2] * wn[1:2, :] + bn_ref[...],
        0.0)                                                       # (TM, Hn)

    # ---- 4-layer MLP: bf16 weights/activations on the MXU, f32 accumulation --
    # linear1(concat(sentence, numeric_out)) as two K=128 dots (no concat copy).
    z1 = jnp.maximum(
        jnp.dot(sentence.astype(bf16), w1a_ref[...],
                preferred_element_type=jnp.float32)
        + jnp.dot(numeric_out.astype(bf16), w1b_ref[...],
                  preferred_element_type=jnp.float32)
        + b1_ref[...], 0.0)                                        # (TM, H1p)
    z2 = jnp.maximum(
        jnp.dot(z1.astype(bf16), w2_ref[...],
                preferred_element_type=jnp.float32) + b2_ref[...], 0.0)
    z3 = jnp.maximum(
        jnp.dot(z2.astype(bf16), w3_ref[...],
                preferred_element_type=jnp.float32) + b3_ref[...], 0.0)
    out_ref[...] = (jnp.dot(z3.astype(bf16), w4_ref[...],
                            preferred_element_type=jnp.float32)
                    + b4_ref[...])                                 # (TM, Cp)


def movie_mlp_forward(token_ids, inv_lengths, numeric, pp, *, tm=None):
    """token_ids: (B, L) int32; inv_lengths: (B, 1) f32 (= 1/length);
    numeric: (B, 2) f32; pp: padded params from pad_params()."""
    B, L = token_ids.shape
    if tm is None:
        tm = _choose_tm(B)
    Bp = _round_up(B, tm)
    if Bp != B:
        pad = Bp - B
        token_ids = jnp.pad(token_ids, ((0, pad), (0, 0)))         # PAD id 0
        inv_lengths = jnp.pad(inv_lengths, ((0, pad), (0, 0)),
                              constant_values=1.0)
        numeric = jnp.pad(numeric, ((0, pad), (0, 0)))

    out_pad = pp["w4"].shape[1]

    rows = lambda i: (i, 0)                   # batch-tiled operands
    const = lambda i: (0, 0)                  # VMEM-resident weights / biases
    wspec = lambda a: pl.BlockSpec(a.shape, const)

    out = pl.pallas_call(
        movie_mlp_kernel,
        out_shape=jax.ShapeDtypeStruct((Bp, out_pad), jnp.float32),
        grid_spec=pltpu.PrefetchScalarGridSpec(
            num_scalar_prefetch=0,
            grid=(Bp // tm,),
            in_specs=[
                pl.BlockSpec((tm, L), rows),                       # token ids
                pl.BlockSpec((tm, 1), rows),                       # 1/lengths
                pl.BlockSpec((tm, 2), rows),                       # numeric
                wspec(pp["emb"]),
                wspec(pp["wn"]), wspec(pp["bn"]),
                wspec(pp["w1a"]), wspec(pp["w1b"]), wspec(pp["b1"]),
                wspec(pp["w2"]), wspec(pp["b2"]),
                wspec(pp["w3"]), wspec(pp["b3"]),
                wspec(pp["w4"]), wspec(pp["b4"]),
            ],
            out_specs=pl.BlockSpec((tm, out_pad), rows),
        ),
        compiler_params=pltpu.CompilerParams(
            dimension_semantics=("parallel",)),
    )(token_ids, inv_lengths, numeric,
      pp["emb"], pp["wn"], pp["bn"],
      pp["w1a"], pp["w1b"], pp["b1"],
      pp["w2"], pp["b2"], pp["w3"], pp["b3"], pp["w4"], pp["b4"])

    return out[:B, :1]                        # strip batch + lane padding


def init_params(key, vocab_size, embedding_dim, hidden_dim_numeric,
                hidden_dim1, hidden_dim2, hidden_dim3, num_classes):
    """Deterministic init mimicking PyTorch defaults (uniform +-1/sqrt(fan_in));
    weights stored (in, out); embedding row 0 zeroed (padding_idx=0)."""
    keys = jax.random.split(key, 11)

    def linear(kw, kb, fan_in, fan_out):
        bound = 1.0 / np.sqrt(fan_in)
        w = jax.random.uniform(kw, (fan_in, fan_out), jnp.float32, -bound, bound)
        b = jax.random.uniform(kb, (1, fan_out), jnp.float32, -bound, bound)
        return w, b

    embedding = jax.random.normal(keys[0], (vocab_size, embedding_dim),
                                  jnp.float32)
    embedding = embedding.at[0].set(0.0)      # padding_idx=0

    wn, bn = linear(keys[1], keys[2], 2, hidden_dim_numeric)
    combined = embedding_dim + hidden_dim_numeric
    w1, b1 = linear(keys[3], keys[4], combined, hidden_dim1)
    w2, b2 = linear(keys[5], keys[6], hidden_dim1, hidden_dim2)
    w3, b3 = linear(keys[7], keys[8], hidden_dim2, hidden_dim3)
    w4, b4 = linear(keys[9], keys[10], hidden_dim3, num_classes)

    return {"embedding": embedding,
            "wn": wn, "bn": bn, "w1": w1, "b1": b1,
            "w2": w2, "b2": b2, "w3": w3, "b3": b3, "w4": w4, "b4": b4}


def pad_params(params, lane=LANE):
    """Lane-pad hidden/output/vocab dims (zero padding is a mathematical no-op:
    zero cols + zero bias -> ReLU(0)=0; zero rows ignore padded channels), split
    w1 into its sentence/numeric halves, and cast the MLP weights to bf16."""
    def pad2(w, r, c):
        return jnp.pad(w, ((0, r - w.shape[0]), (0, c - w.shape[1])))

    E = params["embedding"].shape[1]
    Hn = params["wn"].shape[1]
    assert E % lane == 0 and Hn % lane == 0
    vp = _round_up(params["embedding"].shape[0], lane)
    h1p = _round_up(params["w1"].shape[1], lane)
    h2p = _round_up(params["w2"].shape[1], lane)
    h3p = _round_up(params["w3"].shape[1], lane)
    cp = _round_up(params["w4"].shape[1], lane)

    w1a, w1b = params["w1"][:E], params["w1"][E:]
    bf16 = jnp.bfloat16
    return {
        "emb": pad2(params["embedding"], vp, E),                    # f32 table
        "wn": params["wn"], "bn": params["bn"],                     # f32 (VPU)
        "w1a": pad2(w1a, E, h1p).astype(bf16),
        "w1b": pad2(w1b, Hn, h1p).astype(bf16),
        "b1": pad2(params["b1"], 1, h1p),
        "w2": pad2(params["w2"], h1p, h2p).astype(bf16),
        "b2": pad2(params["b2"], 1, h2p),
        "w3": pad2(params["w3"], h2p, h3p).astype(bf16),
        "b3": pad2(params["b3"], 1, h3p),
        "w4": pad2(params["w4"], h3p, cp).astype(bf16),
        "b4": pad2(params["b4"], 1, cp),
    }


if __name__ == "__main__":
    config = {
        "num_classes": 1,
        "embedding_dim": 128,
        "hidden_dim1": 322,
        "hidden_dim2": 290,
        "hidden_dim3": 132,
        "hidden_dim_numeric": 128,
        "vocab_size": 50,
    }
    B, L = 256, 8            # -> TM=128, grid=(2,) "parallel" (both v7x TCs busy)

    key = jax.random.PRNGKey(0)
    kp, kx, klen, knum = jax.random.split(key, 4)

    params = init_params(
        kp, config["vocab_size"], config["embedding_dim"],
        config["hidden_dim_numeric"], config["hidden_dim1"],
        config["hidden_dim2"], config["hidden_dim3"], config["num_classes"])
    padded = pad_params(params)

    # token ids (B, L), lengths (B,), numeric features (B, 2)
    x = jax.random.randint(kx, (B, L), 0, config["vocab_size"], dtype=jnp.int32)
    lengths = jax.random.randint(klen, (B,), 1, L + 1, dtype=jnp.int32)
    numeric = jax.random.normal(knum, (B, 2), jnp.float32)

    lengths_f = lengths.astype(jnp.float32).reshape(B, 1)
    inv_lengths = 1.0 / lengths_f              # exact reciprocal in glue

    fwd = jax.jit(functools.partial(movie_mlp_forward, pp=padded))
    logits = fwd(x, inv_lengths, numeric)
    logits = jax.block_until_ready(logits)

    # Pure-JAX reference mirroring the kernel arithmetic (bf16 weights / dot
    # operands, f32 accumulation) with the original unpadded weight values.
    def dot32(a, w):
        return jnp.dot(a.astype(jnp.bfloat16), w.astype(jnp.bfloat16),
                       preferred_element_type=jnp.float32)

    emb_take = jnp.take(params["embedding"], x, axis=0)            # (B, L, E)
    sentence = emb_take.sum(axis=1) / lengths_f
    numeric_out = jnp.maximum(numeric @ params["wn"] + params["bn"], 0.0)
    combined = jnp.concatenate([sentence, numeric_out], axis=1)
    z1 = jnp.maximum(dot32(combined, params["w1"]) + params["b1"], 0.0)
    z2 = jnp.maximum(dot32(z1, params["w2"]) + params["b2"], 0.0)
    z3 = jnp.maximum(dot32(z2, params["w3"]) + params["b3"], 0.0)
    ref = dot32(z3, params["w4"]) + params["b4"]

    np.testing.assert_allclose(np.asarray(logits), np.asarray(ref),
                               rtol=5e-3, atol=5e-3)
    assert logits.shape == (B, config["num_classes"])
    print("KERNEL_OK")
</pallas_src>

<mosaic_0001>
module attributes {stable_mosaic.version = 11 : i64} {
  func.func @movie_mlp_kernel(%arg0: i32, %arg1: memref<128x8xi32, #tpu.memory_space<vmem>>, %arg2: memref<128x1xf32, #tpu.memory_space<vmem>>, %arg3: memref<128x2xf32, #tpu.memory_space<vmem>>, %arg4: memref<128x128xf32, #tpu.memory_space<vmem>>, %arg5: memref<2x128xf32, #tpu.memory_space<vmem>>, %arg6: memref<1x128xf32, #tpu.memory_space<vmem>>, %arg7: memref<128x384xbf16, #tpu.memory_space<vmem>>, %arg8: memref<128x384xbf16, #tpu.memory_space<vmem>>, %arg9: memref<1x384xf32, #tpu.memory_space<vmem>>, %arg10: memref<384x384xbf16, #tpu.memory_space<vmem>>, %arg11: memref<1x384xf32, #tpu.memory_space<vmem>>, %arg12: memref<384x256xbf16, #tpu.memory_space<vmem>>, %arg13: memref<1x256xf32, #tpu.memory_space<vmem>>, %arg14: memref<256x128xbf16, #tpu.memory_space<vmem>>, %arg15: memref<1x128xf32, #tpu.memory_space<vmem>>, %arg16: memref<128x128xf32, #tpu.memory_space<vmem>>) attributes {dimension_semantics = [#tpu.dimension_semantics<parallel>], iteration_bounds = array<i64: 2>, scalar_prefetch = 0 : i64, scratch_operands = 0 : i64, tpu.core_type = #tpu.core_type<tc>, window_params = [{transform_indices = @transform_0, window_bounds = array<i64: 128, 8>}, {transform_indices = @transform_1, window_bounds = array<i64: 128, 1>}, {transform_indices = @transform_2, window_bounds = array<i64: 128, 2>}, {pipeline_mode = #tpu.pipeline_mode<synchronous>, transform_indices = @transform_3, window_bounds = array<i64: 128, 128>}, {pipeline_mode = #tpu.pipeline_mode<synchronous>, transform_indices = @transform_4, window_bounds = array<i64: 2, 128>}, {pipeline_mode = #tpu.pipeline_mode<synchronous>, transform_indices = @transform_5, window_bounds = array<i64: 1, 128>}, {pipeline_mode = #tpu.pipeline_mode<synchronous>, transform_indices = @transform_6, window_bounds = array<i64: 128, 384>}, {pipeline_mode = #tpu.pipeline_mode<synchronous>, transform_indices = @transform_7, window_bounds = array<i64: 128, 384>}, {pipeline_mode = #tpu.pipeline_mode<synchronous>, transform_indices = @transform_8, window_bounds = array<i64: 1, 384>}, {pipeline_mode = #tpu.pipeline_mode<synchronous>, transform_indices = @transform_9, window_bounds = array<i64: 384, 384>}, {pipeline_mode = #tpu.pipeline_mode<synchronous>, transform_indices = @transform_10, window_bounds = array<i64: 1, 384>}, {pipeline_mode = #tpu.pipeline_mode<synchronous>, transform_indices = @transform_11, window_bounds = array<i64: 384, 256>}, {pipeline_mode = #tpu.pipeline_mode<synchronous>, transform_indices = @transform_12, window_bounds = array<i64: 1, 256>}, {pipeline_mode = #tpu.pipeline_mode<synchronous>, transform_indices = @transform_13, window_bounds = array<i64: 256, 128>}, {pipeline_mode = #tpu.pipeline_mode<synchronous>, transform_indices = @transform_14, window_bounds = array<i64: 1, 128>}, {transform_indices = @transform_15, window_bounds = array<i64: 128, 128>}]} {
    %c0 = arith.constant 0 : index
    %c0_0 = arith.constant 0 : index
    %0 = vector.load %arg1[%c0, %c0_0] : memref<128x8xi32, #tpu.memory_space<vmem>>, vector<128x8xi32>
    %1 = tpu.iota {dimensions = array<i32: 1>} : vector<128x128xi32>
    %cst = arith.constant 0.000000e+00 : f32
    %2 = vector.broadcast %cst : f32 to vector<128x128xf32>
    %3 = vector.extract_strided_slice %0 {offsets = [0, 0], sizes = [128, 1], strides = [1, 1]} : vector<128x8xi32> to vector<128x1xi32>
    %4 = vector.broadcast %3 : vector<128x1xi32> to vector<128x128xi32>
    %5 = arith.cmpi eq, %4, %1 : vector<128x128xi32>
    %6 = arith.extui %5 : vector<128x128xi1> to vector<128x128xi32>
    %7 = arith.sitofp %6 : vector<128x128xi32> to vector<128x128xf32>
    %8 = arith.addf %2, %7 : vector<128x128xf32>
    %9 = vector.extract_strided_slice %0 {offsets = [0, 1], sizes = [128, 1], strides = [1, 1]} : vector<128x8xi32> to vector<128x1xi32>
    %10 = vector.broadcast %9 : vector<128x1xi32> to vector<128x128xi32>
    %11 = arith.cmpi eq, %10, %1 : vector<128x128xi32>
    %12 = arith.extui %11 : vector<128x128xi1> to vector<128x128xi32>
    %13 = arith.sitofp %12 : vector<128x128xi32> to vector<128x128xf32>
    %14 = arith.addf %8, %13 : vector<128x128xf32>
    %15 = vector.extract_strided_slice %0 {offsets = [0, 2], sizes = [128, 1], strides = [1, 1]} : vector<128x8xi32> to vector<128x1xi32>
    %16 = vector.broadcast %15 : vector<128x1xi32> to vector<128x128xi32>
    %17 = arith.cmpi eq, %16, %1 : vector<128x128xi32>
    %18 = arith.extui %17 : vector<128x128xi1> to vector<128x128xi32>
    %19 = arith.sitofp %18 : vector<128x128xi32> to vector<128x128xf32>
    %20 = arith.addf %14, %19 : vector<128x128xf32>
    %21 = vector.extract_strided_slice %0 {offsets = [0, 3], sizes = [128, 1], strides = [1, 1]} : vector<128x8xi32> to vector<128x1xi32>
    %22 = vector.broadcast %21 : vector<128x1xi32> to vector<128x128xi32>
    %23 = arith.cmpi eq, %22, %1 : vector<128x128xi32>
    %24 = arith.extui %23 : vector<128x128xi1> to vector<128x128xi32>
    %25 = arith.sitofp %24 : vector<128x128xi32> to vector<128x128xf32>
    %26 = arith.addf %20, %25 : vector<128x128xf32>
    %27 = vector.extract_strided_slice %0 {offsets = [0, 4], sizes = [128, 1], strides = [1, 1]} : vector<128x8xi32> to vector<128x1xi32>
    %28 = vector.broadcast %27 : vector<128x1xi32> to vector<128x128xi32>
    %29 = arith.cmpi eq, %28, %1 : vector<128x128xi32>
    %30 = arith.extui %29 : vector<128x128xi1> to vector<128x128xi32>
    %31 = arith.sitofp %30 : vector<128x128xi32> to vector<128x128xf32>
    %32 = arith.addf %26, %31 : vector<128x128xf32>
    %33 = vector.extract_strided_slice %0 {offsets = [0, 5], sizes = [128, 1], strides = [1, 1]} : vector<128x8xi32> to vector<128x1xi32>
    %34 = vector.broadcast %33 : vector<128x1xi32> to vector<128x128xi32>
    %35 = arith.cmpi eq, %34, %1 : vector<128x128xi32>
    %36 = arith.extui %35 : vector<128x128xi1> to vector<128x128xi32>
    %37 = arith.sitofp %36 : vector<128x128xi32> to vector<128x128xf32>
    %38 = arith.addf %32, %37 : vector<128x128xf32>
    %39 = vector.extract_strided_slice %0 {offsets = [0, 6], sizes = [128, 1], strides = [1, 1]} : vector<128x8xi32> to vector<128x1xi32>
    %40 = vector.broadcast %39 : vector<128x1xi32> to vector<128x128xi32>
    %41 = arith.cmpi eq, %40, %1 : vector<128x128xi32>
    %42 = arith.extui %41 : vector<128x128xi1> to vector<128x128xi32>
    %43 = arith.sitofp %42 : vector<128x128xi32> to vector<128x128xf32>
    %44 = arith.addf %38, %43 : vector<128x128xf32>
    %45 = vector.extract_strided_slice %0 {offsets = [0, 7], sizes = [128, 1], strides = [1, 1]} : vector<128x8xi32> to vector<128x1xi32>
    %46 = vector.broadcast %45 : vector<128x1xi32> to vector<128x128xi32>
    %47 = arith.cmpi eq, %46, %1 : vector<128x128xi32>
    %48 = arith.extui %47 : vector<128x128xi1> to vector<128x128xi32>
    %49 = arith.sitofp %48 : vector<128x128xi32> to vector<128x128xf32>
    %50 = arith.addf %44, %49 : vector<128x128xf32>
    %c0_1 = arith.constant 0 : index
    %c0_2 = arith.constant 0 : index
    %51 = vector.load %arg4[%c0_1, %c0_2] : memref<128x128xf32, #tpu.memory_space<vmem>>, vector<128x128xf32>
    %cst_3 = arith.constant dense<0.000000e+00> : vector<128x128xf32>
    %52 = tpu.matmul %50, %51, %cst_3 {dimension_numbers = #tpu.dot_dimension_numbers<[1], [0], [0], [1], [0, 0, 1, 1], [], []>} : vector<128x128xf32>, vector<128x128xf32>, vector<128x128xf32> -> vector<128x128xf32>
    %c0_4 = arith.constant 0 : index
    %c0_5 = arith.constant 0 : index
    %53 = vector.load %arg2[%c0_4, %c0_5] : memref<128x1xf32, #tpu.memory_space<vmem>>, vector<128x1xf32>
    %54 = vector.broadcast %53 : vector<128x1xf32> to vector<128x128xf32>
    %55 = arith.mulf %52, %54 : vector<128x128xf32>
    %c0_6 = arith.constant 0 : index
    %c0_7 = arith.constant 0 : index
    %56 = vector.load %arg3[%c0_6, %c0_7] : memref<128x2xf32, #tpu.memory_space<vmem>>, vector<128x2xf32>
    %c0_8 = arith.constant 0 : index
    %c0_9 = arith.constant 0 : index
    %57 = vector.load %arg5[%c0_8, %c0_9] : memref<2x128xf32, #tpu.memory_space<vmem>>, vector<2x128xf32>
    %58 = vector.extract_strided_slice %56 {offsets = [0, 0], sizes = [128, 1], strides = [1, 1]} : vector<128x2xf32> to vector<128x1xf32>
    %59 = vector.extract_strided_slice %57 {offsets = [0, 0], sizes = [1, 128], strides = [1, 1]} : vector<2x128xf32> to vector<1x128xf32>
    %60 = vector.broadcast %58 : vector<128x1xf32> to vector<128x128xf32>
    %61 = vector.broadcast %59 : vector<1x128xf32> to vector<128x128xf32>
    %62 = arith.mulf %60, %61 : vector<128x128xf32>
    %63 = vector.extract_strided_slice %56 {offsets = [0, 1], sizes = [128, 1], strides = [1, 1]} : vector<128x2xf32> to vector<128x1xf32>
    %64 = vector.extract_strided_slice %57 {offsets = [1, 0], sizes = [1, 128], strides = [1, 1]} : vector<2x128xf32> to vector<1x128xf32>
    %65 = vector.broadcast %63 : vector<128x1xf32> to vector<128x128xf32>
    %66 = vector.broadcast %64 : vector<1x128xf32> to vector<128x128xf32>
    %67 = arith.mulf %65, %66 : vector<128x128xf32>
    %68 = arith.addf %62, %67 : vector<128x128xf32>
    %c0_10 = arith.constant 0 : index
    %c0_11 = arith.constant 0 : index
    %69 = vector.load %arg6[%c0_10, %c0_11] : memref<1x128xf32, #tpu.memory_space<vmem>>, vector<1x128xf32>
    %70 = vector.broadcast %69 : vector<1x128xf32> to vector<128x128xf32>
    %71 = arith.addf %68, %70 : vector<128x128xf32>
    %cst_12 = arith.constant 0.000000e+00 : f32
    %72 = vector.broadcast %cst_12 : f32 to vector<128x128xf32>
    %73 = arith.maximumf %71, %72 : vector<128x128xf32>
    %74 = arith.truncf %55 : vector<128x128xf32> to vector<128x128xbf16>
    %c0_13 = arith.constant 0 : index
    %c0_14 = arith.constant 0 : index
    %75 = vector.load %arg7[%c0_13, %c0_14] : memref<128x384xbf16, #tpu.memory_space<vmem>>, vector<128x384xbf16>
    %cst_15 = arith.constant dense<0.000000e+00> : vector<128x384xf32>
    %76 = tpu.matmul %74, %75, %cst_15 {dimension_numbers = #tpu.dot_dimension_numbers<[1], [0], [0], [1], [0, 0, 1, 1], [], []>} : vector<128x128xbf16>, vector<128x384xbf16>, vector<128x384xf32> -> vector<128x384xf32>
    %77 = arith.truncf %73 : vector<128x128xf32> to vector<128x128xbf16>
    %c0_16 = arith.constant 0 : index
    %c0_17 = arith.constant 0 : index
    %78 = vector.load %arg8[%c0_16, %c0_17] : memref<128x384xbf16, #tpu.memory_space<vmem>>, vector<128x384xbf16>
    %cst_18 = arith.constant dense<0.000000e+00> : vector<128x384xf32>
    %79 = tpu.matmul %77, %78, %cst_18 {dimension_numbers = #tpu.dot_dimension_numbers<[1], [0], [0], [1], [0, 0, 1, 1], [], []>} : vector<128x128xbf16>, vector<128x384xbf16>, vector<128x384xf32> -> vector<128x384xf32>
    %80 = arith.addf %76, %79 : vector<128x384xf32>
    %c0_19 = arith.constant 0 : index
    %c0_20 = arith.constant 0 : index
    %81 = vector.load %arg9[%c0_19, %c0_20] : memref<1x384xf32, #tpu.memory_space<vmem>>, vector<1x384xf32>
    %82 = vector.broadcast %81 : vector<1x384xf32> to vector<128x384xf32>
    %83 = arith.addf %80, %82 : vector<128x384xf32>
    %cst_21 = arith.constant 0.000000e+00 : f32
    %84 = vector.broadcast %cst_21 : f32 to vector<128x384xf32>
    %85 = arith.maximumf %83, %84 : vector<128x384xf32>
    %86 = arith.truncf %85 : vector<128x384xf32> to vector<128x384xbf16>
    %c0_22 = arith.constant 0 : index
    %c0_23 = arith.constant 0 : index
    %87 = vector.load %arg10[%c0_22, %c0_23] : memref<384x384xbf16, #tpu.memory_space<vmem>>, vector<384x384xbf16>
    %cst_24 = arith.constant dense<0.000000e+00> : vector<128x384xf32>
    %88 = tpu.matmul %86, %87, %cst_24 {dimension_numbers = #tpu.dot_dimension_numbers<[1], [0], [0], [1], [0, 0, 1, 1], [], []>} : vector<128x384xbf16>, vector<384x384xbf16>, vector<128x384xf32> -> vector<128x384xf32>
    %c0_25 = arith.constant 0 : index
    %c0_26 = arith.constant 0 : index
    %89 = vector.load %arg11[%c0_25, %c0_26] : memref<1x384xf32, #tpu.memory_space<vmem>>, vector<1x384xf32>
    %90 = vector.broadcast %89 : vector<1x384xf32> to vector<128x384xf32>
    %91 = arith.addf %88, %90 : vector<128x384xf32>
    %cst_27 = arith.constant 0.000000e+00 : f32
    %92 = vector.broadcast %cst_27 : f32 to vector<128x384xf32>
    %93 = arith.maximumf %91, %92 : vector<128x384xf32>
    %94 = arith.truncf %93 : vector<128x384xf32> to vector<128x384xbf16>
    %c0_28 = arith.constant 0 : index
    %c0_29 = arith.constant 0 : index
    %95 = vector.load %arg12[%c0_28, %c0_29] : memref<384x256xbf16, #tpu.memory_space<vmem>>, vector<384x256xbf16>
    %cst_30 = arith.constant dense<0.000000e+00> : vector<128x256xf32>
    %96 = tpu.matmul %94, %95, %cst_30 {dimension_numbers = #tpu.dot_dimension_numbers<[1], [0], [0], [1], [0, 0, 1, 1], [], []>} : vector<128x384xbf16>, vector<384x256xbf16>, vector<128x256xf32> -> vector<128x256xf32>
    %c0_31 = arith.constant 0 : index
    %c0_32 = arith.constant 0 : index
    %97 = vector.load %arg13[%c0_31, %c0_32] : memref<1x256xf32, #tpu.memory_space<vmem>>, vector<1x256xf32>
    %98 = vector.broadcast %97 : vector<1x256xf32> to vector<128x256xf32>
    %99 = arith.addf %96, %98 : vector<128x256xf32>
    %cst_33 = arith.constant 0.000000e+00 : f32
    %100 = vector.broadcast %cst_33 : f32 to vector<128x256xf32>
    %101 = arith.maximumf %99, %100 : vector<128x256xf32>
    %102 = arith.truncf %101 : vector<128x256xf32> to vector<128x256xbf16>
    %c0_34 = arith.constant 0 : index
    %c0_35 = arith.constant 0 : index
    %103 = vector.load %arg14[%c0_34, %c0_35] : memref<256x128xbf16, #tpu.memory_space<vmem>>, vector<256x128xbf16>
    %cst_36 = arith.constant dense<0.000000e+00> : vector<128x128xf32>
    %104 = tpu.matmul %102, %103, %cst_36 {dimension_numbers = #tpu.dot_dimension_numbers<[1], [0], [0], [1], [0, 0, 1, 1], [], []>} : vector<128x256xbf16>, vector<256x128xbf16>, vector<128x128xf32> -> vector<128x128xf32>
    %c0_37 = arith.constant 0 : index
    %c0_38 = arith.constant 0 : index
    %105 = vector.load %arg15[%c0_37, %c0_38] : memref<1x128xf32, #tpu.memory_space<vmem>>, vector<1x128xf32>
    %106 = vector.broadcast %105 : vector<1x128xf32> to vector<128x128xf32>
    %107 = arith.addf %104, %106 : vector<128x128xf32>
    %c0_39 = arith.constant 0 : index
    %c0_40 = arith.constant 0 : index
    %108 = vector.load %arg16[%c0_39, %c0_40] : memref<128x128xf32, #tpu.memory_space<vmem>>, vector<128x128xf32>
    tpu.vector_store %arg16[%c0_39, %c0_40], %107 {strides = array<i32>} : memref<128x128xf32, #tpu.memory_space<vmem>>, vector<128x128xf32>,
    return
  }
  func.func @transform_0(%arg0: i32) -> (i32, i32) {
    %c0_i32 = arith.constant 0 : i32
    %c0_i32_0 = arith.constant 0 : i32
    return %arg0, %c0_i32 : i32, i32
  }
  func.func @transform_1(%arg0: i32) -> (i32, i32) {
    %c0_i32 = arith.constant 0 : i32
    %c0_i32_0 = arith.constant 0 : i32
    return %arg0, %c0_i32 : i32, i32
  }
  func.func @transform_2(%arg0: i32) -> (i32, i32) {
    %c0_i32 = arith.constant 0 : i32
    %c0_i32_0 = arith.constant 0 : i32
    return %arg0, %c0_i32 : i32, i32
  }
  func.func @transform_3(%arg0: i32) -> (i32, i32) {
    %c0_i32 = arith.constant 0 : i32
    %c0_i32_0 = arith.constant 0 : i32
    %c0_i32_1 = arith.constant 0 : i32
    return %c0_i32, %c0_i32_0 : i32, i32
  }
  func.func @transform_4(%arg0: i32) -> (i32, i32) {
    %c0_i32 = arith.constant 0 : i32
    %c0_i32_0 = arith.constant 0 : i32
    %c0_i32_1 = arith.constant 0 : i32
    return %c0_i32, %c0_i32_0 : i32, i32
  }
  func.func @transform_5(%arg0: i32) -> (i32, i32) {
    %c0_i32 = arith.constant 0 : i32
    %c0_i32_0 = arith.constant 0 : i32
    %c0_i32_1 = arith.constant 0 : i32
    return %c0_i32, %c0_i32_0 : i32, i32
  }
  func.func @transform_6(%arg0: i32) -> (i32, i32) {
    %c0_i32 = arith.constant 0 : i32
    %c0_i32_0 = arith.constant 0 : i32
    %c0_i32_1 = arith.constant 0 : i32
    return %c0_i32, %c0_i32_0 : i32, i32
  }
  func.func @transform_7(%arg0: i32) -> (i32, i32) {
    %c0_i32 = arith.constant 0 : i32
    %c0_i32_0 = arith.constant 0 : i32
    %c0_i32_1 = arith.constant 0 : i32
    return %c0_i32, %c0_i32_0 : i32, i32
  }
  func.func @transform_8(%arg0: i32) -> (i32, i32) {
    %c0_i32 = arith.constant 0 : i32
    %c0_i32_0 = arith.constant 0 : i32
    %c0_i32_1 = arith.constant 0 : i32
    return %c0_i32, %c0_i32_0 : i32, i32
  }
  func.func @transform_9(%arg0: i32) -> (i32, i32) {
    %c0_i32 = arith.constant 0 : i32
    %c0_i32_0 = arith.constant 0 : i32
    %c0_i32_1 = arith.constant 0 : i32
    return %c0_i32, %c0_i32_0 : i32, i32
  }
  func.func @transform_10(%arg0: i32) -> (i32, i32) {
    %c0_i32 = arith.constant 0 : i32
    %c0_i32_0 = arith.constant 0 : i32
    %c0_i32_1 = arith.constant 0 : i32
    return %c0_i32, %c0_i32_0 : i32, i32
  }
  func.func @transform_11(%arg0: i32) -> (i32, i32) {
    %c0_i32 = arith.constant 0 : i32
    %c0_i32_0 = arith.constant 0 : i32
    %c0_i32_1 = arith.constant 0 : i32
    return %c0_i32, %c0_i32_0 : i32, i32
  }
  func.func @transform_12(%arg0: i32) -> (i32, i32) {
    %c0_i32 = arith.constant 0 : i32
    %c0_i32_0 = arith.constant 0 : i32
    %c0_i32_1 = arith.constant 0 : i32
    return %c0_i32, %c0_i32_0 : i32, i32
  }
  func.func @transform_13(%arg0: i32) -> (i32, i32) {
    %c0_i32 = arith.constant 0 : i32
    %c0_i32_0 = arith.constant 0 : i32
    %c0_i32_1 = arith.constant 0 : i32
    return %c0_i32, %c0_i32_0 : i32, i32
  }
  func.func @transform_14(%arg0: i32) -> (i32, i32) {
    %c0_i32 = arith.constant 0 : i32
    %c0_i32_0 = arith.constant 0 : i32
    %c0_i32_1 = arith.constant 0 : i32
    return %c0_i32, %c0_i32_0 : i32, i32
  }
  func.func @transform_15(%arg0: i32) -> (i32, i32) {
    %c0_i32 = arith.constant 0 : i32
    %c0_i32_0 = arith.constant 0 : i32
    return %arg0, %c0_i32 : i32, i32
  }
}

</mosaic_0001>

<bundles_post_ra>
// kernel: movie_mlp_forward.1
= control target key start
LH: loop header
LB: loop body
LE: loop exit
PB: predicated region body
PF: predicated region fallthrough
CT: control target
= control target key end

     0   :  { %20 = vsyncpa [#allocation3], 0  ;;  %s8036_s0 = inlined_call_operand.vmem [shape: s32[256,8], index: 0, kind: input, shape index: {}]   ;;  %s8037_s1 = inlined_call_operand.vmem [shape: f32[256,1], index: 1, kind: input, shape index: {}]   ;;  %s8038_s2 = inlined_call_operand.vmem [shape: f32[256,2], index: 2, kind: input, shape index: {}]   ;;  %s8039_s3 = inlined_call_operand.hbm [shape: f32[128,128], index: 3, kind: input, shape index: {}]   ;;  %s8040_s4 = inlined_call_operand.vmem [shape: f32[2,128], index: 4, kind: input, shape index: {}]   ;;  %s8041_s5 = inlined_call_operand.vmem [shape: f32[1,128], index: 5, kind: input, shape index: {}]   ;;  %s8042_s6 = inlined_call_operand.hbm [shape: bf16[128,384], index: 6, kind: input, shape index: {}]   ;;  %s8043_s7 = inlined_call_operand.vmem [shape: bf16[128,384], index: 7, kind: input, shape index: {}]   ;;  %s8044_s8 = inlined_call_operand.vmem [shape: f32[1,384], index: 8, kind: input, shape index: {}]   ;;  %s8045_s9 = inlined_call_operand.vmem [shape: bf16[384,384], index: 9, kind: input, shape index: {}]   ;;  %s8046_s10 = inlined_call_operand.vmem [shape: f32[1,384], index: 10, kind: input, shape index: {}]   ;;  %s8047_s11 = inlined_call_operand.hbm [shape: bf16[384,256], index: 11, kind: input, shape index: {}]   ;;  %s8048_s12 = inlined_call_operand.vmem [shape: f32[1,256], index: 12, kind: input, shape index: {}]   ;;  %s8049_s13 = inlined_call_operand.hbm [shape: bf16[256,128], index: 13, kind: input, shape index: {}]   ;;  %s8050_s14 = inlined_call_operand.vmem [shape: f32[1,128], index: 14, kind: input, shape index: {}]   ;;  %s8051_s15 = inlined_call_operand.vmem [shape: f32[256,128], index: 15, kind: output, shape index: {}]  }
   0x1   :  { %21 = vsyncpa [#allocation5], 0 }
   0x2   :  { %22 = vsyncpa [#allocation8], 0  ;;  %s6216_s18 = smov 0  }
   0x3 LB: > { %s6117_s19 = smov [#allocation4]   ;;  %s8052_s21 = sadd.s32 4294967295, %s6115_s18   ;;  %s6115_s18 = sphi %s6216_s18, %s28_s18  }
   0x4   : > { %s420_s20 = sshll.u32 %s6117_s19, 4  ;;  %p4872_p0 = scmp.ge.s32.totalorder %s6115_s18, 1  ;;  %s421_s20 = int_to_ptr.vmem [resolvable:$true] %s420_s20 }
   0x5   : > { %p389_p1 = scmp.lt.s32.totalorder %s6115_s18, 3  ;;  %p6226_p2 = scmp.eq.s32.totalorder %s8052_s21, 0 }
   0x6   : > { %s6118_s24 = smov [#allocation2]   ;;  %s6119_s27 = smov [#allocation6]  }
   0x7   : > { %s8080_s22 = scalar_select %p6226_p2, 1, 0 }
   0x8   : > { %p6230_p3 = pnand %p4872_p0, %p389_p1  ;;  %s401_s25 = sshll.u32 %s6118_s24, 4  ;;  %s6236_s25 = int_to_ptr.vmem [resolvable:$true] %s401_s25 }
   0x9   : > { %s6244_s28 = sshll.u32 %s6119_s27, 4  ;;  %s6004_s29 = scalar_lea.vmem %s421_s20, 3072  ;;  %s446_s28 = int_to_ptr.vmem [resolvable:$true] %s6244_s28 }
   0xa   : > { %p5583_p4 = pneg %p6230_p3  ;;  %p6005_p7 = scmp.ne.s32.totalorder %s421_s20, %s6004_s29 }
   0xb   : > { %p6012_p10 = scmp.lt.s32.totalorder %s421_s20, %s421_s20  ;;  %p6013_p11 = scmp.lt.s32.totalorder %s6004_s29, %s6004_s29 }
   0xc   : > { %p6240_p5 = pnand %p6226_p2, %p5583_p4 }
   0xd   : > { %p6014_p12 = por %p6013_p11, %p6012_p10 }
   0xe   : > { %p5995_p6 = pneg %p6240_p5 }
  0x10   : > { %p6007_p8 = pnand %p6005_p7, %p5995_p6 }
  0x12   : > { %p6008_p9 = pneg %p6007_p8 }
  0x14   : > { %p6015_p13 = pnand %p6014_p12, %p6008_p9 }
  0x16   : > { %6018 = shalt.err (!%p6015_p13)
}
  0x17   : > { %s6120_s30 = smov 192   ;;  %s6121_s16 = smov 12  }
  0x18   : > { %5589 = dma.hbm_to_vmem [thread:$0]  (!%p6240_p5), %s8042_s6, 3072, %s421_s20, [#allocation5], %s6120_s30, %s6120_s30, %s6121_s16  }
  0x19   : > { %s6030_s24 = scalar_lea.vmem %s6236_s25, 2048  ;;  %p6038_p7 = scmp.lt.s32.totalorder %s6236_s25, %s6236_s25 }
  0x1a   : > { %p6031_p0 = scmp.ne.s32.totalorder %s6236_s25, %s6030_s24  ;;  %p6039_p8 = scmp.lt.s32.totalorder %s6030_s24, %s6030_s24 }
  0x1c   : > { %p6033_p1 = pnand %p6031_p0, %p5995_p6  ;;  %p6040_p9 = por %p6039_p8, %p6038_p7 }
  0x1e   : > { %p6034_p4 = pneg %p6033_p1 }
  0x20   : > { %p6041_p10 = pnand %p6040_p9, %p6034_p4 }
  0x22   : > { %6044 = shalt.err (!%p6041_p10)
}
  0x23   : > { %s6122_s27 = smov 128   ;;  %s6123_s29 = smov 8  }
  0x24   : > { %5586 = dma.hbm_to_vmem [thread:$0]  (!%p6240_p5), %s8039_s3, 2048, %s6236_s25, [#allocation3], %s6122_s27, %s6122_s27, %s6123_s29  }
  0x25   : > { %s6124_s16 = smov [#allocation7]   ;;  %s6056_s19 = scalar_lea.vmem %s446_s28, 6144 }
  0x26   : > { %s461_s17 = sshll.u32 %s6124_s16, 4  ;;  %p6057_p11 = scmp.ne.s32.totalorder %s446_s28, %s6056_s19  ;;  %s462_s17 = int_to_ptr.vmem [resolvable:$true] %s461_s17 }
  0x27   : > { %p6064_p0 = scmp.lt.s32.totalorder %s446_s28, %s446_s28  ;;  %p6065_p1 = scmp.lt.s32.totalorder %s6056_s19, %s6056_s19 }
  0x28   : > { %p6059_p12 = pnand %p6057_p11, %p5995_p6 }
  0x29   : > { %p6066_p4 = por %p6065_p1, %p6064_p0 }
  0x2a   : > { %p6060_p13 = pneg %p6059_p12 }
  0x2c   : > { %p6067_p7 = pnand %p6066_p4, %p6060_p13 }
  0x2e   : > { %6070 = shalt.err (!%p6067_p7)
}
  0x2f   : > { %5592 = dma.hbm_to_vmem [thread:$0]  (!%p6240_p5), %s8047_s11, 6144, %s446_s28, [#allocation5], %s6122_s27, %s6122_s27, %s6123_s29  }
  0x30   : > { %s6082_s25 = scalar_lea.vmem %s462_s17, 2048  ;;  %p6090_p11 = scmp.lt.s32.totalorder %s462_s17, %s462_s17 }
  0x31   : > { %p6083_p8 = scmp.ne.s32.totalorder %s462_s17, %s6082_s25  ;;  %p6091_p12 = scmp.lt.s32.totalorder %s6082_s25, %s6082_s25 }
  0x33   : > { %p6085_p9 = pnand %p6083_p8, %p5995_p6  ;;  %p6092_p2 = por %p6091_p12, %p6090_p11 }
  0x35   : > { %p6086_p10 = pneg %p6085_p9 }
  0x37   : > { %p6093_p0 = pnand %p6092_p2, %p6086_p10 }
  0x39   : > { %6096 = shalt.err (!%p6093_p0)
}
  0x3a   : > { %s6125_s20 = smov 64   ;;  %s6126_s30 = smov 4  }
  0x3b   : > { %5595 = dma.hbm_to_vmem [thread:$0]  (!%p6240_p5), %s8049_s13, 2048, %s462_s17, [#allocation8], %s6125_s20, %s6125_s20, %s6126_s30  }
  0x3c   : > { %507 = sbr.rel (%p6230_p3) target bundleno = 1698 (0x6a2), region = 80 }
  0x41   : > { %p8083_p13 = scmp.ne.s32.totalorder %s8080_s22, 0 }
  0x43   : > { %6102 = dma.done.wait (%p8083_p13), [#allocation3], 2048  }
  0x44   : > { %6104 = vsyncadd (%p8083_p13), [#allocation3], 4294965248 }
  0x45   : > { %6106 = dma.done.wait (%p8083_p13), [#allocation5], 9216  }
  0x46   : > { %6108 = vsyncadd (%p8083_p13), [#allocation5], 4294958080 }
  0x47   : > { %6110 = dma.done.wait (%p8083_p13), [#allocation8], 2048  }
  0x48   : > { %6112 = vsyncadd (%p8083_p13), [#allocation8], 4294965248  ;;  %s8084_s23 = sadd.s32 4294967295, %s6115_s18   ;;  %v8062_v0 = vmov 4   ;;  %v8070_v1 = vmov 0   ;;  %v8066_v5 = vmov 1  }
  0x49   : > { %s4883_s26 = sshll.u32 %s8084_s23, 4  ;;  %5639 = vset.pattern.permute.xlu0 %v8062_v0  ;;  %5631 = vset.pattern.permute.xlu1 %v8070_v1  ;;  %v8064_v7 = vmov 2   ;;  %v8056_v12 = vmov 7   ;;  %v8060_v15 = vmov 5   ;;  %v8068_v17 = vmov 3   ;;  %v1531_v21 = vld [vmem:[#allocation2 + $0x78] sm:$0xff] }
  0x4a   : > { %p578_p2 = scmp.lt.s32.totalorder %s4883_s26, 31  ;;  %v8058_v19 = vmov 6   ;;  %5415 = vmatprep.subr.mxu1 %v1531_v21  ;;  %v1530_v22 = vld [vmem:[#allocation2 + $0x70] sm:$0xff]  ;;  %v1529_v23 = vld [vmem:[#allocation2 + $0x68] sm:$0xff]  ;;  %v1528_v24 = vld [vmem:[#allocation2 + $0x60] sm:$0xff] }
  0x4b   : > { %5416 = vmatpush3.msra.mxu1 %v1531_v21  ;;  %v1527_v25 = vld [vmem:[#allocation2 + $0x58] sm:$0xff]  ;;  %v1526_v26 = vld [vmem:[#allocation2 + $0x50] sm:$0xff]  ;;  %v1525_v27 = vld [vmem:[#allocation2 + $0x48] sm:$0xff] }
  0x4c   : > { %s8134_s26 = smov (!%p578_p2, %s4883_s26), 31  ;;  %5417 = vmatprep.subr.mxu1 %v1530_v22  ;;  %v1524_v29 = vld [vmem:[#allocation2 + $0x40] sm:$0xff]  ;;  %v1523_v30 = vld [vmem:[#allocation2 + $0x38] sm:$0xff]  ;;  %v1522_v33 = vld [vmem:[#allocation2 + $0x30] sm:$0xff] }
  0x4d   : > { %s6304_s28 = sshll.u32 %s8134_s26, 3  ;;  %5418 = vmatpush3.msra.mxu1 %v1530_v22  ;;  %v1521_v34 = vld [vmem:[#allocation2 + $0x28] sm:$0xff]  ;;  %v1520_v38 = vld [vmem:[#allocation2 + $0x20] sm:$0xff]  ;;  %v1519_v39 = vld [vmem:[#allocation2 + $0x18] sm:$0xff] }
  0x4e   : > { %s6310_s17 = scalar_lea.vmem %s8036_s0, %s6304_s28  ;;  %5419 = vmatprep.subr.mxu1 %v1529_v23  ;;  %v1518_v41 = vld [vmem:[#allocation2 + $0x10] sm:$0xff]  ;;  %v1517_v43 = vld [vmem:[#allocation2 + $0x8] sm:$0xff]  ;;  %v1516_v45 = vld [vmem:[#allocation2] sm:$0xff]  ;;  %s6553_s24 = scalar_lea.vmem %s8038_s2, %s6304_s28 }
  0x4f   : > { %v6313_v2 = vld [vmem:[%s6310_s17 + $0x8] sm:$0xff]  ;;  %v6316_v3 = vld [vmem:[%s6310_s17] sm:$0xff]  ;;  %v6321_v4 = vld [vmem:[%s6310_s17 + $0x18] sm:$0xff]  ;;  %5420 = vmatpush3.msra.mxu1 %v1529_v23  ;;  %s6661_s30 = scalar_lea.vmem %s8037_s1, %s6304_s28  ;;  %s7999_s29 = scalar_lea.vmem %s8051_s15, %s6304_s28 }
  0x50   : > { %624 = vperm.xlu1 %5631, %v6313_v2   ;;  %1069 = vperm.xlu0 %5639, %v6316_v3   ;;  %v6328_v6 = vld [vmem:[%s6310_s17 + $0x20] sm:$0xff]  ;;  %v6334_v8 = vld [vmem:[%s6310_s17 + $0x10] sm:$0xff]  ;;  %v6337_v9 = vld [vmem:[%s6310_s17 + $0x28] sm:$0xff] }
  0x51   : > { %v6343_v10 = vld [vmem:[%s6310_s17 + $0x30] sm:$0xff]  ;;  %v6349_v11 = vld [vmem:[%s6310_s17 + $0x38] sm:$0xff]  ;;  %v6366_v13 = vld [vmem:[%s6310_s17 + $0x40] sm:$0xff]  ;;  %5421 = vmatprep.subr.mxu1 %v1528_v24 }
  0x52   : > { %v6372_v14 = vld [vmem:[%s6310_s17 + $0x48] sm:$0xff]  ;;  %v6378_v16 = vld [vmem:[%s6310_s17 + $0x50] sm:$0xff]  ;;  %v6384_v18 = vld [vmem:[%s6310_s17 + $0x58] sm:$0xff]  ;;  %5422 = vmatpush3.msra.mxu1 %v1528_v24 }
  0x53   : > { %v6413_v20 = vld [vmem:[%s6310_s17 + $0x68] sm:$0xff]  ;;  %5423 = vmatprep.subr.mxu1 %v1527_v25  ;;  %v6433_v28 = vld [vmem:[%s6310_s17 + $0x60] sm:$0xff]  ;;  %v6446_v35 = vld [vmem:[%s6310_s17 + $0x70] sm:$0xff] }
  0x54   : > { %5632 = vset.pattern.permute.xlu1 %v8066_v5  ;;  %1078 = vperm.xlu0 %5639, %v6321_v4   ;;  %v6508_v58 = vld [vmem:[%s6310_s17 + $0x78] sm:$0xff]  ;;  %v6562_v23 = vld [vmem:[%s6553_s24] sm:$0xff] }
  0x55   : > { %736 = vperm.xlu1 %5632, %v6313_v2   ;;  %5424 = vmatpush3.msra.mxu1 %v1527_v25  ;;  %8086 = vst [vmem:[#allocation13_spill] sm:$0xff] %v6562_v23  ;;  %v1793_v25 = vld [vmem:[%s6553_s24 + $0x20] sm:$0xff] }
  0x56   : > { %5425 = vmatprep.subr.mxu1 %v1526_v26 }
  0x57   : > { %5426 = vmatpush3.msra.mxu1 %v1526_v26 }
  0x58   : > { %5645 = vset.pattern.permute.xlu0 %v8066_v5  ;;  %5427 = vmatprep.subr.mxu1 %v1525_v27 }
  0x59   : > { %5633 = vset.pattern.permute.xlu1 %v8064_v7  ;;  %733 = vperm.xlu0 %5645, %v6316_v3  }
  0x5a   : > { %845 = vperm.xlu1 %5633, %v6316_v3   ;;  %5428 = vmatpush3.msra.mxu1 %v1525_v27 }
  0x5b   : > { %5429 = vmatprep.subr.mxu1 %v1524_v29 }
  0x5c   : > { %5430 = vmatpush3.msra.mxu1 %v1524_v29  ;;  %v1792_v29 = vld [vmem:[%s6553_s24 + $0x18] sm:$0xff] }
  0x5d   : > { %745 = vperm.xlu0 %5645, %v6328_v6   ;;  %5431 = vmatprep.subr.mxu1 %v1523_v30 }
  0x5e   : > { %5634 = vset.pattern.permute.xlu1 %v8070_v1  ;;  %5432 = vmatpush3.msra.mxu1 %v1523_v30 }
  0x5f   : > { %627 = vperm.xlu1 %5634, %v6334_v8   ;;  %5433 = vmatprep.subr.mxu1 %v1522_v33 }
  0x60   : > { %5434 = vmatpush3.msra.mxu1 %v1522_v33 }
  0x61   : > { %748 = vperm.xlu0 %5645, %v6337_v9   ;;  %5435 = vmatprep.subr.mxu1 %v1521_v34 }
  0x62   : > { %5436 = vmatpush3.msra.mxu1 %v1521_v34  ;;  %v8055_v34 = vlaneseq }
  0x63   : > { %5635 = vset.pattern.permute.xlu1 %v8066_v5  ;;  %5437 = vmatprep.subr.mxu1 %v1520_v38 }
  0x64   : > { %739 = vperm.xlu1 %5635, %v6334_v8   ;;  %5438 = vmatpush3.msra.mxu1 %v1520_v38 }
  0x65   : > { %751 = vperm.xlu0 %5645, %v6343_v10   ;;  %5439 = vmatprep.subr.mxu1 %v1519_v39 }
  0x66   : > { %5440 = vmatpush3.msra.mxu1 %v1519_v39  ;;  %v1796_v39 = vld [vmem:[%s6553_s24 + $0x38] sm:$0xff] }
  0x67   : > { %5441 = vmatprep.subr.mxu1 %v1518_v41 }
  0x68   : > { %5636 = vset.pattern.permute.xlu1 %v8070_v1  ;;  %5442 = vmatpush3.msra.mxu1 %v1518_v41 }
  0x69   : > { %754 = vperm.xlu0 %5645, %v6349_v11   ;;  %630 = vperm.xlu1 %5636, %v6321_v4  }
  0x6a   : > { %5443 = vmatprep.subr.mxu1 %v1517_v43 }
  0x6b   : > { %5444 = vmatpush3.msra.mxu1 %v1517_v43  ;;  %v6597_v43 = vand.u32 127, %v8055_v34 }
  0x6c   : > { %5445 = vmatprep.subr.mxu1 %v1516_v45 }
  0x6d   : > { %5657 = vset.pattern.permute.xlu0 %v8056_v12  ;;  %5637 = vset.pattern.permute.xlu1 %v8066_v5 }
  0x6e   : > { %1405 = vperm.xlu0 %5657, %v6316_v3   ;;  %742 = vperm.xlu1 %5637, %v6321_v4  }
  0x6f   : > { %5446 = vmatpush3.msra.mxu1 %v1516_v45 }
  0x72   : > { %1420 = vperm.xlu0 %5657, %v6337_v9   ;;  %5638 = vset.pattern.permute.xlu1 %v8064_v7 }
  0x73   : > { %851 = vperm.xlu1 %5638, %v6334_v8  }
  0x76   : > { %1426 = vperm.xlu0 %5657, %v6349_v11  }
  0x77   : > { %854 = vperm.xlu1 %5638, %v6321_v4  }
  0x7a   : > { %5671 = vset.pattern.permute.xlu0 %v8070_v1 }
  0x7b   : > { %621 = vperm.xlu0 %5671, %v6316_v3   ;;  %5640 = vset.pattern.permute.xlu1 %v8062_v0 }
  0x7c   : > { %1072 = vperm.xlu1 %5640, %v6313_v2  }
  0x7f   : > { %645 = vperm.xlu0 %5671, %v6366_v13  }
  0x80   : > { %5641 = vset.pattern.permute.xlu1 %v8060_v15 }
  0x81   : > { %1181 = vperm.xlu1 %5641, %v6316_v3  }
  0x83   : > { %648 = vperm.xlu0 %5671, %v6372_v14  }
  0x85   : > { %5642 = vset.pattern.permute.xlu1 %v8068_v17 }
  0x86   : > { %966 = vperm.xlu1 %5642, %v6321_v4  }
  0x87   : > { %651 = vperm.xlu0 %5671, %v6378_v16  }
  0x8a   : > { %5643 = vset.pattern.permute.xlu1 %v8062_v0 }
  0x8b   : > { %654 = vperm.xlu0 %5671, %v6384_v18   ;;  %1075 = vperm.xlu1 %5643, %v6334_v8  }
  0x8f   : > { %5675 = vset.pattern.permute.xlu0 %v8058_v19  ;;  %5644 = vset.pattern.permute.xlu1 %v8058_v19 }
  0x90   : > { %1299 = vperm.xlu0 %5675, %v6334_v8   ;;  %1293 = vperm.xlu1 %5644, %v6316_v3  }
  0x94   : > { %1305 = vperm.xlu0 %5675, %v6328_v6   ;;  %1296 = vperm.xlu1 %5644, %v6313_v2  }
  0x98   : > { %1320 = vperm.xlu0 %5675, %v6372_v14   ;;  %5646 = vset.pattern.permute.xlu1 %v8060_v15 }
  0x99   : > { %1187 = vperm.xlu1 %5646, %v6334_v8  }
  0x9c   : > { %1326 = vperm.xlu0 %5675, %v6384_v18  }
  0x9d   : > { %1190 = vperm.xlu1 %5646, %v6321_v4  }
  0xa0   : > { %5686 = vset.pattern.permute.xlu0 %v8064_v7 }
  0xa1   : > { %848 = vperm.xlu0 %5686, %v6313_v2   ;;  %5647 = vset.pattern.permute.xlu1 %v8056_v12 }
  0xa2   : > { %1408 = vperm.xlu1 %5647, %v6313_v2  }
  0xa5   : > { %857 = vperm.xlu0 %5686, %v6328_v6  }
  0xa6   : > { %5648 = vset.pattern.permute.xlu1 %v8058_v19 }
  0xa7   : > { %1302 = vperm.xlu1 %5648, %v6321_v4  }
  0xa9   : > { %863 = vperm.xlu0 %5686, %v6343_v10  }
  0xab   : > { %5649 = vset.pattern.permute.xlu1 %v8070_v1 }
  0xac   : > { %633 = vperm.xlu1 %5649, %v6328_v6  }
  0xad   : > { %878 = vperm.xlu0 %5686, %v6384_v18  }
  0xb0   : > { %5650 = vset.pattern.permute.xlu1 %v8056_v12 }
  0xb1   : > { %884 = vperm.xlu0 %5686, %v6413_v20   ;;  %1411 = vperm.xlu1 %5650, %v6334_v8  }
  0xb5   : > { %5692 = vset.pattern.permute.xlu0 %v8068_v17  ;;  %5651 = vset.pattern.permute.xlu1 %v8070_v1 }
  0xb6   : > { %957 = vperm.xlu0 %5692, %v6316_v3   ;;  %636 = vperm.xlu1 %5651, %v6337_v9  }
  0xba   : > { %960 = vperm.xlu0 %5692, %v6313_v2   ;;  %5652 = vset.pattern.permute.xlu1 %v8056_v12 }
  0xbb   : > { %1414 = vperm.xlu1 %5652, %v6321_v4  }
  0xbe   : > { %963 = vperm.xlu0 %5692, %v6334_v8  }
  0xbf   : > { %5653 = vset.pattern.permute.xlu1 %v8064_v7 }
  0xc0   : > { %860 = vperm.xlu1 %5653, %v6337_v9  }
  0xc2   : > { %978 = vperm.xlu0 %5692, %v6349_v11  }
  0xc4   : > { %5654 = vset.pattern.permute.xlu1 %v8070_v1 }
  0xc5   : > { %639 = vperm.xlu1 %5654, %v6343_v10  }
  0xc6   : > { %984 = vperm.xlu0 %5692, %v6372_v14  }
  0xc9   : > { %5655 = vset.pattern.permute.xlu1 %v8068_v17 }
  0xca   : > { %993 = vperm.xlu0 %5692, %v6433_v28   ;;  %969 = vperm.xlu1 %5655, %v6328_v6  }
  0xcb   : > { %v6438_v31 = vpop.permute.xlu1 %624  ;;  %v6440_v32 = vpop.permute.xlu0 %1069 }
  0xcc   : > { %vm1116_vm3 = vcmp.eq.s32.totalorder %v6440_v32, %v6597_v43  ;;  %vm669_vm13 = vcmp.eq.s32.totalorder %v6438_v31, %v6597_v43 }
  0xce   : > { %996 = vperm.xlu0 %5692, %v6413_v20   ;;  %5656 = vset.pattern.permute.xlu1 %v8070_v1 }
  0xcf   : > { %642 = vperm.xlu1 %5656, %v6349_v11   ;;  %v6448_v36 = vpop.permute.xlu0 %1078 }
  0xd0   : > { %v6450_v37 = vpop.permute.xlu1 %736 }
  0xd1   : > { %vm781_vm12 = vcmp.eq.s32.totalorder %v6450_v37, %v6597_v43 }
  0xd2   : > { %999 = vperm.xlu0 %5692, %v6446_v35  }
  0xd3   : > { %5658 = vset.pattern.permute.xlu1 %v8068_v17 }
  0xd4   : > { %972 = vperm.xlu1 %5658, %v6337_v9   ;;  %v6455_v40 = vpop.permute.xlu0 %733 }
  0xd5   : > { %v6457_v42 = vpop.permute.xlu1 %845  ;;  %vm780_vm0 = vcmp.eq.s32.totalorder %v6455_v40, %v6597_v43 }
  0xd6   : > { %5699 = vset.pattern.permute.xlu0 %v8060_v15  ;;  %vm892_vm2 = vcmp.eq.s32.totalorder %v6457_v42, %v6597_v43 }
  0xd7   : > { %1184 = vperm.xlu0 %5699, %v6313_v2  }
  0xd8   : > { %5659 = vset.pattern.permute.xlu1 %v8062_v0  ;;  %v6462_v44 = vpop.permute.xlu0 %745 }
  0xd9   : > { %1081 = vperm.xlu1 %5659, %v6328_v6  }
  0xda   : > { %v6465_v46 = vpop.permute.xlu1 %627 }
  0xdb   : > { %1199 = vperm.xlu0 %5699, %v6343_v10   ;;  %vm670_vm9 = vcmp.eq.s32.totalorder %v6465_v46, %v6597_v43 }
  0xdc   : > { %v6468_v47 = vpop.permute.xlu0 %748 }
  0xdd   : > { %5660 = vset.pattern.permute.xlu1 %v8064_v7 }
  0xde   : > { %866 = vperm.xlu1 %5660, %v6349_v11  }
  0xdf   : > { %1205 = vperm.xlu0 %5699, %v6366_v13   ;;  %v6473_v48 = vpop.permute.xlu1 %739 }
  0xe0   : > { %v6475_v49 = vpop.permute.xlu0 %751  ;;  %vm782_vm8 = vcmp.eq.s32.totalorder %v6473_v48, %v6597_v43 }
  0xe2   : > { %5661 = vset.pattern.permute.xlu1 %v8068_v17 }
  0xe3   : > { %1214 = vperm.xlu0 %5699, %v6384_v18   ;;  %975 = vperm.xlu1 %5661, %v6343_v10  }
  0xe4   : > { %v6480_v50 = vpop.permute.xlu1 %630  ;;  %v6482_v51 = vpop.permute.xlu0 %754 }
  0xe7   : > { %1220 = vperm.xlu0 %5699, %v6413_v20   ;;  %5662 = vset.pattern.permute.xlu1 %v8060_v15 }
  0xe8   : > { %1193 = vperm.xlu1 %5662, %v6328_v6  }
  0xe9   : > { %v6487_v52 = vpop.permute.xlu1 %742  ;;  %v6489_v53 = vpop.permute.xlu0 %1405 }
  0xea   : > { %vm1452_vm6 = vcmp.eq.s32.totalorder %v6489_v53, %v6597_v43  ;;  %vm783_vm15 = vcmp.eq.s32.totalorder %v6487_v52, %v6597_v43 }
  0xeb   : > { %5702 = vset.pattern.permute.xlu0 %v8062_v0 }
  0xec   : > { %1084 = vperm.xlu0 %5702, %v6337_v9   ;;  %1196 = vperm.xlu1 %5662, %v6337_v9  }
  0xed   : > { %v6494_v54 = vpop.permute.xlu0 %1420 }
  0xee   : > { %v6496_v55 = vpop.permute.xlu1 %851 }
  0xef   : > { %vm894_vm10 = vcmp.eq.s32.totalorder %v6496_v55, %v6597_v43 }
  0xf0   : > { %5663 = vset.pattern.permute.xlu1 %v8062_v0  ;;  %1099 = vperm.xlu0 %5702, %v6378_v16  }
  0xf1   : > { %1087 = vperm.xlu1 %5663, %v6343_v10   ;;  %v6501_v56 = vpop.permute.xlu0 %1426 }
  0xf2   : > { %v6503_v57 = vpop.permute.xlu1 %854 }
  0xf4   : > { %1105 = vperm.xlu0 %5702, %v6433_v28  }
  0xf5   : > { %1090 = vperm.xlu1 %5663, %v6349_v11  }
  0xf6   : > { %v6510_v59 = vpop.permute.xlu0 %621 }
  0xf7   : > { %v6512_v60 = vpop.permute.xlu1 %1072  ;;  %vm668_vm1 = vcmp.eq.s32.totalorder %v6510_v59, %v6597_v43 }
  0xf8   : > { %1114 = vperm.xlu0 %5702, %v6508_v58  }
  0xf9   : > { %5664 = vset.pattern.permute.xlu1 %v8058_v19 }
  0xfa   : > { %1308 = vperm.xlu1 %5664, %v6337_v9   ;;  %v6517_v61 = vpop.permute.xlu0 %645 }
  0xfc   : > { %v6519_v62 = vpop.permute.xlu1 %1181  ;;  %5705 = vset.pattern.permute.xlu0 %v8056_v12 }
  0xfd   : > { %1435 = vperm.xlu0 %5705, %v6378_v16   ;;  %vm1228_vm5 = vcmp.eq.s32.totalorder %v6519_v62, %v6597_v43 }
  0xfe   : > { %5665 = vset.pattern.permute.xlu1 %v8056_v12  ;;  %v6524_v63 = vpop.permute.xlu0 %648 }
  0xff   : > { %1417 = vperm.xlu1 %5665, %v6328_v6  }
 0x101   : > { %v6527_v2 = vpop.permute.xlu1 %966  ;;  %1438 = vperm.xlu0 %5705, %v6384_v18  }
 0x102   : > { %v6530_v3 = vpop.permute.xlu0 %651 }
 0x103   : > { %8085 = vst [vmem:[#allocation12_spill] sm:$0xff] %v6530_v3  ;;  %5666 = vset.pattern.permute.xlu1 %v8060_v15  ;;  %v1800_v15 = vld [vmem:[%s6553_s24 + $0x58] sm:$0xff]  ;;  %v1679_v3 = vld [vmem:[%s6661_s30 + $0x10] sm:$0xff] }
 0x104   : > { %1202 = vperm.xlu1 %5666, %v6349_v11  }
 0x105   : > { %1441 = vperm.xlu0 %5705, %v6433_v28  }
 0x106   : > { %v6535_v4 = vpop.permute.xlu1 %1075  ;;  %v6537_v8 = vpop.permute.xlu0 %654 }
 0x108   : > { %5667 = vset.pattern.permute.xlu1 %v8058_v19 }
 0x109   : > { %1311 = vperm.xlu1 %5667, %v6343_v10   ;;  %5708 = vset.pattern.permute.xlu0 %v8058_v19 }
 0x10a   : > { %1335 = vperm.xlu0 %5708, %v6446_v35  }
 0x10b   : > { %v6543_v6 = vpop.permute.xlu1 %1293  ;;  %v6545_v9 = vpop.permute.xlu0 %1299 }
 0x10c   : > { %vm1340_vm7 = vcmp.eq.s32.totalorder %v6543_v6, %v6597_v43 }
 0x10d   : > { %1314 = vperm.xlu1 %5667, %v6349_v11  }
 0x10e   : > { %5711 = vset.pattern.permute.xlu0 %v8056_v12 }
 0x10f   : > { %v6555_v21 = vpop.permute.xlu1 %1296  ;;  %v6557_v22 = vpop.permute.xlu0 %1305  ;;  %1450 = vperm.xlu0 %5711, %v6508_v58  }
 0x111   : > { %5668 = vset.pattern.permute.xlu1 %v8066_v5 }
 0x112   : > { %757 = vperm.xlu1 %5668, %v6366_v13  }
 0x113   : > { %v6565_v11 = vpop.permute.xlu0 %1320  ;;  %5713 = vset.pattern.permute.xlu0 %v8066_v5 }
 0x114   : > { %v6568_v24 = vpop.permute.xlu1 %1187  ;;  %1907 = vperm.xlu0 %5713, %v6562_v23  }
 0x116   : > { %5669 = vset.pattern.permute.xlu1 %v8056_v12 }
 0x117   : > { %1423 = vperm.xlu1 %5669, %v6343_v10   ;;  %v6574_v26 = vpop.permute.xlu0 %1326 }
 0x118   : > { %8087 = vst [vmem:[#allocation14_spill] sm:$0xff] %v6574_v26  ;;  %v6576_v27 = vpop.permute.xlu1 %1190  ;;  %1923 = vperm.xlu0 %5713, %v1793_v25  }
 0x11b   : > { %5670 = vset.pattern.permute.xlu1 %v8066_v5 }
 0x11c   : > { %v6580_v30 = vpop.permute.xlu0 %848  ;;  %760 = vperm.xlu1 %5670, %v6372_v14   ;;  %5718 = vset.pattern.permute.xlu0 %v8070_v1 }
 0x11d   : > { %v6584_v33 = vpop.permute.xlu1 %1408  ;;  %1823 = vperm.xlu0 %5718, %v1792_v29   ;;  %v1797_v29 = vld [vmem:[%s6553_s24 + $0x40] sm:$0xff]  ;;  %vm893_vm14 = vcmp.eq.s32.totalorder %v6580_v30, %v6597_v43 }
 0x120   : > { %5672 = vset.pattern.permute.xlu1 %v8064_v7  ;;  %v6587_v10 = vpop.permute.xlu0 %857 }
 0x121   : > { %869 = vperm.xlu1 %5672, %v6366_v13   ;;  %1828 = vperm.xlu0 %5718, %v1793_v25  }
 0x122   : > { %v6590_v38 = vpop.permute.xlu1 %1302 }
 0x124   : > { %v6593_v41 = vpop.permute.xlu0 %863 }
 0x125   : > { %872 = vperm.xlu1 %5672, %v6372_v14   ;;  %1843 = vperm.xlu0 %5718, %v1796_v39   ;;  %v6135_v39 = vmov 0.0  }
 0x126   : > { %v4907_v34 = vsel %vm780_vm0, 1.0, %v6135_v39  ;;  %v4891_v12 = vsel %vm668_vm1, 1.0, %v6135_v39  ;;  %v4923_v0 = vsel %vm892_vm2, 1.0, %v6135_v39  ;;  %v5003_v53 = vsel %vm1452_vm6, 1.0, %v6135_v39 }
 0x127   : > { %v6599_v45 = vpop.permute.xlu1 %633  ;;  %v828_v59 = vadd.f32 %v4907_v34, %v4891_v12  ;;  %v4955_v12 = vsel %vm1116_vm3, 1.0, %v6135_v39  ;;  %v8090_v34 = vmov 1   ;;  %v4893_v48 = vsel %vm670_vm9, 1.0, %v6135_v39 }
 0x128   : > { %v6606_v25 = vpop.permute.xlu0 %878  ;;  %v4892_v31 = vsel %vm669_vm13, 1.0, %v6135_v39  ;;  %vm671_vm0 = vcmp.eq.s32.totalorder %v6480_v50, %v6597_v43  ;;  %vm895_vm2 = vcmp.eq.s32.totalorder %v6503_v57, %v6597_v43  ;;  %vm1118_vm3 = vcmp.eq.s32.totalorder %v6535_v4, %v6597_v43 }
 0x129   : > { %8088 = vst [vmem:[#allocation15_spill] sm:$0xff] %v6606_v25  ;;  %5673 = vset.pattern.permute.xlu1 %v8066_v5  ;;  %5723 = vset.pattern.permute.xlu0 %v8066_v5  ;;  %v4924_v52 = vsel %vm893_vm14, 1.0, %v6135_v39  ;;  %v4910_v50 = vsel %vm783_vm15, 1.0, %v6135_v39  ;;  %v4894_v57 = vsel %vm671_vm0, 1.0, %v6135_v39  ;;  %v4957_v4 = vsel %vm1118_vm3, 1.0, %v6135_v39 }
 0x12a   : > { %763 = vperm.xlu1 %5673, %v6378_v16   ;;  %1939 = vperm.xlu0 %5723, %v1797_v29   ;;  %vm1117_vm6 = vcmp.eq.s32.totalorder %v6512_v60, %v6597_v43  ;;  %vm1341_vm9 = vcmp.eq.s32.totalorder %v6555_v21, %v6597_v43  ;;  %vm1453_vm13 = vcmp.eq.s32.totalorder %v6584_v33, %v6597_v43 }
 0x12b   : > { %v4956_v60 = vsel %vm1117_vm6, 1.0, %v6135_v39  ;;  %vm1343_vm14 = vcmp.eq.s32.totalorder %v6590_v38, %v6597_v43  ;;  %vm672_vm15 = vcmp.eq.s32.totalorder %v6599_v45, %v6597_v43  ;;  %v5004_v38 = vsel %vm1453_vm13, 1.0, %v6135_v39 }
 0x12c   : > { %v6613_v19 = vpop.permute.xlu1 %1411  ;;  %v6615_v40 = vpop.permute.xlu0 %884  ;;  %v4990_v45 = vsel %vm1343_vm14, 1.0, %v6135_v39  ;;  %vm1457_vm14 = vcmp.eq.s32.totalorder %v6494_v54, %v6597_v43 }
 0x12d   : > { %8089 = vst [vmem:[#allocation16_spill] sm:$0xff] %v6615_v40  ;;  %v940_v40 = vadd.f32 %v4923_v0, %v828_v59  ;;  %v8091_v59 = vmov 2   ;;  %vm1454_vm0 = vcmp.eq.s32.totalorder %v6613_v19, %v6597_v43  ;;  %v4895_v19 = vsel %vm672_vm15, 1.0, %v6135_v39 }
 0x12e   : > { %5674 = vset.pattern.permute.xlu1 %v8068_v17  ;;  %5724 = vset.pattern.permute.xlu0 %v8070_v1 }
 0x12f   : > { %981 = vperm.xlu1 %5674, %v6366_v13   ;;  %1848 = vperm.xlu0 %5724, %v1797_v29   ;;  %v1801_v29 = vld [vmem:[%s6553_s24 + $0x60] sm:$0xff] }
 0x131   : > { %v958_v7 = vpop.permute.xlu0 %957  ;;  %v6626_v5 = vpop.permute.xlu1 %636 }
 0x132   : > { %vm1004_vm4 = vcmp.eq.s32.totalorder %v958_v7, %v6597_v43 }
 0x133   : > { %v4939_v42 = vsel %vm1004_vm4, 1.0, %v6135_v39  ;;  %5676 = vset.pattern.permute.xlu1 %v8090_v34  ;;  %1863 = vperm.xlu0 %5724, %v1800_v15   ;;  %v4971_v15 = vsel %vm1228_vm5, 1.0, %v6135_v39  ;;  %vm1007_vm4 = vcmp.eq.s32.totalorder %v6527_v2, %v6597_v43  ;;  %vm1230_vm5 = vcmp.eq.s32.totalorder %v6568_v24, %v6597_v43 }
 0x134   : > { %v1052_v32 = vadd.f32 %v4939_v42, %v940_v40  ;;  %766 = vperm.xlu1 %5676, %v6384_v18   ;;  %v4987_v40 = vsel %vm1340_vm7, 1.0, %v6135_v39  ;;  %v4942_v2 = vsel %vm1007_vm4, 1.0, %v6135_v39  ;;  %vm1342_vm7 = vcmp.eq.s32.totalorder %v6545_v9, %v6597_v43 }
 0x135   : > { %v6636_v17 = vpop.permute.xlu0 %960  ;;  %v4973_v24 = vsel %vm1230_vm5, 1.0, %v6135_v39  ;;  %vm1344_vm5 = vcmp.eq.s32.totalorder %v6557_v22, %v6597_v43  ;;  %v5985_v22 = vld [vmem:[%s6310_s17 + $0x48] sm:$0xff] }
 0x136   : > { %v1164_v0 = vadd.f32 %v4955_v12, %v1052_v32  ;;  %v6642_v7 = vpop.permute.xlu1 %1414  ;;  %v8092_v32 = vmov 4   ;;  %vm1005_vm1 = vcmp.eq.s32.totalorder %v6636_v17, %v6597_v43 }
 0x137   : > { %1868 = vperm.xlu0 %5724, %v1801_v29   ;;  %v4940_v17 = vsel %vm1005_vm1, 1.0, %v6135_v39  ;;  %vm1455_vm1 = vcmp.eq.s32.totalorder %v6642_v7, %v6597_v43 }
 0x138   : > { %5677 = vset.pattern.permute.xlu1 %v8091_v59  ;;  %v1276_v62 = vadd.f32 %v4971_v15, %v1164_v0  ;;  %v1804_v0 = vld [vmem:[%s6553_s24 + $0x78] sm:$0xff] }
 0x139   : > { %v964_v42 = vpop.permute.xlu0 %963  ;;  %875 = vperm.xlu1 %5677, %v6378_v16  }
 0x13a   : > { %v1388_v1 = vadd.f32 %v4987_v40, %v1276_v62  ;;  %v1677_v62 = vld [vmem:[%s6661_s30] sm:$0xff]  ;;  %v4909_v40 = vsel %vm782_vm8, 1.0, %v6135_v39  ;;  %vm1006_vm11 = vcmp.eq.s32.totalorder %v964_v42, %v6597_v43  ;;  %v4908_v42 = vsel %vm781_vm12, 1.0, %v6135_v39 }
 0x13b   : > { %v6649_v6 = vpop.permute.xlu1 %860  ;;  %5729 = vset.pattern.permute.xlu0 %v8090_v34  ;;  %v830_v55 = vadd.f32 %v4909_v40, %v4893_v48  ;;  %v4941_v37 = vsel %vm1006_vm11, 1.0, %v6135_v39  ;;  %vm1119_vm8 = vcmp.eq.s32.totalorder %v6448_v36, %v6597_v43  ;;  %vm784_vm12 = vcmp.eq.s32.totalorder %v6462_v44, %v6597_v43 }
 0x13c   : > { %v1500_v12 = vadd.f32 %v5003_v53, %v1388_v1  ;;  %1955 = vperm.xlu0 %5729, %v1801_v29   ;;  %v8093_v1 = vmov 0   ;;  %v4925_v53 = vsel %vm894_vm10, 1.0, %v6135_v39  ;;  %vm1231_vm10 = vcmp.eq.s32.totalorder %v6576_v27, %v6597_v43 }
 0x13d   : > { %5678 = vset.pattern.permute.xlu1 %v8092_v32  ;;  %v6653_v23 = vpop.permute.xlu0 %978  ;;  %v5006_v44 = vsel %vm1455_vm1, 1.0, %v6135_v39 }
 0x13e   : > { %1093 = vperm.xlu1 %5678, %v6366_v13   ;;  %5447 = vmatprep.mubr.f32.mxu1 %v1500_v12 }
 0x140   : > { %v6665_v15 = vpop.permute.xlu1 %639  ;;  %5732 = vset.pattern.permute.xlu0 %v8093_v1 }
 0x141   : > { %v6668_v29 = vpop.permute.xlu0 %984  ;;  %1883 = vperm.xlu0 %5732, %v1804_v0   ;;  %v8095_v0 = vmov 3   ;;  %vm674_vm1 = vcmp.eq.s32.totalorder %v6665_v15, %v6597_v43 }
 0x142   : > { %1096 = vperm.xlu1 %5678, %v6372_v14  }
 0x145   : > { %v6682_v12 = vpop.permute.xlu1 %969  ;;  %v6684_v46 = vpop.permute.xlu0 %993  ;;  %1695 = vperm.xlu0 %5732, %v1677_v62   ;;  %v942_v62 = vadd.f32 %v4925_v53, %v830_v55  ;;  %v1681_v53 = vld [vmem:[%s6661_s30 + $0x20] sm:$0xff]  ;;  %v829_v55 = vadd.f32 %v4908_v42, %v4892_v31  ;;  %v831_v42 = vadd.f32 %v4910_v50, %v4894_v57  ;;  %v4988_v50 = vsel %vm1341_vm9, 1.0, %v6135_v39 }
 0x146   : > { %8094 = vst [vmem:[#allocation17_spill] sm:$0xff] %v6684_v46  ;;  %5679 = vset.pattern.permute.xlu1 %v8095_v0  ;;  %vm1008_vm3 = vcmp.eq.s32.totalorder %v6682_v12, %v6597_v43  ;;  %vm897_vm9 = vcmp.eq.s32.totalorder %v6649_v6, %v6597_v43 }
 0x147   : > { %987 = vperm.xlu1 %5679, %v6378_v16   ;;  %v1054_v40 = vadd.f32 %v4941_v37, %v942_v62  ;;  %v941_v37 = vadd.f32 %v4924_v52, %v829_v55  ;;  %v4989_v55 = vsel %vm1342_vm7, 1.0, %v6135_v39  ;;  %vm785_vm7 = vcmp.eq.s32.totalorder %v6468_v47, %v6597_v43 }
 0x149   : > { %v6702_v30 = vpop.permute.xlu0 %996  ;;  %1705 = vperm.xlu0 %5732, %v1679_v3   ;;  %v4926_v3 = vsel %vm895_vm2, 1.0, %v6135_v39  ;;  %v1166_v31 = vadd.f32 %v4957_v4, %v1054_v40  ;;  %v1053_v46 = vadd.f32 %v4940_v17, %v941_v37  ;;  %v5005_v37 = vsel %vm1454_vm0, 1.0, %v6135_v39 }
 0x14a   : > { %8096 = vst [vmem:[#allocation18_spill] sm:$0xff] %v6702_v30  ;;  %v6709_v48 = vpop.permute.xlu1 %642  ;;  %v8097_v30 = vmov 5   ;;  %v943_v25 = vadd.f32 %v4926_v3, %v831_v42  ;;  %vm896_vm2 = vcmp.eq.s32.totalorder %v6587_v10, %v6597_v43  ;;  %vm786_vm0 = vcmp.eq.s32.totalorder %v6475_v49, %v6597_v43 }
 0x14b   : > { %990 = vperm.xlu1 %5679, %v6384_v18   ;;  %v1278_v40 = vadd.f32 %v4973_v24, %v1166_v31  ;;  %v1165_v9 = vadd.f32 %v4956_v60, %v1053_v46  ;;  %v4974_v46 = vsel %vm1231_vm10, 1.0, %v6135_v39  ;;  %v4897_v49 = vsel %vm674_vm1, 1.0, %v6135_v39 }
 0x14c   : > { %v1055_v52 = vadd.f32 %v4942_v2, %v943_v25  ;;  %v8098_v25 = vmov 6  }
 0x14d   : > { %v6720_v62 = vpop.permute.xlu0 %999  ;;  %1715 = vperm.xlu0 %5732, %v1681_v53   ;;  %v1390_v57 = vadd.f32 %v4989_v55, %v1278_v40 }
 0x14f   : > { %5680 = vset.pattern.permute.xlu1 %v8097_v30  ;;  %v6728_v26 = vpop.permute.xlu1 %972  ;;  %v1502_v2 = vadd.f32 %v5005_v37, %v1390_v57 }
 0x150   : > { %1208 = vperm.xlu1 %5680, %v6372_v14   ;;  %v4958_v14 = vsel %vm1119_vm8, 1.0, %v6135_v39  ;;  %vm673_vm8 = vcmp.eq.s32.totalorder %v6626_v5, %v6597_v43  ;;  %vm1009_vm10 = vcmp.eq.s32.totalorder %v6728_v26, %v6597_v43  ;;  %v4928_v5 = vsel %vm897_vm9, 1.0, %v6135_v39 }
 0x151   : > { %v1167_v3 = vadd.f32 %v4958_v14, %v1055_v52  ;;  %v4927_v52 = vsel %vm896_vm2, 1.0, %v6135_v39  ;;  %v4944_v6 = vsel %vm1009_vm10, 1.0, %v6135_v39  ;;  %vm787_vm2 = vcmp.eq.s32.totalorder %v6482_v51, %v6597_v43 }
 0x152   : > { %v1185_v53 = vpop.permute.xlu0 %1184  ;;  %v4914_v15 = vsel %vm787_vm2, 1.0, %v6135_v39 }
 0x153   : > { %vm1229_vm11 = vcmp.eq.s32.totalorder %v1185_v53, %v6597_v43  ;;  %v1279_v4 = vadd.f32 %v4974_v46, %v1167_v3  ;;  %v4943_v53 = vsel %vm1008_vm3, 1.0, %v6135_v39  ;;  %vm675_vm3 = vcmp.eq.s32.totalorder %v6709_v48, %v6597_v43 }
 0x154   : > { %v4972_v36 = vsel %vm1229_vm11, 1.0, %v6135_v39  ;;  %5681 = vset.pattern.permute.xlu1 %v8098_v25  ;;  %v1082_v21 = vpop.permute.xlu1 %1081  ;;  %v4898_v51 = vsel %vm675_vm3, 1.0, %v6135_v39  ;;  %vm1013_vm3 = vcmp.eq.s32.totalorder %v6668_v29, %v6597_v43 }
 0x155   : > { %v1277_v27 = vadd.f32 %v4972_v36, %v1165_v9  ;;  %1317 = vperm.xlu1 %5681, %v6366_v13   ;;  %v4911_v13 = vsel %vm784_vm12, 1.0, %v6135_v39  ;;  %v1391_v24 = vadd.f32 %v4990_v45, %v1279_v4  ;;  %vm1120_vm4 = vcmp.eq.s32.totalorder %v1082_v21, %v6597_v43 }
 0x156   : > { %v6759_v17 = vpop.permute.xlu0 %1199  ;;  %v832_v60 = vadd.f32 %v4911_v13, %v4895_v19  ;;  %v4959_v9 = vsel %vm1120_vm4, 1.0, %v6135_v39  ;;  %v8099_v36 = vmov 7   ;;  %v4896_v45 = vsel %vm673_vm8, 1.0, %v6135_v39  ;;  %v5986_v19 = vld [vmem:[%s6310_s17 + $0x50] sm:$0xff] }
 0x157   : > { %v1389_v33 = vadd.f32 %v4988_v50, %v1277_v27  ;;  %v1503_v40 = vadd.f32 %v5006_v44, %v1391_v24  ;;  %v5984_v27 = vld [vmem:[%s6310_s17 + $0x40] sm:$0xff] }
 0x158   : > { %v944_v12 = vadd.f32 %v4927_v52, %v832_v60 }
 0x159   : > { %5682 = vset.pattern.permute.xlu1 %v8092_v32  ;;  %v6772_v42 = vpop.permute.xlu1 %866  ;;  %v1501_v7 = vadd.f32 %v5004_v38, %v1389_v33  ;;  %v4912_v38 = vsel %vm785_vm7, 1.0, %v6135_v39  ;;  %vm1011_vm7 = vcmp.eq.s32.totalorder %v6653_v23, %v6597_v43 }
 0x15a   : > { %1102 = vperm.xlu1 %5682, %v6384_v18   ;;  %v6778_v31 = vpop.permute.xlu0 %1205  ;;  %v1683_v18 = vld [vmem:[%s6661_s30 + $0x30] sm:$0xff]  ;;  %v1056_v14 = vadd.f32 %v4943_v53, %v944_v12  ;;  %v833_v37 = vadd.f32 %v4912_v38, %v4896_v45  ;;  %vm899_vm4 = vcmp.eq.s32.totalorder %v6772_v42, %v6597_v43  ;;  %v835_v42 = vadd.f32 %v4914_v15, %v4898_v51 }
 0x15b   : > { %5448 = vmatmul.mubr.f32.vlgmr.msra.gmra.mxu1 %v1501_v7  ;;  %1725 = vperm.xlu0 %5732, %v1683_v18  }
 0x15c   : > { %5450 = vmatprep.mubr.f32.mxu1 %v1502_v2  ;;  %v1168_v50 = vadd.f32 %v4959_v9, %v1056_v14  ;;  %v945_v7 = vadd.f32 %v4928_v5, %v833_v37  ;;  %v5008_v9 = vsel %vm1457_vm14, 1.0, %v6135_v39  ;;  %vm1459_vm14 = vcmp.eq.s32.totalorder %v6501_v56, %v6597_v43 }
 0x15e   : > { %5683 = vset.pattern.permute.xlu1 %v8097_v30  ;;  %v6785_v10 = vpop.permute.xlu1 %975  ;;  %v6789_v55 = vpop.permute.xlu0 %1214  ;;  %v1057_v26 = vadd.f32 %v4944_v6, %v945_v7 }
 0x15f   : > { %1211 = vperm.xlu1 %5683, %v6378_v16   ;;  %5451 = vmatmul.mubr.f32.gmra.mxu1 %v1503_v40  ;;  %v4991_v16 = vsel %vm1344_vm5, 1.0, %v6135_v39  ;;  %vm898_vm5 = vcmp.eq.s32.totalorder %v6593_v41, %v6597_v43 }
 0x162   : > { %v6799_v46 = vpop.permute.xlu0 %1220 }
 0x163   : > { %5684 = vset.pattern.permute.xlu1 %v8099_v36  ;;  %v1194_v21 = vpop.permute.xlu1 %1193 }
 0x164   : > { %vm1232_vm6 = vcmp.eq.s32.totalorder %v1194_v21, %v6597_v43  ;;  %1429 = vperm.xlu1 %5684, %v5984_v27   ;;  %v4913_v27 = vsel %vm786_vm0, 1.0, %v6135_v39  ;;  %vm677_vm0 = vcmp.eq.s32.totalorder %v6524_v63, %v6597_v43 }
 0x165   : > { %v4975_v57 = vsel %vm1232_vm6, 1.0, %v6135_v39  ;;  %vm1010_vm6 = vcmp.eq.s32.totalorder %v6785_v10, %v6597_v43  ;;  %v4946_v10 = vsel %vm1011_vm7, 1.0, %v6135_v39 }
 0x166   : > { %v1280_v3 = vadd.f32 %v4975_v57, %v1168_v50  ;;  %v4930_v57 = vsel %vm899_vm4, 1.0, %v6135_v39 }
 0x167   : > { %v1197_v33 = vpop.permute.xlu1 %1196  ;;  %v1085_v4 = vpop.permute.xlu0 %1084  ;;  %v947_v41 = vadd.f32 %v4930_v57, %v835_v42 }
 0x168   : > { %1432 = vperm.xlu1 %5684, %v5985_v22   ;;  %v1392_v13 = vadd.f32 %v4991_v16, %v1280_v3  ;;  %vm1121_vm11 = vcmp.eq.s32.totalorder %v1085_v4, %v6597_v43  ;;  %vm1233_vm12 = vcmp.eq.s32.totalorder %v1197_v33, %v6597_v43  ;;  %v834_v16 = vadd.f32 %v4913_v27, %v4897_v49  ;;  %v1687_v27 = vld [vmem:[%s6661_s30 + $0x50] sm:$0xff] }
 0x169   : > { %v4960_v2 = vsel %vm1121_vm11, 1.0, %v6135_v39  ;;  %v4976_v52 = vsel %vm1233_vm12, 1.0, %v6135_v39  ;;  %v4929_v3 = vsel %vm898_vm5, 1.0, %v6135_v39  ;;  %v4945_v33 = vsel %vm1010_vm6, 1.0, %v6135_v39 }
 0x16a   : > { %v1169_v24 = vadd.f32 %v4960_v2, %v1057_v26  ;;  %vm1234_vm11 = vcmp.eq.s32.totalorder %v6759_v17, %v6597_v43  ;;  %v1059_v4 = vadd.f32 %v4946_v10, %v947_v41  ;;  %vm679_vm5 = vcmp.eq.s32.totalorder %v6537_v8, %v6597_v43  ;;  %v8100_v8 = vld [vmem:[#allocation15_spill] sm:$0xff] }
 0x16b   : > { %v4977_v37 = vsel %vm1234_vm11, 1.0, %v6135_v39  ;;  %vm1349_vm6 = vcmp.eq.s32.totalorder %v6565_v11, %v6597_v43  ;;  %v6954_v10 = vpop.permute.xlu0 %1099 }
 0x16c   : > { %5685 = vset.pattern.permute.xlu1 %v8098_v25  ;;  %v6814_v47 = vpop.permute.xlu1 %1087  ;;  %v1281_v18 = vadd.f32 %v4976_v52, %v1169_v24  ;;  %v4996_v42 = vsel %vm1349_vm6, 1.0, %v6135_v39 }
 0x16d   : > { %1323 = vperm.xlu1 %5685, %v5986_v19   ;;  %vm1122_vm8 = vcmp.eq.s32.totalorder %v6814_v47, %v6597_v43 }
 0x16e   : > { %v4961_v38 = vsel %vm1122_vm8, 1.0, %v6135_v39 }
 0x170   : > { %v1091_v44 = vpop.permute.xlu1 %1090 }
 0x171   : > { %5687 = vset.pattern.permute.xlu1 %v8093_v1  ;;  %vm1123_vm9 = vcmp.eq.s32.totalorder %v1091_v44, %v6597_v43 }
 0x172   : > { %657 = vperm.xlu1 %5687, %v6433_v28   ;;  %v4962_v45 = vsel %vm1123_vm9, 1.0, %v6135_v39  ;;  %vm676_vm9 = vcmp.eq.s32.totalorder %v6517_v61, %v6597_v43 }
 0x173   : > { %v1171_v6 = vadd.f32 %v4962_v45, %v1059_v4  ;;  %v4899_v61 = vsel %vm676_vm9, 1.0, %v6135_v39 }
 0x175   : > { %v1309_v60 = vpop.permute.xlu1 %1308 }
 0x176   : > { %vm1345_vm13 = vcmp.eq.s32.totalorder %v1309_v60, %v6597_v43  ;;  %5688 = vset.pattern.permute.xlu1 %v8090_v34  ;;  %v5010_v60 = vsel %vm1459_vm14, 1.0, %v6135_v39 }
 0x177   : > { %v4992_v40 = vsel %vm1345_vm13, 1.0, %v6135_v39  ;;  %769 = vperm.xlu1 %5688, %v6433_v28  }
 0x178   : > { %v1393_v53 = vadd.f32 %v4992_v40, %v1281_v18 }
 0x17a   : > { %v1418_v12 = vpop.permute.xlu1 %1417  ;;  %v1505_v50 = vadd.f32 %v5008_v9, %v1393_v53 }
 0x17b   : > { %vm1456_vm15 = vcmp.eq.s32.totalorder %v1418_v12, %v6597_v43  ;;  %5689 = vset.pattern.permute.xlu1 %v8093_v1 }
 0x17c   : > { %v5007_v14 = vsel %vm1456_vm15, 1.0, %v6135_v39  ;;  %660 = vperm.xlu1 %5689, %v6413_v20  }
 0x17d   : > { %v1504_v21 = vadd.f32 %v5007_v14, %v1392_v13  ;;  %v946_v13 = vadd.f32 %v4929_v3, %v834_v16  ;;  %v4948_v16 = vsel %vm1013_vm3, 1.0, %v6135_v39  ;;  %v4902_v3 = vsel %vm679_vm5, 1.0, %v6135_v39 }
 0x17e   : > { %vm1236_vm3 = vcmp.eq.s32.totalorder %v6778_v31, %v6597_v43 }
 0x17f   : > { %5453 = vmatprep.mubr.f32.mxu1 %v1504_v21  ;;  %v1203_v54 = vpop.permute.xlu1 %1202  ;;  %v1058_v23 = vadd.f32 %v4945_v33, %v946_v13 }
 0x180   : > { %5690 = vset.pattern.permute.xlu1 %v8090_v34  ;;  %5454 = vmatmul.mubr.f32.gmra.mxu1 %v1505_v50  ;;  %vm1235_vm10 = vcmp.eq.s32.totalorder %v1203_v54, %v6597_v43  ;;  %v1685_v50 = vld [vmem:[%s6661_s30 + $0x40] sm:$0xff] }
 0x181   : > { %772 = vperm.xlu1 %5690, %v6413_v20   ;;  %v1170_v47 = vadd.f32 %v4961_v38, %v1058_v23  ;;  %v4978_v5 = vsel %vm1235_vm10, 1.0, %v6135_v39  ;;  %1735 = vperm.xlu0 %5732, %v1685_v50   ;;  %vm903_vm10 = vcmp.eq.s32.totalorder %v8100_v8, %v6597_v43  ;;  %v5742_v8 = vld [vmem:[%s8043_s7 + $0x78] ss:$12 sps:$4 sm:$0xff]  }
 0x182   : > { %v1283_v7 = vadd.f32 %v4978_v5, %v1171_v6  ;;  %v4934_v45 = vsel %vm903_vm10, 1.0, %v6135_v39  ;;  %vm1126_vm10 = vcmp.eq.s32.totalorder %v6954_v10, %v6597_v43 }
 0x183   : > { %v1282_v2 = vadd.f32 %v4977_v37, %v1170_v47 }
 0x184   : > { %v1312_v48 = vpop.permute.xlu1 %1311 }
 0x185   : > { %5691 = vset.pattern.permute.xlu1 %v8091_v59  ;;  %vm1346_vm13 = vcmp.eq.s32.totalorder %v1312_v48, %v6597_v43  ;;  %1745 = vperm.xlu0 %5732, %v1687_v27   ;;  %v5738_v27 = vld [vmem:[%s8043_s7 + $0xac] ss:$12 sps:$4 sm:$0xff]  }
 0x186   : > { %881 = vperm.xlu1 %5691, %v6433_v28   ;;  %v4993_v44 = vsel %vm1346_vm13, 1.0, %v6135_v39  ;;  %2253 = vmatprep.subr.bf16.mxu1 %v5738_v27 }
 0x187   : > { %v1394_v52 = vadd.f32 %v4993_v44, %v1282_v2 }
 0x188   : > { %v1315_v22 = vpop.permute.xlu1 %1314 }
 0x189   : > { %vm1347_vm12 = vcmp.eq.s32.totalorder %v1315_v22, %v6597_v43  ;;  %v5987_v22 = vld [vmem:[%s6310_s17 + $0x68] sm:$0xff] }
 0x18a   : > { %5693 = vset.pattern.permute.xlu1 %v8093_v1  ;;  %v4994_v17 = vsel %vm1347_vm12, 1.0, %v6135_v39 }
 0x18b   : > { %663 = vperm.xlu1 %5693, %v6446_v35   ;;  %v1395_v26 = vadd.f32 %v4994_v17, %v1283_v7 }
 0x18d   : > { %v6877_v19 = vpop.permute.xlu1 %757  ;;  %v1507_v56 = vadd.f32 %v5010_v60, %v1395_v26 }
 0x18e   : > { %vm788_vm11 = vcmp.eq.s32.totalorder %v6877_v19, %v6597_v43  ;;  %v6969_v19 = vpop.permute.xlu0 %1105 }
 0x18f   : > { %5694 = vset.pattern.permute.xlu1 %v8090_v34  ;;  %v4915_v4 = vsel %vm788_vm11, 1.0, %v6135_v39 }
 0x190   : > { %775 = vperm.xlu1 %5694, %v6446_v35   ;;  %v836_v37 = vadd.f32 %v4915_v4, %v4899_v61  ;;  %v5745_v4 = vld [vmem:[%s8043_s7 + $0x60] ss:$12 sps:$4 sm:$0xff]  }
 0x192   : > { %v1424_v24 = vpop.permute.xlu1 %1423 }
 0x193   : > { %vm1458_vm15 = vcmp.eq.s32.totalorder %v1424_v24, %v6597_v43 }
 0x194   : > { %v5009_v40 = vsel %vm1458_vm15, 1.0, %v6135_v39  ;;  %5695 = vset.pattern.permute.xlu1 %v8093_v1  ;;  %vm1239_vm15 = vcmp.eq.s32.totalorder %v6789_v55, %v6597_v43  ;;  %v8101_v55 = vld [vmem:[#allocation14_spill] sm:$0xff] }
 0x195   : > { %v1506_v18 = vadd.f32 %v5009_v40, %v1394_v52  ;;  %666 = vperm.xlu1 %5695, %v6508_v58   ;;  %v4982_v2 = vsel %vm1239_vm15, 1.0, %v6135_v39  ;;  %v5988_v52 = vld [vmem:[%s6310_s17 + $0x70] sm:$0xff]  ;;  %v8102_v40 = vld [vmem:[#allocation12_spill] sm:$0xff] }
 0x197   : > { %5456 = vmatprep.mubr.f32.mxu1 %v1506_v18  ;;  %v761_v53 = vpop.permute.xlu1 %760  ;;  %v6991_v18 = vpop.permute.xlu0 %1114 }
 0x198   : > { %5457 = vmatmul.mubr.f32.gmra.mxu1 %v1507_v56  ;;  %vm789_vm1 = vcmp.eq.s32.totalorder %v761_v53, %v6597_v43 }
 0x199   : > { %5696 = vset.pattern.permute.xlu1 %v8090_v34 }
 0x19a   : > { %778 = vperm.xlu1 %5696, %v6508_v58  }
 0x19c   : > { %v6893_v12 = vpop.permute.xlu1 %869 }
 0x19d   : > { %vm900_vm12 = vcmp.eq.s32.totalorder %v6893_v12, %v6597_v43  ;;  %v4979_v12 = vsel %vm1236_vm3, 1.0, %v6135_v39 }
 0x19e   : > { %5697 = vset.pattern.permute.xlu1 %v8091_v59  ;;  %v4931_v47 = vsel %vm900_vm12, 1.0, %v6135_v39 }
 0x19f   : > { %887 = vperm.xlu1 %5697, %v6446_v35   ;;  %v948_v7 = vadd.f32 %v4931_v47, %v836_v37 }
 0x1a0   : > { %v873_v9 = vpop.permute.xlu1 %872 }
 0x1a1   : > { %vm901_vm2 = vcmp.eq.s32.totalorder %v873_v9, %v6597_v43  ;;  %v1689_v9 = vld [vmem:[%s6661_s30 + $0x60] sm:$0xff] }
 0x1a2   : > { %v4932_v48 = vsel %vm901_vm2, 1.0, %v6135_v39  ;;  %vm1351_vm2 = vcmp.eq.s32.totalorder %v8101_v55, %v6597_v43  ;;  %1755 = vperm.xlu0 %5732, %v1689_v9   ;;  %v5749_v55 = vld [vmem:[%s8043_s7 + $0x48] ss:$12 sps:$4 sm:$0xff]  }
 0x1a3   : > { %890 = vperm.xlu1 %5697, %v6508_v58   ;;  %v4998_v31 = vsel %vm1351_vm2, 1.0, %v6135_v39  ;;  %v5760_v9 = vld [vmem:[%s8043_s7 + $0x68] ss:$12 sps:$4 sm:$0xff]  }
 0x1a5   : > { %v6898_v14 = vpop.permute.xlu1 %763 }
 0x1a6   : > { %vm790_vm5 = vcmp.eq.s32.totalorder %v6898_v14, %v6597_v43  ;;  %v5736_v14 = vld [vmem:[%s8043_s7 + $0xa8] ss:$12 sps:$4 sm:$0xff]  }
 0x1a7   : > { %5698 = vset.pattern.permute.xlu1 %v8092_v32  ;;  %v4917_v50 = vsel %vm790_vm5, 1.0, %v6135_v39  ;;  %2254 = vmatpush1.bf16.msra.mxu1 %v5736_v14  ;;  %v5763_v14 = vld [vmem:[%s8043_s7 + $0x4] ss:$12 sps:$4 sm:$0xff]  }
 0x1a8   : > { %1108 = vperm.xlu1 %5698, %v6413_v20  }
 0x1aa   : > { %v6902_v21 = vpop.permute.xlu1 %981 }
 0x1ab   : > { %vm1012_vm14 = vcmp.eq.s32.totalorder %v6902_v21, %v6597_v43 }
 0x1ac   : > { %5700 = vset.pattern.permute.xlu1 %v8097_v30  ;;  %v4947_v17 = vsel %vm1012_vm14, 1.0, %v6135_v39 }
 0x1ad   : > { %1217 = vperm.xlu1 %5700, %v6433_v28   ;;  %v1060_v24 = vadd.f32 %v4947_v17, %v948_v7  ;;  %v5748_v17 = vld [vmem:[%s8043_s7 + $0xb0] ss:$12 sps:$4 sm:$0xff]  }
 0x1ae   : > { %5471 = vmatprep.subr.bf16.mxu0 %v5748_v17 }
 0x1af   : > { %v767_v59 = vpop.permute.xlu1 %766  ;;  %5472 = vmatpush3.bf16.msra.mxu0 %v5748_v17  ;;  %v5991_v17 = vld [vmem:[%s6553_s24 + $0x58] sm:$0xff] }
 0x1b0   : > { %vm791_vm7 = vcmp.eq.s32.totalorder %v767_v59, %v6597_v43 }
 0x1b1   : > { %5701 = vset.pattern.permute.xlu1 %v8095_v0  ;;  %v4916_v0 = vsel %vm789_vm1, 1.0, %v6135_v39  ;;  %v4918_v41 = vsel %vm791_vm7, 1.0, %v6135_v39 }
 0x1b2   : > { %1002 = vperm.xlu1 %5701, %v6508_v58   ;;  %v839_v13 = vadd.f32 %v4918_v41, %v4902_v3 }
 0x1b4   : > { %v6909_v54 = vpop.permute.xlu1 %875  ;;  %v951_v6 = vadd.f32 %v4934_v45, %v839_v13 }
 0x1b5   : > { %vm902_vm7 = vcmp.eq.s32.totalorder %v6909_v54, %v6597_v43 }
 0x1b6   : > { %5703 = vset.pattern.permute.xlu1 %v8092_v32  ;;  %v4900_v32 = vsel %vm677_vm0, 1.0, %v6135_v39 }
 0x1b7   : > { %1111 = vperm.xlu1 %5703, %v6446_v35  }
 0x1b9   : > { %v6914_v49 = vpop.permute.xlu1 %1093 }
 0x1ba   : > { %vm1124_vm0 = vcmp.eq.s32.totalorder %v6914_v49, %v6597_v43  ;;  %v8103_v49 = vld [vmem:[#allocation13_spill] sm:$0xff] }
 0x1bb   : > { %5704 = vset.pattern.permute.xlu1 %v8098_v25 }
 0x1bc   : > { %1329 = vperm.xlu1 %5704, %v6433_v28   ;;  %v837_v28 = vadd.f32 %v4916_v0, %v4900_v32  ;;  %v5741_v32 = vld [vmem:[%s8043_s7 + $0x94] ss:$12 sps:$4 sm:$0xff]   ;;  %v4933_v0 = vsel %vm902_vm7, 1.0, %v6135_v39  ;;  %vm1128_vm7 = vcmp.eq.s32.totalorder %v6969_v19, %v6597_v43 }
 0x1bd   : > { %v1097_v15 = vpop.permute.xlu1 %1096  ;;  %2255 = vmatprep.subr.bf16.mxu1 %v5741_v32  ;;  %v8105_v32 = vld [vmem:[#allocation18_spill] sm:$0xff] }
 0x1be   : > { %v949_v63 = vadd.f32 %v4932_v48, %v837_v28  ;;  %vm1125_vm4 = vcmp.eq.s32.totalorder %v1097_v15, %v6597_v43  ;;  %v1691_v15 = vld [vmem:[%s6661_s30 + $0x70] sm:$0xff]  ;;  %v1790_v28 = vld [vmem:[%s6553_s24 + $0x8] sm:$0xff]  ;;  %vm1017_vm5 = vcmp.eq.s32.totalorder %v8105_v32, %v6597_v43 }
 0x1bf   : > { %v4964_v57 = vsel %vm1125_vm4, 1.0, %v6135_v39  ;;  %vm678_vm4 = vcmp.eq.s32.totalorder %v8102_v40, %v6597_v43  ;;  %1765 = vperm.xlu0 %5732, %v1691_v15  }
 0x1c0   : > { %1332 = vperm.xlu1 %5704, %v6413_v20   ;;  %v4901_v21 = vsel %vm678_vm4, 1.0, %v6135_v39 }
 0x1c2   : > { %v6925_v51 = vpop.permute.xlu1 %987 }
 0x1c3   : > { %5735 = vset.pattern.permute.xlu0 %v8090_v34 }
 0x1c4   : > { %5706 = vset.pattern.permute.xlu1 %v8097_v30 }
 0x1c5   : > { %1223 = vperm.xlu1 %5706, %v6446_v35   ;;  %v1061_v35 = vadd.f32 %v4948_v16, %v949_v63  ;;  %v838_v63 = vadd.f32 %v4917_v50, %v4901_v21  ;;  %v5764_v50 = vld [vmem:[%s8043_s7 + $0x50] ss:$12 sps:$4 sm:$0xff]  }
 0x1c6   : > { %v991_v20 = vpop.permute.xlu1 %990 }
 0x1c7   : > { %v1173_v30 = vadd.f32 %v4964_v57, %v1061_v35  ;;  %vm1015_vm13 = vcmp.eq.s32.totalorder %v991_v20, %v6597_v43  ;;  %v1436_v20 = vpop.permute.xlu0 %1435 }
 0x1c8   : > { %v4950_v5 = vsel %vm1015_vm13, 1.0, %v6135_v39  ;;  %vm1462_vm13 = vcmp.eq.s32.totalorder %v1436_v20, %v6597_v43  ;;  %v5765_v20 = vld [vmem:[%s8043_s7 + $0x38] ss:$12 sps:$4 sm:$0xff]  }
 0x1c9   : > { %1226 = vperm.xlu1 %5706, %v6508_v58   ;;  %v1063_v44 = vadd.f32 %v4950_v5, %v951_v6  ;;  %v1791_v5 = vld [vmem:[%s6553_s24 + $0x10] sm:$0xff] }
 0x1cb   : > { %v1209_v29 = vpop.permute.xlu1 %1208  ;;  %v1439_v10 = vpop.permute.xlu0 %1438 }
 0x1cc   : > { %vm1237_vm8 = vcmp.eq.s32.totalorder %v1209_v29, %v6597_v43  ;;  %v5744_v29 = vld [vmem:[%s8043_s7 + $0x7c] ss:$12 sps:$4 sm:$0xff]   ;;  %vm1463_vm14 = vcmp.eq.s32.totalorder %v1439_v10, %v6597_v43 }
 0x1cd   : > { %v4980_v33 = vsel %vm1237_vm8, 1.0, %v6135_v39  ;;  %5707 = vset.pattern.permute.xlu1 %v8099_v36  ;;  %vm1014_vm8 = vcmp.eq.s32.totalorder %v6925_v51, %v6597_v43  ;;  %v5739_v51 = vld [vmem:[%s8043_s7 + $0x90] ss:$12 sps:$4 sm:$0xff]  }
 0x1ce   : > { %v1285_v11 = vadd.f32 %v4980_v33, %v1173_v30  ;;  %1444 = vperm.xlu1 %5707, %v5987_v22   ;;  %v4949_v57 = vsel %vm1014_vm8, 1.0, %v6135_v39  ;;  %v950_v30 = vadd.f32 %v4933_v0, %v838_v63  ;;  %2256 = vmatpush1.bf16.msra.mxu1 %v5739_v51  ;;  %v5747_v22 = vld [vmem:[%s8043_s7 + $0x64] ss:$12 sps:$4 sm:$0xff]   ;;  %v8106_v51 = vld [vmem:[#allocation17_spill] sm:$0xff] }
 0x1cf   : > { %2257 = vmatprep.subr.bf16.mxu1 %v5744_v29  ;;  %v1795_v63 = vld [vmem:[%s6553_s24 + $0x30] sm:$0xff] }
 0x1d0   : > { %v1318_v38 = vpop.permute.xlu1 %1317  ;;  %v6959_v23 = vadd.f32 %v4996_v42, %v1285_v11  ;;  %v1062_v41 = vadd.f32 %v4949_v57, %v950_v30  ;;  %v4965_v11 = vsel %vm1126_vm10, 1.0, %v6135_v39  ;;  %v4952_v30 = vsel %vm1017_vm5, 1.0, %v6135_v39 }
 0x1d1   : > { %vm1348_vm6 = vcmp.eq.s32.totalorder %v1318_v38, %v6597_v43 }
 0x1d2   : > { %5709 = vset.pattern.permute.xlu1 %v8098_v25  ;;  %v4995_v54 = vsel %vm1348_vm6, 1.0, %v6135_v39  ;;  %v1174_v45 = vadd.f32 %v4965_v11, %v1062_v41  ;;  %2258 = vmatpush1.bf16.msra.mxu1 %v5742_v8  ;;  %vm1016_vm6 = vcmp.eq.s32.totalorder %v8106_v51, %v6597_v43  ;;  %v4967_v8 = vsel %vm1128_vm7, 1.0, %v6135_v39 }
 0x1d3   : > { %1338 = vperm.xlu1 %5709, %v6508_v58   ;;  %v4963_v58 = vsel %vm1124_vm0, 1.0, %v6135_v39  ;;  %2259 = vmatprep.subr.bf16.mxu1 %v5747_v22  ;;  %v4951_v19 = vsel %vm1016_vm6, 1.0, %v6135_v39  ;;  %vm1018_vm6 = vcmp.eq.s32.totalorder %v6720_v62, %v6597_v43 }
 0x1d5   : > { %v1103_v25 = vpop.permute.xlu1 %1102 }
 0x1d6   : > { %vm1127_vm1 = vcmp.eq.s32.totalorder %v1103_v25, %v6597_v43  ;;  %v5014_v25 = vsel %vm1463_vm14, 1.0, %v6135_v39  ;;  %2260 = vmatpush1.bf16.msra.mxu1 %v5745_v4 }
 0x1d7   : > { %v4966_v26 = vsel %vm1127_vm1, 1.0, %v6135_v39  ;;  %5710 = vset.pattern.permute.xlu1 %v8099_v36  ;;  %v1172_v36 = vadd.f32 %v4963_v58, %v1060_v24 }
 0x1d8   : > { %v1175_v60 = vadd.f32 %v4966_v26, %v1063_v44  ;;  %1447 = vperm.xlu1 %5710, %v5988_v52   ;;  %v5751_v44 = vld [vmem:[%s8043_s7 + $0x4c] ss:$12 sps:$4 sm:$0xff]   ;;  %v5753_v52 = vld [vmem:[%s8043_s7 + $0x30] ss:$12 sps:$4 sm:$0xff]  }
 0x1d9   : > { %v1284_v48 = vadd.f32 %v4979_v12, %v1172_v36  ;;  %2261 = vmatprep.subr.bf16.mxu1 %v5751_v44  ;;  %v5756_v36 = vld [vmem:[%s8043_s7 + $0x80] ss:$12 sps:$4 sm:$0xff]  }
 0x1da   : > { %v1287_v56 = vadd.f32 %v4982_v2, %v1175_v60  ;;  %v1212_v53 = vpop.permute.xlu1 %1211  ;;  %v5752_v2 = vld [vmem:[%s8043_s7 + $0x98] ss:$12 sps:$4 sm:$0xff]   ;;  %v5755_v60 = vld [vmem:[%s8043_s7 + $0x34] ss:$12 sps:$4 sm:$0xff]   ;;  %2262 = vmatpush1.bf16.msra.mxu1 %v5749_v55  ;;  %v1794_v12 = vld [vmem:[%s6553_s24 + $0x28] sm:$0xff] }
 0x1db   : > { %v1396_v35 = vadd.f32 %v4995_v54, %v1284_v48  ;;  %vm1238_vm11 = vcmp.eq.s32.totalorder %v1212_v53, %v6597_v43  ;;  %5473 = vmatprep.subr.bf16.mxu0 %v5752_v2  ;;  %2263 = vmatprep.subr.bf16.mxu1 %v5755_v60  ;;  %v5989_v53 = vld [vmem:[%s6553_s24 + $0x18] sm:$0xff]  ;;  %v8104_v54 = vld [vmem:[#allocation16_spill] sm:$0xff]  ;;  %v1802_v44 = vld [vmem:[%s6553_s24 + $0x68] sm:$0xff] }
 0x1dc   : > { %v7004_v59 = vadd.f32 %v4998_v31, %v1287_v56  ;;  %5712 = vset.pattern.permute.xlu1 %v8093_v1  ;;  %v4981_v38 = vsel %vm1238_vm11, 1.0, %v6135_v39  ;;  %5474 = vmatpush3.bf16.msra.mxu0 %v5752_v2  ;;  %v5759_v56 = vld [vmem:[%s8043_s7 + $0x1c] ss:$12 sps:$4 sm:$0xff]   ;;  %v5757_v31 = vld [vmem:[%s8043_s7 + $0x18] ss:$12 sps:$4 sm:$0xff]   ;;  %vm905_vm2 = vcmp.eq.s32.totalorder %v8104_v54, %v6597_v43  ;;  %v1803_v60 = vld [vmem:[%s6553_s24 + $0x70] sm:$0xff] }
 0x1dd   : > { %1808 = vperm.xlu1 %5712, %v8103_v49   ;;  %v1286_v37 = vadd.f32 %v4981_v38, %v1174_v45  ;;  %5475 = vmatprep.subr.bf16.mxu0 %v5756_v36  ;;  %v1798_v45 = vld [vmem:[%s6553_s24 + $0x48] sm:$0xff] }
 0x1de   : > { %v1511_v24 = vadd.f32 %v5014_v25, %v7004_v59  ;;  %2264 = vmatpush1.bf16.msra.mxu1 %v5753_v52  ;;  %v5761_v59 = vld [vmem:[%s8043_s7] ss:$12 sps:$4 sm:$0xff]  }
 0x1df   : > { %v1430_v16 = vpop.permute.xlu1 %1429  ;;  %2265 = vmatprep.subr.bf16.mxu1 %v5759_v56  ;;  %v5770_v55 = vld [vmem:[#allocation4 + $0xac] ss:$12 sps:$4 sm:$0xff]  }
 0x1e0   : > { %vm1460_vm9 = vcmp.eq.s32.totalorder %v1430_v16, %v6597_v43  ;;  %5476 = vmatpush3.bf16.msra.mxu0 %v5756_v36  ;;  %v5766_v16 = vld [vmem:[%s8043_s7 + $0x20] ss:$12 sps:$4 sm:$0xff]  }
 0x1e1   : > { %v5011_v3 = vsel %vm1460_vm9, 1.0, %v6135_v39  ;;  %1813 = vperm.xlu1 %5712, %v1790_v28   ;;  %5477 = vmatprep.subr.bf16.mxu0 %v5760_v9  ;;  %vm1241_vm9 = vcmp.eq.s32.totalorder %v6799_v46, %v6597_v43 }
 0x1e2   : > { %v1508_v42 = vadd.f32 %v5011_v3, %v1396_v35  ;;  %2266 = vmatpush1.bf16.msra.mxu1 %v5757_v31  ;;  %v4984_v2 = vsel %vm1241_vm9, 1.0, %v6135_v39 }
 0x1e3   : > { %v1433_v33 = vpop.permute.xlu1 %1432  ;;  %2267 = vmatprep.subr.bf16.mxu1 %v5763_v14 }
 0x1e4   : > { %vm1461_vm12 = vcmp.eq.s32.totalorder %v1433_v33, %v6597_v43  ;;  %5459 = vmatprep.mubr.f32.mxu1 %v1508_v42  ;;  %5478 = vmatpush3.bf16.msra.mxu0 %v5760_v9 }
 0x1e5   : > { %v5012_v13 = vsel %vm1461_vm12, 1.0, %v6135_v39  ;;  %5714 = vset.pattern.permute.xlu1 %v8090_v34  ;;  %5479 = vmatprep.subr.bf16.mxu0 %v5764_v50 }
 0x1e6   : > { %v1509_v61 = vadd.f32 %v5012_v13, %v6959_v23  ;;  %1911 = vperm.xlu1 %5714, %v1790_v28   ;;  %v5013_v23 = vsel %vm1462_vm13, 1.0, %v6135_v39  ;;  %2268 = vmatpush1.bf16.msra.mxu1 %v5761_v59  ;;  %v4936_v28 = vsel %vm905_vm2, 1.0, %v6135_v39  ;;  %v5767_v13 = vld [vmem:[%s8043_s7 + $0x8] ss:$12 sps:$4 sm:$0xff]  }
 0x1e7   : > { %v1678_v59 = vld [vmem:[%s6661_s30 + $0x8] sm:$0xff] }
 0x1e8   : > { %5460 = vmatmul.mubr.f32.gmra.mxu1 %v1509_v61  ;;  %v1324_v47 = vpop.permute.xlu1 %1323  ;;  %5480 = vmatpush3.bf16.msra.mxu0 %v5764_v50  ;;  %v5990_v61 = vld [vmem:[%s6553_s24 + $0x38] sm:$0xff] }
 0x1e9   : > { %vm1350_vm15 = vcmp.eq.s32.totalorder %v1324_v47, %v6597_v43  ;;  %5481 = vmatprep.subr.bf16.mxu0 %v5765_v20 }
 0x1ea   : > { %v4997_v6 = vsel %vm1350_vm15, 1.0, %v6135_v39  ;;  %5715 = vset.pattern.permute.xlu1 %v8093_v1 }
 0x1eb   : > { %v1398_v7 = vadd.f32 %v4997_v6, %v1286_v37  ;;  %1818 = vperm.xlu1 %5715, %v1791_v5  }
 0x1ec   : > { %5482 = vmatpush3.bf16.msra.mxu0 %v5765_v20  ;;  %v1682_v20 = vld [vmem:[%s6661_s30 + $0x28] sm:$0xff] }
 0x1ed   : > { %v658_v58 = vpop.permute.xlu1 %657  ;;  %v1510_v26 = vadd.f32 %v5013_v23, %v1398_v7  ;;  %5483 = vmatprep.subr.bf16.mxu0 %v5766_v16 }
 0x1ee   : > { %vm680_vm4 = vcmp.eq.s32.totalorder %v658_v58, %v6597_v43 }
 0x1ef   : > { %5716 = vset.pattern.permute.xlu1 %v8090_v34  ;;  %5462 = vmatprep.mubr.f32.mxu1 %v1510_v26  ;;  %v4903_v57 = vsel %vm680_vm4, 1.0, %v6135_v39 }
 0x1f0   : > { %1915 = vperm.xlu1 %5716, %v1791_v5   ;;  %5463 = vmatmul.mubr.f32.gmra.mxu1 %v1511_v24  ;;  %v1799_v5 = vld [vmem:[%s6553_s24 + $0x50] sm:$0xff] }
 0x1f1   : > { %5484 = vmatpush3.bf16.msra.mxu0 %v5766_v16  ;;  %v7167_v24 = vld [vmem:[#allocation4 + $0xb0] ss:$12 sps:$4 sm:$0xff]  }
 0x1f2   : > { %v770_v40 = vpop.permute.xlu1 %769  ;;  %5485 = vmatprep.subr.bf16.mxu0 %v5767_v13  ;;  %5503 = vmatprep.subr.bf16.mxu1 %v7167_v24 }
 0x1f3   : > { %vm792_vm1 = vcmp.eq.s32.totalorder %v770_v40, %v6597_v43  ;;  %v1442_v40 = vpop.permute.xlu0 %1441 }
 0x1f4   : > { %1919 = vperm.xlu1 %5716, %v5989_v53   ;;  %v4919_v0 = vsel %vm792_vm1, 1.0, %v6135_v39  ;;  %vm1464_vm12 = vcmp.eq.s32.totalorder %v1442_v40, %v6597_v43 }
 0x1f5   : > { %v840_v3 = vadd.f32 %v4919_v0, %v4903_v57  ;;  %5486 = vmatpush3.bf16.msra.mxu0 %v5767_v13  ;;  %v5015_v31 = vsel %vm1464_vm12, 1.0, %v6135_v39 }
 0x1f6   : > { %2591 = vmatprep.subr.bf16.mxu0 %v5770_v55 }
 0x1f7   : > { %v661_v21 = vpop.permute.xlu1 %660 }
 0x1f8   : > { %5717 = vset.pattern.permute.xlu1 %v8093_v1  ;;  %vm681_vm0 = vcmp.eq.s32.totalorder %v661_v21, %v6597_v43  ;;  %v5992_v21 = vld [vmem:[%s6553_s24 + $0x78] sm:$0xff] }
 0x1f9   : > { %1833 = vperm.xlu1 %5717, %v1794_v12   ;;  %v4904_v49 = vsel %vm681_vm0, 1.0, %v6135_v39 }
 0x1fc   : > { %v773_v27 = vpop.permute.xlu1 %772 }
 0x1fd   : > { %vm793_vm3 = vcmp.eq.s32.totalorder %v773_v27, %v6597_v43  ;;  %5719 = vset.pattern.permute.xlu1 %v8090_v34  ;;  %v1680_v27 = vld [vmem:[%s6661_s30 + $0x18] sm:$0xff] }
 0x1fe   : > { %v4920_v15 = vsel %vm793_vm3, 1.0, %v6135_v39  ;;  %1927 = vperm.xlu1 %5719, %v1794_v12  }
 0x1ff   : > { %v841_v48 = vadd.f32 %v4920_v15, %v4904_v49 }
 0x201   : > { %v953_v35 = vadd.f32 %v4936_v28, %v841_v48  ;;  %v882_v29 = vpop.permute.xlu1 %881 }
 0x202   : > { %vm904_vm8 = vcmp.eq.s32.totalorder %v882_v29, %v6597_v43  ;;  %5720 = vset.pattern.permute.xlu1 %v8093_v1  ;;  %v4953_v29 = vsel %vm1018_vm6, 1.0, %v6135_v39 }
 0x203   : > { %v4935_v42 = vsel %vm904_vm8, 1.0, %v6135_v39  ;;  %1838 = vperm.xlu1 %5720, %v1795_v63   ;;  %v1065_v41 = vadd.f32 %v4952_v30, %v953_v35  ;;  %vm1131_vm8 = vcmp.eq.s32.totalorder %v6991_v18, %v6597_v43 }
 0x204   : > { %v952_v33 = vadd.f32 %v4935_v42, %v840_v3  ;;  %v1336_v3 = vpop.permute.xlu0 %1335 }
 0x205   : > { %vm1354_vm12 = vcmp.eq.s32.totalorder %v1336_v3, %v6597_v43  ;;  %v5779_v3 = vld [vmem:[#allocation4 + $0x80] ss:$12 sps:$4 sm:$0xff]  }
 0x206   : > { %v1064_v11 = vadd.f32 %v4951_v19, %v952_v33  ;;  %v7134_v22 = vpop.permute.xlu1 %663 }
 0x207   : > { %5721 = vset.pattern.permute.xlu1 %v8090_v34  ;;  %vm682_vm0 = vcmp.eq.s32.totalorder %v7134_v22, %v6597_v43 }
 0x208   : > { %1931 = vperm.xlu1 %5721, %v1795_v63   ;;  %v1176_v10 = vadd.f32 %v4967_v8, %v1064_v11  ;;  %v4905_v32 = vsel %vm682_vm0, 1.0, %v6135_v39 }
 0x20b   : > { %v7140_v38 = vpop.permute.xlu1 %775 }
 0x20c   : > { %1935 = vperm.xlu1 %5721, %v5990_v61   ;;  %vm794_vm14 = vcmp.eq.s32.totalorder %v7140_v38, %v6597_v43  ;;  %v4970_v38 = vsel %vm1131_vm8, 1.0, %v6135_v39 }
 0x20d   : > { %v4921_v54 = vsel %vm794_vm14, 1.0, %v6135_v39 }
 0x20e   : > { %v842_v48 = vadd.f32 %v4921_v54, %v4905_v32 }
 0x210   : > { %5722 = vset.pattern.permute.xlu1 %v8093_v1  ;;  %v7145_v4 = vpop.permute.xlu1 %666 }
 0x211   : > { %1853 = vperm.xlu1 %5722, %v1798_v45   ;;  %vm683_vm2 = vcmp.eq.s32.totalorder %v7145_v4, %v6597_v43 }
 0x212   : > { %v4906_v28 = vsel %vm683_vm2, 1.0, %v6135_v39 }
 0x215   : > { %5725 = vset.pattern.permute.xlu1 %v8090_v34  ;;  %v7148_v47 = vpop.permute.xlu1 %778 }
 0x216   : > { %1943 = vperm.xlu1 %5725, %v1798_v45   ;;  %vm795_vm15 = vcmp.eq.s32.totalorder %v7148_v47, %v6597_v43  ;;  %v1686_v47 = vld [vmem:[%s6661_s30 + $0x48] sm:$0xff] }
 0x217   : > { %v4922_v49 = vsel %vm795_vm15, 1.0, %v6135_v39 }
 0x218   : > { %v843_v16 = vadd.f32 %v4922_v49, %v4906_v28 }
 0x21a   : > { %5726 = vset.pattern.permute.xlu1 %v8093_v1  ;;  %v7152_v37 = vpop.permute.xlu1 %887 }
 0x21b   : > { %1858 = vperm.xlu1 %5726, %v1799_v5   ;;  %vm906_vm1 = vcmp.eq.s32.totalorder %v7152_v37, %v6597_v43  ;;  %v1451_v37 = vpop.permute.xlu0 %1450 }
 0x21c   : > { %v4937_v0 = vsel %vm906_vm1, 1.0, %v6135_v39  ;;  %vm1467_vm14 = vcmp.eq.s32.totalorder %v1451_v37, %v6597_v43  ;;  %v5774_v37 = vld [vmem:[#allocation4 + $0x94] ss:$12 sps:$4 sm:$0xff]  }
 0x21d   : > { %v954_v57 = vadd.f32 %v4937_v0, %v842_v48 }
 0x21e   : > { %v7154_v23 = vpop.permute.xlu1 %890 }
 0x21f   : > { %5727 = vset.pattern.permute.xlu1 %v8090_v34  ;;  %vm907_vm3 = vcmp.eq.s32.totalorder %v7154_v23, %v6597_v43  ;;  %v1066_v11 = vadd.f32 %v4953_v29, %v954_v57 }
 0x220   : > { %1947 = vperm.xlu1 %5727, %v1799_v5   ;;  %v4938_v63 = vsel %vm907_vm3, 1.0, %v6135_v39 }
 0x221   : > { %v955_v30 = vadd.f32 %v4938_v63, %v843_v16 }
 0x223   : > { %v1109_v6 = vpop.permute.xlu1 %1108 }
 0x224   : > { %vm1129_vm10 = vcmp.eq.s32.totalorder %v1109_v6, %v6597_v43  ;;  %1951 = vperm.xlu1 %5727, %v5991_v17   ;;  %v5001_v17 = vsel %vm1354_vm12, 1.0, %v6135_v39 }
 0x225   : > { %v4968_v25 = vsel %vm1129_vm10, 1.0, %v6135_v39 }
 0x226   : > { %v1177_v7 = vadd.f32 %v4968_v25, %v1065_v41  ;;  %v1684_v41 = vld [vmem:[%s6661_s30 + $0x38] sm:$0xff] }
 0x228   : > { %5728 = vset.pattern.permute.xlu1 %v8093_v1  ;;  %v1218_v58 = vpop.permute.xlu1 %1217  ;;  %v7165_v26 = vadd.f32 %v4984_v2, %v1177_v7  ;;  %v1688_v2 = vld [vmem:[%s6661_s30 + $0x58] sm:$0xff] }
 0x229   : > { %1873 = vperm.xlu1 %5728, %v1802_v44   ;;  %vm1240_vm11 = vcmp.eq.s32.totalorder %v1218_v58, %v6597_v43  ;;  %v1805_v58 = vld [vmem:[%s8040_s4] sm:$0x3] }
 0x22a   : > { %v4983_v36 = vsel %vm1240_vm11, 1.0, %v6135_v39 }
 0x22b   : > { %v1288_v53 = vadd.f32 %v4983_v36, %v1176_v10  ;;  %v8107_v10 = vlaneseq }
 0x22d   : > { %5730 = vset.pattern.permute.xlu1 %v8090_v34  ;;  %v1003_v46 = vpop.permute.xlu1 %1002  ;;  %v7221_v18 = vshrl.u32 %v8107_v10, 7  ;;  %v5783_v10 = vld [vmem:[#allocation4 + $0x68] ss:$12 sps:$4 sm:$0xff]  }
 0x22e   : > { %1959 = vperm.xlu1 %5730, %v1802_v44   ;;  %vm1019_vm5 = vcmp.eq.s32.totalorder %v1003_v46, %v6597_v43  ;;  %v5018_v46 = vsel %vm1467_vm14, 1.0, %v6135_v39 }
 0x22f   : > { %v4954_v35 = vsel %vm1019_vm5, 1.0, %v6135_v39  ;;  %8108 = vst [vmem:[#allocation15_spill] sm:$0xff] %v7221_v18  ;;  %v7233_v7 = vsub.s32 1, %v7221_v18  ;;  %v7236_v44 = vsub.s32 0, %v7221_v18 }
 0x230   : > { %v1067_v33 = vadd.f32 %v4954_v35, %v955_v30 }
 0x231   : > { %8109 = vst [vmem:[#allocation14_spill] sm:$0xff] %v7233_v7  ;;  %8110 = vst [vmem:[#allocation12_spill] sm:$0xff] %v7236_v44  ;;  %v7246_v40 = vrot.slane %v1805_v58, %v7233_v7  ;;  %v7249_v36 = vrot.slane %v1805_v58, %v7236_v44  ;;  %v5772_v58 = vld [vmem:[#allocation4 + $0x90] ss:$12 sps:$4 sm:$0xff]  }
 0x232   : > { %5731 = vset.pattern.permute.xlu1 %v8093_v1  ;;  %v1112_v52 = vpop.permute.xlu1 %1111  ;;  %v1179_v5 = vadd.f32 %v4970_v38, %v1067_v33 }
 0x233   : > { %1878 = vperm.xlu1 %5731, %v1803_v60   ;;  %vm1130_vm7 = vcmp.eq.s32.totalorder %v1112_v52, %v6597_v43 }
 0x234   : > { %v4969_v19 = vsel %vm1130_vm7, 1.0, %v6135_v39 }
 0x235   : > { %v1178_v61 = vadd.f32 %v4969_v19, %v1066_v11 }
 0x237   : > { %5733 = vset.pattern.permute.xlu1 %v8090_v34  ;;  %v1330_v56 = vpop.permute.xlu1 %1329 }
 0x238   : > { %vm1352_vm13 = vcmp.eq.s32.totalorder %v1330_v56, %v6597_v43  ;;  %1963 = vperm.xlu1 %5733, %v1803_v60  }
 0x239   : > { %v4999_v12 = vsel %vm1352_vm13, 1.0, %v6135_v39 }
 0x23a   : > { %v1400_v9 = vadd.f32 %v4999_v12, %v1288_v53  ;;  %v1690_v53 = vld [vmem:[%s6661_s30 + $0x68] sm:$0xff] }
 0x23b   : > { %v1333_v14 = vpop.permute.xlu1 %1332 }
 0x23c   : > { %1967 = vperm.xlu1 %5733, %v5992_v21   ;;  %v1512_v50 = vadd.f32 %v5015_v31, %v1400_v9  ;;  %vm1353_vm4 = vcmp.eq.s32.totalorder %v1333_v14, %v6597_v43  ;;  %v1908_v9 = vpop.permute.xlu0 %1907 }
 0x23d   : > { %v5000_v51 = vsel %vm1353_vm4, 1.0, %v6135_v39  ;;  %v1974_v14 = vmul.f32 %v7246_v40, %v1908_v9  ;;  %v5782_v9 = vld [vmem:[#allocation4 + $0x64] ss:$12 sps:$4 sm:$0xff]  }
 0x23e   : > { %5465 = vmatprep.mubr.f32.mxu1 %v1512_v50  ;;  %v1401_v42 = vadd.f32 %v5000_v51, %v7165_v26  ;;  %v5775_v51 = vld [vmem:[#allocation4 + $0x98] ss:$12 sps:$4 sm:$0xff]  }
 0x240   : > { %5734 = vset.pattern.permute.xlu1 %v8093_v1  ;;  %v1224_v34 = vpop.permute.xlu1 %1223  ;;  %v1924_v32 = vpop.permute.xlu0 %1923 }
 0x241   : > { %1700 = vperm.xlu1 %5734, %v1678_v59   ;;  %vm1242_vm9 = vcmp.eq.s32.totalorder %v1224_v34, %v6597_v43  ;;  %v7259_v59 = vld [vmem:[%s8041_s5] ss:$0 sm:$0xff] }
 0x242   : > { %v4985_v13 = vsel %vm1242_vm9, 1.0, %v6135_v39 }
 0x243   : > { %v1290_v23 = vadd.f32 %v4985_v13, %v1178_v61 }
 0x244   : > { %v1227_v15 = vpop.permute.xlu1 %1226  ;;  %v1824_v57 = vpop.permute.xlu0 %1823 }
 0x245   : > { %1710 = vperm.xlu1 %5734, %v1680_v27   ;;  %vm1243_vm11 = vcmp.eq.s32.totalorder %v1227_v15, %v6597_v43  ;;  %v1402_v60 = vadd.f32 %v5001_v17, %v1290_v23  ;;  %v1893_v30 = vmul.f32 %v7249_v36, %v1824_v57  ;;  %v5787_v23 = vld [vmem:[#allocation4 + $0x50] ss:$12 sps:$4 sm:$0xff]  }
 0x246   : > { %v4986_v45 = vsel %vm1243_vm11, 1.0, %v6135_v39 }
 0x247   : > { %v1291_v25 = vadd.f32 %v4986_v45, %v1179_v5 }
 0x248   : > { %v1829_v19 = vpop.permute.xlu0 %1828 }
 0x249   : > { %1720 = vperm.xlu1 %5734, %v1682_v20   ;;  %v1445_v62 = vpop.permute.xlu1 %1444  ;;  %v1894_v11 = vmul.f32 %v7249_v36, %v1829_v19 }
 0x24a   : > { %vm1465_vm10 = vcmp.eq.s32.totalorder %v1445_v62, %v6597_v43 }
 0x24b   : > { %v5016_v8 = vsel %vm1465_vm10, 1.0, %v6135_v39 }
 0x24c   : > { %v1513_v22 = vadd.f32 %v5016_v8, %v1401_v42  ;;  %v1978_v8 = vmul.f32 %v7246_v40, %v1924_v32 }
 0x24d   : > { %1730 = vperm.xlu1 %5734, %v1684_v41  }
 0x24e   : > { %5466 = vmatmul.mubr.f32.gmra.mxu1 %v1513_v22  ;;  %v1339_v4 = vpop.permute.xlu1 %1338  ;;  %v1994_v61 = vadd.f32 %v1978_v8, %v1894_v11  ;;  %v5798_v11 = vld [vmem:[#allocation4 + $0x4] ss:$12 sps:$4 sm:$0xff]  }
 0x24f   : > { %vm1355_vm13 = vcmp.eq.s32.totalorder %v1339_v4, %v6597_v43  ;;  %v5768_v4 = vld [vmem:[#allocation4 + $0xa8] ss:$12 sps:$4 sm:$0xff]  }
 0x250   : > { %v5002_v6 = vsel %vm1355_vm13, 1.0, %v6135_v39  ;;  %v2017_v17 = vadd.f32 %v7259_v59, %v1994_v61 }
 0x251   : > { %1740 = vperm.xlu1 %5734, %v1686_v47   ;;  %v1403_v26 = vadd.f32 %v5002_v6, %v1291_v25 }
 0x253   : > { %v1448_v55 = vpop.permute.xlu1 %1447  ;;  %v1515_v31 = vadd.f32 %v5018_v46, %v1403_v26  ;;  %v1844_v46 = vpop.permute.xlu0 %1843 }
 0x254   : > { %vm1466_vm15 = vcmp.eq.s32.totalorder %v1448_v55, %v6597_v43  ;;  %v5778_v55 = vld [vmem:[#allocation4 + $0x7c] ss:$12 sps:$4 sm:$0xff]  }
 0x255   : > { %v5017_v52 = vsel %vm1466_vm15, 1.0, %v6135_v39  ;;  %1750 = vperm.xlu1 %5734, %v1688_v2   ;;  %v1692_v39 = vld [vmem:[%s6661_s30 + $0x78] sm:$0xff] }
 0x256   : > { %v1514_v56 = vadd.f32 %v5017_v52, %v1402_v60  ;;  %v5791_v2 = vld [vmem:[#allocation4 + $0x38] ss:$12 sps:$4 sm:$0xff]   ;;  %v2033_v60 = vmax.f32 %v2017_v17, 0.0 }
 0x258   : > { %5468 = vmatprep.mubr.f32.mxu1 %v1514_v56  ;;  %v1809_v12 = vpop.permute.xlu1 %1808 }
 0x259   : > { %5469 = vmatmul.mubr.f32.gmra.mxu1 %v1515_v31  ;;  %1760 = vperm.xlu1 %5734, %v1690_v53   ;;  %v1890_v43 = vmul.f32 %v7249_v36, %v1809_v12  ;;  %v5795_v53 = vld [vmem:[#allocation4 + $0x20] ss:$12 sps:$4 sm:$0xff]   ;;  %v5776_v31 = vld [vmem:[#allocation4 + $0x78] ss:$12 sps:$4 sm:$0xff]  }
 0x25a   : > { %2285 = vmatprep.mubr.bf16.mxu1 %v8093_v1 }
 0x25b   : > { %v1990_v50 = vadd.f32 %v1974_v14, %v1890_v43 }
 0x25c   : > { %v1814_v21 = vpop.permute.xlu1 %1813 }
 0x25d   : > { %1770 = vperm.xlu1 %5734, %v1692_v39   ;;  %v1891_v34 = vmul.f32 %v7249_v36, %v1814_v21  ;;  %v2013_v54 = vadd.f32 %v7259_v59, %v1990_v50  ;;  %v1940_v39 = vpop.permute.xlu0 %1939  ;;  %v5780_v50 = vld [vmem:[#allocation4 + $0x60] ss:$12 sps:$4 sm:$0xff]  }
 0x25f   : > { %v2029_v0 = vmax.f32 %v2013_v54, 0.0  ;;  %v5786_v54 = vld [vmem:[#allocation4 + $0x4c] ss:$12 sps:$4 sm:$0xff]  }
 0x261   : > { %v1912_v27 = vpop.permute.xlu1 %1911 }
 0x262   : > { %v1975_v49 = vmul.f32 %v7246_v40, %v1912_v27 }
 0x264   : > { %v1991_v15 = vadd.f32 %v1975_v49, %v1891_v34  ;;  %v5799_v34 = vld [vmem:[#allocation4 + $0x8] ss:$12 sps:$4 sm:$0xff]   ;;  %v1897_v49 = vmul.f32 %v7249_v36, %v1844_v46 }
 0x266   : > { %v2014_v48 = vadd.f32 %v7259_v59, %v1991_v15  ;;  %v1819_v28 = vpop.permute.xlu1 %1818 }
 0x267   : > { %v1892_v16 = vmul.f32 %v7249_v36, %v1819_v28 }
 0x268   : > { %v2030_v63 = vmax.f32 %v2014_v48, 0.0 }
 0x26a   : > { %v2085_v20 = vpack.c.bf16 %v2030_v63, %v2029_v0  ;;  %v5784_v0 = vld [vmem:[#allocation4 + $0x48] ss:$12 sps:$4 sm:$0xff]  }
 0x26b   : > { %v1916_v35 = vpop.permute.xlu1 %1915  ;;  %v5790_v63 = vld [vmem:[#allocation4 + $0x34] ss:$12 sps:$4 sm:$0xff]  }
 0x26c   : > { %v1976_v29 = vmul.f32 %v7246_v40, %v1916_v35  ;;  %2286 = vmatmul.mubr.bf16.vlgmr.msra.gmra.mxu1 %v2085_v20  ;;  %5487 = vmatprep.mubr.bf16.mxu0 %v2085_v20  ;;  %v1849_v20 = vpop.permute.xlu0 %1848  ;;  %v5788_v35 = vld [vmem:[#allocation4 + $0x30] ss:$12 sps:$4 sm:$0xff]  }
 0x26d   : > { %2295 = vmatprep.mubr.bf16.mxu1 %v8093_v1  ;;  %5504 = vmatpush3.bf16.msra.mxu1 %v7167_v24 }
 0x26e   : > { %v1992_v62 = vadd.f32 %v1976_v29, %v1892_v16  ;;  %5505 = vmatprep.subr.bf16.mxu1 %v5775_v51  ;;  %v1982_v16 = vmul.f32 %v7246_v40, %v1940_v39 }
 0x26f   : > { %v1920_v42 = vpop.permute.xlu1 %1919 }
 0x270   : > { %v2015_v41 = vadd.f32 %v7259_v59, %v1992_v62  ;;  %v1977_v33 = vmul.f32 %v7246_v40, %v1920_v42  ;;  %v1864_v61 = vpop.permute.xlu0 %1863 }
 0x271   : > { %5506 = vmatpush3.bf16.msra.mxu1 %v5775_v51  ;;  %v1898_v51 = vmul.f32 %v7249_v36, %v1849_v20 }
 0x272   : > { %v1993_v22 = vadd.f32 %v1977_v33, %v1893_v30  ;;  %5507 = vmatprep.subr.bf16.mxu1 %v5779_v3  ;;  %v2031_v24 = vmax.f32 %v2015_v41, 0.0  ;;  %v5792_v33 = vld [vmem:[#allocation4 + $0x18] ss:$12 sps:$4 sm:$0xff]  }
 0x273   : > { %v1998_v42 = vadd.f32 %v1982_v16, %v1898_v51 }
 0x274   : > { %v2016_v13 = vadd.f32 %v7259_v59, %v1993_v22  ;;  %v1834_v38 = vpop.permute.xlu1 %1833 }
 0x275   : > { %5508 = vmatpush3.bf16.msra.mxu1 %v5779_v3  ;;  %v1895_v47 = vmul.f32 %v7249_v36, %v1834_v38  ;;  %v5794_v3 = vld [vmem:[#allocation4 + $0x1c] ss:$12 sps:$4 sm:$0xff]  }
 0x276   : > { %v2032_v45 = vmax.f32 %v2016_v13, 0.0  ;;  %5509 = vmatprep.subr.bf16.mxu1 %v5783_v10  ;;  %v5796_v13 = vld [vmem:[#allocation4] ss:$12 sps:$4 sm:$0xff]  }
 0x278   : > { %v2086_v5 = vpack.c.bf16 %v2032_v45, %v2031_v24 }
 0x279   : > { %v1928_v6 = vpop.permute.xlu1 %1927  ;;  %5510 = vmatpush3.bf16.msra.mxu1 %v5783_v10  ;;  %v2021_v10 = vadd.f32 %v7259_v59, %v1998_v42 }
 0x27a   : > { %v1979_v25 = vmul.f32 %v7246_v40, %v1928_v6  ;;  %2296 = vmatmul.mubr.bf16.gmra.mxu1 %v2086_v5  ;;  %5488 = vmatmul.mubr.bf16.vlgmr.msra.gmra.mxu0 %v2086_v5  ;;  %v1869_v6 = vpop.permute.xlu0 %1868 }
 0x27b   : > { %2305 = vmatprep.mubr.bf16.mxu1 %v8093_v1  ;;  %2592 = vmatpush1.bf16.msra.mxu0 %v5768_v4  ;;  %v2037_v45 = vmax.f32 %v2021_v10, 0.0 }
 0x27c   : > { %v1995_v26 = vadd.f32 %v1979_v25, %v1895_v47  ;;  %2593 = vmatprep.subr.bf16.mxu0 %v5774_v37  ;;  %5511 = vmatprep.subr.bf16.mxu1 %v5787_v23 }
 0x27d   : > { %5512 = vmatpush3.bf16.msra.mxu1 %v5787_v23 }
 0x27e   : > { %v2018_v52 = vadd.f32 %v7259_v59, %v1995_v26  ;;  %v1839_v56 = vpop.permute.xlu1 %1838  ;;  %5513 = vmatprep.subr.bf16.mxu1 %v5791_v2 }
 0x27f   : > { %2594 = vmatpush1.bf16.msra.mxu0 %v5772_v58  ;;  %v1896_v14 = vmul.f32 %v7249_v36, %v1839_v56 }
 0x280   : > { %v2034_v12 = vmax.f32 %v2018_v52, 0.0  ;;  %2595 = vmatprep.subr.bf16.mxu0 %v5778_v55  ;;  %v1902_v52 = vmul.f32 %v7249_v36, %v1869_v6 }
 0x281   : > { %5514 = vmatpush3.bf16.msra.mxu1 %v5791_v2  ;;  %v1901_v2 = vmul.f32 %v7249_v36, %v1864_v61 }
 0x282   : > { %v2087_v43 = vpack.c.bf16 %v2034_v12, %v2033_v60  ;;  %5515 = vmatprep.subr.bf16.mxu1 %v5795_v53  ;;  %v1956_v60 = vpop.permute.xlu0 %1955 }
 0x283   : > { %v1932_v21 = vpop.permute.xlu1 %1931  ;;  %2596 = vmatpush1.bf16.msra.mxu0 %v5776_v31  ;;  %v1986_v56 = vmul.f32 %v7246_v40, %v1956_v60  ;;  %v5800_v60 = vld [vmem:[%s8045_s9 + $0xa8] ss:$12 sps:$4 sm:$0xff]  }
 0x284   : > { %v1980_v27 = vmul.f32 %v7246_v40, %v1932_v21  ;;  %2306 = vmatmul.mubr.bf16.gmra.mxu1 %v2087_v43  ;;  %5491 = vmatprep.mubr.bf16.mxu0 %v2087_v43 }
 0x285   : > { %2315 = vmatprep.mubr.bf16.mxu1 %v8093_v1  ;;  %2597 = vmatprep.subr.bf16.mxu0 %v5782_v9 }
 0x286   : > { %v1996_v15 = vadd.f32 %v1980_v27, %v1896_v14  ;;  %5516 = vmatpush3.bf16.msra.mxu1 %v5795_v53  ;;  %v2002_v14 = vadd.f32 %v1986_v56, %v1902_v52  ;;  %v1884_v16 = vpop.permute.xlu0 %1883  ;;  %v5805_v56 = vld [vmem:[%s8045_s9 + $0x94] ss:$12 sps:$4 sm:$0xff]  }
 0x287   : > { %v1936_v32 = vpop.permute.xlu1 %1935  ;;  %2598 = vmatpush1.bf16.msra.mxu0 %v5780_v50  ;;  %5517 = vmatprep.subr.bf16.mxu1 %v5799_v34 }
 0x288   : > { %v2019_v48 = vadd.f32 %v7259_v59, %v1996_v15  ;;  %v1981_v28 = vmul.f32 %v7246_v40, %v1936_v32  ;;  %2599 = vmatprep.subr.bf16.mxu0 %v5786_v54  ;;  %v5449_v15 = vpop.f32.mrf.mxu1 }
 0x28a   : > { %v1997_v57 = vadd.f32 %v1981_v28, %v1897_v49  ;;  %5518 = vmatpush3.bf16.msra.mxu1 %v5799_v34  ;;  %v2035_v29 = vmax.f32 %v2019_v48, 0.0  ;;  %v2025_v34 = vadd.f32 %v7259_v59, %v2002_v14  ;;  %v1598_v28 = vpop.f32.mrf.mxu1  ;;  %v5803_v14 = vld [vmem:[%s8045_s9 + $0x90] ss:$12 sps:$4 sm:$0xff]  }
 0x28b   : > { %2600 = vmatpush1.bf16.msra.mxu0 %v5784_v0 }
 0x28c   : > { %v2020_v30 = vadd.f32 %v7259_v59, %v1997_v57  ;;  %v1854_v62 = vpop.permute.xlu1 %1853  ;;  %2601 = vmatprep.subr.bf16.mxu0 %v5790_v63  ;;  %v2041_v49 = vmax.f32 %v2025_v34, 0.0 }
 0x28d   : > { %v1899_v19 = vmul.f32 %v7249_v36, %v1854_v62 }
 0x28e   : > { %v2036_v41 = vmax.f32 %v2020_v30, 0.0 }
 0x28f   : > { %2602 = vmatpush1.bf16.msra.mxu0 %v5788_v35  ;;  %v1905_v35 = vmul.f32 %v7249_v36, %v1884_v16 }
 0x290   : > { %v2088_v8 = vpack.c.bf16 %v2036_v41, %v2035_v29  ;;  %2603 = vmatprep.subr.bf16.mxu0 %v5794_v3  ;;  %v5452_v29 = vpop.f32.mrf.mxu1  ;;  %v1696_v41 = vpop.permute.xlu0 %1695 }
 0x291   : > { %v1944_v22 = vpop.permute.xlu1 %1943 }
 0x292   : > { %v1983_v24 = vmul.f32 %v7246_v40, %v1944_v22  ;;  %2316 = vmatmul.mubr.bf16.gmra.mxu1 %v2088_v8  ;;  %5492 = vmatmul.mubr.bf16.gmra.mxu0 %v2088_v8 }
 0x293   : > { %2325 = vmatprep.mubr.bf16.mxu1 %v8093_v1  ;;  %2604 = vmatpush1.bf16.msra.mxu0 %v5792_v33  ;;  %v1608_v33 = vpop.f32.mrf.mxu1 }
 0x294   : > { %v1999_v38 = vadd.f32 %v1983_v24, %v1899_v19  ;;  %2605 = vmatprep.subr.bf16.mxu0 %v5798_v11  ;;  %v1706_v61 = vpop.permute.xlu0 %1705 }
 0x295   : > { %v5455_v8 = vpop.f32.mrf.mxu1 }
 0x296   : > { %v2022_v4 = vadd.f32 %v7259_v59, %v1999_v38  ;;  %v1859_v47 = vpop.permute.xlu1 %1858  ;;  %v1773_v38 = vmul.f32 %v1696_v41, %v1598_v28  ;;  %v5824_v41 = vld [vmem:[%s8045_s9 + $0x228] ss:$12 sps:$4 sm:$0xff]  }
 0x297   : > { %2606 = vmatpush1.bf16.msra.mxu0 %v5796_v13  ;;  %v1900_v37 = vmul.f32 %v7249_v36, %v1859_v47 }
 0x298   : > { %v2038_v5 = vmax.f32 %v2022_v4, 0.0 }
 0x29a   : > { %v2089_v23 = vpack.c.bf16 %v2038_v5, %v2037_v45 }
 0x29b   : > { %v1948_v17 = vpop.permute.xlu1 %1947 }
 0x29c   : > { %v1984_v25 = vmul.f32 %v7246_v40, %v1948_v17  ;;  %2326 = vmatmul.mubr.bf16.gmra.mxu1 %v2089_v23  ;;  %5495 = vmatprep.mubr.bf16.mxu0 %v2089_v23  ;;  %v1775_v17 = vmul.f32 %v1706_v61, %v1608_v33  ;;  %v5826_v33 = vld [vmem:[%s8045_s9 + $0x22c] ss:$12 sps:$4 sm:$0xff]   ;;  %v5841_v61 = vld [vmem:[%s8045_s9 + $0x13c] ss:$12 sps:$4 sm:$0xff]  }
 0x29d   : > { %2335 = vmatprep.mubr.bf16.mxu1 %v8093_v1  ;;  %3548 = vmatprep.subr.bf16.mxu1 %v5826_v33 }
 0x29e   : > { %v2000_v58 = vadd.f32 %v1984_v25, %v1900_v37 }
 0x29f   : > { %v1952_v26 = vpop.permute.xlu1 %1951 }
 0x2a0   : > { %v2023_v55 = vadd.f32 %v7259_v59, %v2000_v58  ;;  %v1985_v46 = vmul.f32 %v7246_v40, %v1952_v26 }
 0x2a2   : > { %v2001_v53 = vadd.f32 %v1985_v46, %v1901_v2  ;;  %v2039_v31 = vmax.f32 %v2023_v55, 0.0 }
 0x2a4   : > { %v2024_v12 = vadd.f32 %v7259_v59, %v2001_v53  ;;  %v1874_v9 = vpop.permute.xlu1 %1873 }
 0x2a5   : > { %v1903_v39 = vmul.f32 %v7249_v36, %v1874_v9 }
 0x2a6   : > { %v2040_v43 = vmax.f32 %v2024_v12, 0.0 }
 0x2a8   : > { %v2090_v21 = vpack.c.bf16 %v2040_v43, %v2039_v31 }
 0x2a9   : > { %v1960_v50 = vpop.permute.xlu1 %1959 }
 0x2aa   : > { %v1987_v27 = vmul.f32 %v7246_v40, %v1960_v50  ;;  %2336 = vmatmul.mubr.bf16.gmra.mxu1 %v2090_v21  ;;  %5496 = vmatmul.mubr.bf16.gmra.mxu0 %v2090_v21 }
 0x2ab   : > { %2345 = vmatprep.mubr.bf16.mxu1 %v8093_v1 }
 0x2ac   : > { %v2003_v54 = vadd.f32 %v1987_v27, %v1903_v39 }
 0x2ae   : > { %v2026_v32 = vadd.f32 %v7259_v59, %v2003_v54  ;;  %v1879_v0 = vpop.permute.xlu1 %1878 }
 0x2af   : > { %v1904_v63 = vmul.f32 %v7249_v36, %v1879_v0  ;;  %v1618_v36 = vpop.f32.mrf.mxu1 }
 0x2b0   : > { %v2042_v48 = vmax.f32 %v2026_v32, 0.0 }
 0x2b1   : > { %v5458_v5 = vpop.f32.mrf.mxu1 }
 0x2b2   : > { %v2091_v20 = vpack.c.bf16 %v2042_v48, %v2041_v49  ;;  %v5806_v49 = vld [vmem:[%s8045_s9 + $0x78] ss:$12 sps:$4 sm:$0xff]  }
 0x2b3   : > { %v1964_v51 = vpop.permute.xlu1 %1963  ;;  %v1628_v25 = vpop.f32.mrf.mxu1 }
 0x2b4   : > { %v1988_v57 = vmul.f32 %v7246_v40, %v1964_v51  ;;  %2346 = vmatmul.mubr.bf16.gmra.mxu1 %v2091_v20  ;;  %5499 = vmatprep.mubr.bf16.mxu0 %v2091_v20  ;;  %v5811_v20 = vld [vmem:[%s8045_s9 + $0x64] ss:$12 sps:$4 sm:$0xff]   ;;  %v5812_v51 = vld [vmem:[%s8045_s9 + $0x48] ss:$12 sps:$4 sm:$0xff]  }
 0x2b5   : > { %2355 = vmatprep.mubr.bf16.mxu1 %v8093_v1  ;;  %v5461_v26 = vpop.f32.mrf.mxu1 }
 0x2b6   : > { %v2004_v30 = vadd.f32 %v1988_v57, %v1904_v63  ;;  %v5809_v63 = vld [vmem:[%s8045_s9 + $0x60] ss:$12 sps:$4 sm:$0xff]  }
 0x2b7   : > { %v1968_v62 = vpop.permute.xlu1 %1967  ;;  %v1638_v31 = vpop.f32.mrf.mxu1  ;;  %v5814_v57 = vld [vmem:[%s8045_s9 + $0x4c] ss:$12 sps:$4 sm:$0xff]  }
 0x2b8   : > { %v2027_v3 = vadd.f32 %v7259_v59, %v2004_v30  ;;  %v1989_v42 = vmul.f32 %v7246_v40, %v1968_v62  ;;  %v1716_v40 = vpop.permute.xlu0 %1715  ;;  %v5818_v30 = vld [vmem:[%s8045_s9 + $0x18] ss:$12 sps:$4 sm:$0xff]   ;;  %v5820_v62 = vld [vmem:[%s8045_s9 + $0x1c] ss:$12 sps:$4 sm:$0xff]  }
 0x2b9   : > { %v1777_v2 = vmul.f32 %v1716_v40, %v1618_v36  ;;  %v5464_v50 = vpop.f32.mrf.mxu1  ;;  %v5839_v36 = vld [vmem:[%s8045_s9 + $0x138] ss:$12 sps:$4 sm:$0xff]  }
 0x2ba   : > { %v2005_v19 = vadd.f32 %v1989_v42, %v1905_v35  ;;  %v2043_v11 = vmax.f32 %v2027_v3, 0.0  ;;  %v5815_v35 = vld [vmem:[%s8045_s9 + $0x30] ss:$12 sps:$4 sm:$0xff]   ;;  %v5821_v3 = vld [vmem:[%s8045_s9] ss:$12 sps:$4 sm:$0xff]  }
 0x2bb   : > { %v1648_v0 = vpop.f32.mrf.mxu1  ;;  %v5823_v42 = vld [vmem:[%s8045_s9 + $0x4] ss:$12 sps:$4 sm:$0xff]   ;;  %v5850_v40 = vld [vmem:[%s8045_s9 + $0x1cc] ss:$12 sps:$4 sm:$0xff]  }
 0x2bc   : > { %v2028_v22 = vadd.f32 %v7259_v59, %v2005_v19  ;;  %v1701_v10 = vpop.permute.xlu1 %1700  ;;  %v5802_v59 = vld [vmem:[%s8045_s9 + $0xac] ss:$12 sps:$4 sm:$0xff]   ;;  %v1726_v58 = vpop.permute.xlu0 %1725  ;;  %v5827_v19 = vld [vmem:[%s8045_s9 + $0x168] ss:$12 sps:$4 sm:$0xff]  }
 0x2bd   : > { %v1774_v24 = vmul.f32 %v5449_v15, %v1701_v10  ;;  %3435 = vmatprep.subr.bf16.mxu0 %v5802_v59  ;;  %v1779_v39 = vmul.f32 %v1726_v58, %v1628_v25  ;;  %v5808_v15 = vld [vmem:[%s8045_s9 + $0x7c] ss:$12 sps:$4 sm:$0xff]   ;;  %v5859_v25 = vld [vmem:[%s8045_s9 + $0xf4] ss:$12 sps:$4 sm:$0xff]  }
 0x2be   : > { %v2044_v13 = vmax.f32 %v2028_v22, 0.0  ;;  %v5832_v22 = vld [vmem:[%s8045_s9 + $0x214] ss:$12 sps:$4 sm:$0xff]   ;;  %v5833_v10 = vld [vmem:[%s8045_s9 + $0x150] ss:$12 sps:$4 sm:$0xff]  }
 0x2bf   : > { %v2045_v47 = vpack.c.bf16 %v1774_v24, %v1773_v38  ;;  %v5835_v24 = vld [vmem:[%s8045_s9 + $0x154] ss:$12 sps:$4 sm:$0xff]   ;;  %v5838_v38 = vld [vmem:[%s8045_s9 + $0x1fc] ss:$12 sps:$4 sm:$0xff]  }
 0x2c0   : > { %v1711_v45 = vpop.permute.xlu1 %1710  ;;  %v2092_v4 = vpack.c.bf16 %v2044_v13, %v2043_v11  ;;  %v1736_v53 = vpop.permute.xlu0 %1735  ;;  %v5830_v11 = vld [vmem:[%s8045_s9 + $0x210] ss:$12 sps:$4 sm:$0xff]   ;;  %v5836_v13 = vld [vmem:[%s8045_s9 + $0x1f8] ss:$12 sps:$4 sm:$0xff]   ;;  %v5851_v59 = vld [vmem:[%s8045_s9 + $0x108] ss:$12 sps:$4 sm:$0xff]  }
 0x2c1   : > { %v1776_v37 = vmul.f32 %v5452_v29, %v1711_v45  ;;  %v1781_v21 = vmul.f32 %v1736_v53, %v1638_v31  ;;  %v5817_v29 = vld [vmem:[%s8045_s9 + $0x34] ss:$12 sps:$4 sm:$0xff]   ;;  %v5844_v45 = vld [vmem:[%s8045_s9 + $0x1e4] ss:$12 sps:$4 sm:$0xff]   ;;  %v5865_v31 = vld [vmem:[%s8045_s9 + $0xdc] ss:$12 sps:$4 sm:$0xff]  }
 0x2c2   : > { %2356 = vmatmul.mubr.bf16.gmra.mxu1 %v2092_v4  ;;  %5500 = vmatmul.mubr.bf16.gmra.mxu0 %v2092_v4  ;;  %v5842_v4 = vld [vmem:[%s8045_s9 + $0x1e0] ss:$12 sps:$4 sm:$0xff]   ;;  %v5857_v58 = vld [vmem:[%s8045_s9 + $0xf0] ss:$12 sps:$4 sm:$0xff]   ;;  %v5860_v53 = vld [vmem:[%s8045_s9 + $0x198] ss:$12 sps:$4 sm:$0xff]  }
 0x2c3   : > { %5519 = vmatprep.mubr.bf16.mxu1 %v2045_v47  ;;  %2623 = vmatprep.mubr.bf16.mxu0 %v8093_v1  ;;  %v2046_v55 = vpack.c.bf16 %v1776_v37, %v1775_v17  ;;  %v5848_v37 = vld [vmem:[%s8045_s9 + $0x1c8] ss:$12 sps:$4 sm:$0xff]   ;;  %v5854_v17 = vld [vmem:[%s8045_s9 + $0x1b0] ss:$12 sps:$4 sm:$0xff]  }
 0x2c4   : > { %v1721_v23 = vpop.permute.xlu1 %1720  ;;  %v1746_v32 = vpop.permute.xlu0 %1745 }
 0x2c5   : > { %v1778_v6 = vmul.f32 %v5455_v8, %v1721_v23  ;;  %v1783_v28 = vmul.f32 %v1746_v32, %v1648_v0  ;;  %v5829_v8 = vld [vmem:[%s8045_s9 + $0x16c] ss:$12 sps:$4 sm:$0xff]  }
 0x2c6   : > { %v5853_v23 = vld [vmem:[%s8045_s9 + $0x10c] ss:$12 sps:$4 sm:$0xff]  }
 0x2c7   : > { %v2047_v52 = vpack.c.bf16 %v1778_v6, %v1777_v2  ;;  %v5856_v6 = vld [vmem:[%s8045_s9 + $0x1b4] ss:$12 sps:$4 sm:$0xff]  }
 0x2c8   : > { %v1731_v46 = vpop.permute.xlu1 %1730 }
 0x2c9   : > { %v1780_v12 = vmul.f32 %v5458_v5, %v1731_v46  ;;  %v5845_v5 = vld [vmem:[%s8045_s9 + $0x120] ss:$12 sps:$4 sm:$0xff]  }
 0x2ca   : > { %2624 = vmatmul.mubr.bf16.vlgmr.msra.gmra.mxu0 %v2045_v47  ;;  %5520 = vmatmul.mubr.bf16.vlgmr.msra.gmra.mxu1 %v2046_v55  ;;  %v5847_v47 = vld [vmem:[%s8045_s9 + $0x124] ss:$12 sps:$4 sm:$0xff]  }
 0x2cb   : > { %5523 = vmatprep.mubr.bf16.mxu1 %v2047_v52  ;;  %2633 = vmatprep.mubr.bf16.mxu0 %v8093_v1  ;;  %v2048_v34 = vpack.c.bf16 %v1780_v12, %v1779_v39  ;;  %v5863_v12 = vld [vmem:[%s8045_s9 + $0xd8] ss:$12 sps:$4 sm:$0xff]  }
 0x2cc   : > { %v1741_v9 = vpop.permute.xlu1 %1740  ;;  %3436 = vmatpush1.bf16.msra.mxu0 %v5800_v60  ;;  %3549 = vmatpush1.bf16.msra.mxu1 %v5824_v41  ;;  %v5862_v60 = vld [vmem:[%s8045_s9 + $0x19c] ss:$12 sps:$4 sm:$0xff]   ;;  %v5871_v39 = vld [vmem:[%s8045_s9 + $0xc4] ss:$12 sps:$4 sm:$0xff]  }
 0x2cd   : > { %v1782_v43 = vmul.f32 %v5461_v26, %v1741_v9  ;;  %3437 = vmatprep.subr.bf16.mxu0 %v5805_v56  ;;  %3550 = vmatprep.subr.bf16.mxu1 %v5832_v22  ;;  %v1756_v26 = vpop.permute.xlu0 %1755 }
 0x2cf   : > { %v2049_v27 = vpack.c.bf16 %v1782_v43, %v1781_v21  ;;  %v5866_v43 = vld [vmem:[%s8045_s9 + $0x180] ss:$12 sps:$4 sm:$0xff]  }
 0x2d0   : > { %3438 = vmatpush1.bf16.msra.mxu0 %v5803_v14  ;;  %v1751_v54 = vpop.permute.xlu1 %1750  ;;  %3551 = vmatpush1.bf16.msra.mxu1 %v5830_v11  ;;  %v5868_v14 = vld [vmem:[%s8045_s9 + $0x184] ss:$12 sps:$4 sm:$0xff]   ;;  %v5869_v21 = vld [vmem:[%s8045_s9 + $0xc0] ss:$12 sps:$4 sm:$0xff]  }
 0x2d1   : > { %v1784_v48 = vmul.f32 %v5464_v50, %v1751_v54  ;;  %3439 = vmatprep.subr.bf16.mxu0 %v5808_v15  ;;  %3552 = vmatprep.subr.bf16.mxu1 %v5838_v38 }
 0x2d2   : > { %2634 = vmatmul.mubr.bf16.gmra.mxu0 %v2046_v55  ;;  %5524 = vmatmul.mubr.bf16.gmra.mxu1 %v2048_v34 }
 0x2d3   : > { %5527 = vmatprep.mubr.bf16.mxu1 %v2049_v27  ;;  %2643 = vmatprep.mubr.bf16.mxu0 %v8093_v1  ;;  %v2050_v16 = vpack.c.bf16 %v1784_v48, %v1783_v28 }
 0x2d4   : > { %3440 = vmatpush1.bf16.msra.mxu0 %v5806_v49  ;;  %3553 = vmatpush1.bf16.msra.mxu1 %v5836_v13  ;;  %v1761_v55 = vpop.permute.xlu1 %1760 }
 0x2d5   : > { %3441 = vmatprep.subr.bf16.mxu0 %v5811_v20  ;;  %3554 = vmatprep.subr.bf16.mxu1 %v5844_v45 }
 0x2d8   : > { %3442 = vmatpush1.bf16.msra.mxu0 %v5809_v63  ;;  %3555 = vmatpush1.bf16.msra.mxu1 %v5842_v4 }
 0x2d9   : > { %3443 = vmatprep.subr.bf16.mxu0 %v5814_v57  ;;  %3556 = vmatprep.subr.bf16.mxu1 %v5850_v40 }
 0x2da   : > { %2644 = vmatmul.mubr.bf16.gmra.mxu0 %v2047_v52  ;;  %5528 = vmatmul.mubr.bf16.gmra.mxu1 %v2050_v16 }
 0x2db   : > { %2653 = vmatprep.mubr.bf16.mxu0 %v8093_v1 }
 0x2dc   : > { %3444 = vmatpush1.bf16.msra.mxu0 %v5812_v51  ;;  %3557 = vmatpush1.bf16.msra.mxu1 %v5848_v37  ;;  %v5872_v51 = vld [vmem:[%s8045_s9 + $0x170] ss:$12 sps:$4 sm:$0xff]  }
 0x2dd   : > { %3445 = vmatprep.subr.bf16.mxu0 %v5817_v29  ;;  %3558 = vmatprep.subr.bf16.mxu1 %v5856_v6  ;;  %v7488_v29 = vld [vmem:[%s8045_s9 + $0x230] ss:$12 sps:$4 sm:$0xff]  }
 0x2e0   : > { %3446 = vmatpush1.bf16.msra.mxu0 %v5815_v35  ;;  %3559 = vmatpush1.bf16.msra.mxu1 %v5854_v17 }
 0x2e1   : > { %3447 = vmatprep.subr.bf16.mxu0 %v5820_v62  ;;  %3560 = vmatprep.subr.bf16.mxu1 %v5862_v60 }
 0x2e2   : > { %2654 = vmatmul.mubr.bf16.gmra.mxu0 %v2048_v34  ;;  %v1766_v34 = vpop.permute.xlu0 %1765 }
 0x2e3   : > { %2663 = vmatprep.mubr.bf16.mxu0 %v8093_v1 }
 0x2e4   : > { %3448 = vmatpush1.bf16.msra.mxu0 %v5818_v30  ;;  %3561 = vmatpush1.bf16.msra.mxu1 %v5860_v53 }
 0x2e5   : > { %3449 = vmatprep.subr.bf16.mxu0 %v5823_v42  ;;  %3562 = vmatprep.subr.bf16.mxu1 %v5868_v14 }
 0x2e8   : > { %3450 = vmatpush1.bf16.msra.mxu0 %v5821_v3  ;;  %3563 = vmatpush1.bf16.msra.mxu1 %v5866_v43 }
 0x2e9   : > { %3451 = vmatprep.subr.bf16.mxu0 %v5829_v8  ;;  %5271 = vmatprep.subr.bf16.mxu1 %v5872_v51 }
 0x2ea   : > { %2664 = vmatmul.mubr.bf16.gmra.mxu0 %v2049_v27  ;;  %v1771_v27 = vpop.permute.xlu1 %1770 }
 0x2eb   : > { %2673 = vmatprep.mubr.bf16.mxu0 %v8093_v1 }
 0x2ec   : > { %3452 = vmatpush2.bf16.msra.mxu0 %v5827_v19 }
 0x2ed   : > { %3453 = vmatprep.subr.bf16.mxu0 %v5835_v24 }
 0x2f0   : > { %3454 = vmatpush2.bf16.msra.mxu0 %v5833_v10 }
 0x2f1   : > { %3455 = vmatprep.subr.bf16.mxu0 %v5841_v61 }
 0x2f2   : > { %2674 = vmatmul.mubr.bf16.gmra.mxu0 %v2050_v16 }
 0x2f3   : > { %2683 = vmatprep.mubr.bf16.mxu0 %v8093_v1 }
 0x2f4   : > { %3456 = vmatpush2.bf16.msra.mxu0 %v5839_v36 }
 0x2f5   : > { %3457 = vmatprep.subr.bf16.mxu0 %v5847_v47 }
 0x2f8   : > { %3458 = vmatpush2.bf16.msra.mxu0 %v5845_v5 }
 0x2f9   : > { %3459 = vmatprep.subr.bf16.mxu0 %v5853_v23 }
 0x2fc   : > { %3460 = vmatpush2.bf16.msra.mxu0 %v5851_v59 }
 0x2fd   : > { %3461 = vmatprep.subr.bf16.mxu0 %v5859_v25 }
 0x300   : > { %3462 = vmatpush2.bf16.msra.mxu0 %v5857_v58 }
 0x301   : > { %3463 = vmatprep.subr.bf16.mxu0 %v5865_v31 }
 0x304   : > { %3464 = vmatpush2.bf16.msra.mxu0 %v5863_v12 }
 0x305   : > { %3465 = vmatprep.subr.bf16.mxu0 %v5871_v39 }
 0x308   : > { %3466 = vmatpush2.bf16.msra.mxu0 %v5869_v21  ;;  %v8077_v21 = vsub.s32 2, %v7221_v18 }
 0x309   : > { %5535 = vmatprep.subr.bf16.mxu0 %v7488_v29 }
 0x30e   : > { %v5467_v2 = vpop.f32.mrf.mxu1 }
 0x30f   : > { %v1786_v52 = vmul.f32 %v5467_v2, %v1761_v55 }
 0x310   : > { %v1658_v46 = vpop.f32.mrf.mxu1 }
 0x311   : > { %v1785_v56 = vmul.f32 %v1756_v26, %v1658_v46 }
 0x313   : > { %v2051_v9 = vpack.c.bf16 %v1786_v52, %v1785_v56 }
 0x315   : > { %2684 = vmatmul.mubr.bf16.gmra.mxu0 %v2051_v9  ;;  %5531 = vmatprep.mubr.bf16.mxu1 %v2051_v9 }
 0x316   : > { %2693 = vmatprep.mubr.bf16.mxu0 %v8093_v1 }
 0x319   : > { %v5470_v50 = vpop.f32.mrf.mxu1 }
 0x31a   : > { %v1788_v49 = vmul.f32 %v5470_v50, %v1771_v27  ;;  %v2801_v50 = vld [vmem:[%s8044_s8] sm:$0x7] }
 0x31b   : > { %v1668_v54 = vpop.f32.mrf.mxu1 }
 0x31c   : > { %v1787_v15 = vmul.f32 %v1766_v34, %v1668_v54 }
 0x31e   : > { %v2052_v32 = vpack.c.bf16 %v1788_v49, %v1787_v15  ;;  %v7568_v15 = vrot.slane %v2801_v50, %v7233_v7 }
 0x320   : > { %2694 = vmatmul.mubr.bf16.gmra.mxu0 %v2052_v32  ;;  %5532 = vmatmul.mubr.bf16.gmra.mxu1 %v2052_v32 }
 0x321   : > { %3580 = vmatprep.mubr.bf16.mxu1 %v8093_v1 }
 0x32c   : > { %v7468_v0 = vpop.f32.mrf.mxu1 }
 0x32e   : > { %v2289_v48 = vpop.f32.mrf.mxu1 }
 0x330   : > { %v7470_v28 = vpop.f32.mrf.mxu1 }
 0x332   : > { %v7472_v63 = vpop.f32.mrf.mxu1 }
 0x33a   : > { %v7474_v20 = vpop.f32.mrf.mxu1  ;;  %v5489_v19 = vpop.f32.mrf.mxu0 }
 0x33c   : > { %v7476_v16 = vpop.f32.mrf.mxu1  ;;  %v2400_v22 = vpop.f32.mrf.mxu0 }
 0x33e   : > { %v7481_v57 = vpop.f32.mrf.mxu1  ;;  %v5490_v24 = vpop.f32.mrf.mxu0 }
 0x340   : > { %v7483_v35 = vpop.f32.mrf.mxu1  ;;  %v2403_v38 = vpop.f32.mrf.mxu0 }
 0x344   : > { %v7490_v30 = vpop.f32.mrf.mxu1 }
 0x346   : > { %v7493_v62 = vpop.f32.mrf.mxu1 }
 0x348   : > { %v7495_v3 = vpop.f32.mrf.mxu1 }
 0x34a   : > { %v7497_v42 = vpop.f32.mrf.mxu1 }
 0x352   : > { %v7499_v41 = vpop.f32.mrf.mxu1  ;;  %v7513_v36 = vpop.f32.mrf.mxu0 }
 0x354   : > { %v7501_v33 = vpop.f32.mrf.mxu1  ;;  %v7517_v4 = vpop.f32.mrf.mxu0 }
 0x356   : > { %v7503_v8 = vpop.f32.mrf.mxu1  ;;  %v7521_v5 = vpop.f32.mrf.mxu0 }
 0x358   : > { %v7505_v11 = vpop.f32.mrf.mxu1  ;;  %v7527_v23 = vpop.f32.mrf.mxu0 }
 0x35c   : > { %v7507_v10 = vpop.f32.mrf.mxu1 }
 0x35e   : > { %v7509_v13 = vpop.f32.mrf.mxu1 }
 0x360   : > { %v7511_v61 = vpop.f32.mrf.mxu1 }
 0x362   : > { %v7515_v45 = vpop.f32.mrf.mxu1 }
 0x36a   : > { %v7519_v47 = vpop.f32.mrf.mxu1  ;;  %v7531_v6 = vpop.f32.mrf.mxu0 }
 0x36c   : > { %v7523_v40 = vpop.f32.mrf.mxu1  ;;  %v7537_v2 = vpop.f32.mrf.mxu0 }
 0x36e   : > { %v7525_v37 = vpop.f32.mrf.mxu1  ;;  %v7541_v26 = vpop.f32.mrf.mxu0 }
 0x370   : > { %v7529_v59 = vpop.f32.mrf.mxu1  ;;  %v7545_v46 = vpop.f32.mrf.mxu0 }
 0x374   : > { %v7533_v17 = vpop.f32.mrf.mxu1 }
 0x376   : > { %v7535_v25 = vpop.f32.mrf.mxu1 }
 0x378   : > { %v7539_v58 = vpop.f32.mrf.mxu1 }
 0x37a   : > { %v7543_v55 = vpop.f32.mrf.mxu1 }
 0x37b   : > { %8111 = vst [vmem:[#allocation13_spill] sm:$0xff] %v7543_v55 }
 0x382   : > { %v7547_v60 = vpop.f32.mrf.mxu1  ;;  %v7549_v52 = vpop.f32.mrf.mxu0 }
 0x383   : > { %8112 = vst [vmem:[#allocation16_spill] sm:$0xff] %v7547_v60  ;;  %8113 = vst [vmem:[#allocation18_spill] sm:$0xff] %v7549_v52 }
 0x384   : > { %v7551_v56 = vpop.f32.mrf.mxu1  ;;  %v7553_v53 = vpop.f32.mrf.mxu0 }
 0x385   : > { %8114 = vst [vmem:[#allocation17_spill] sm:$0xff] %v7551_v56  ;;  %8115 = vst [vmem:[#allocation19_spill] sm:$0xff] %v7553_v53 }
 0x386   : > { %v7555_v31 = vpop.f32.mrf.mxu1  ;;  %v7557_v12 = vpop.f32.mrf.mxu0 }
 0x387   : > { %8116 = vst [vmem:[#allocation20_spill] sm:$0xff] %v7555_v31  ;;  %8117 = vst [vmem:[#allocation21_spill] sm:$0xff] %v7557_v12  ;;  %v7572_v12 = vrot.slane %v2801_v50, %v7236_v44 }
 0x388   : > { %v7559_v9 = vpop.f32.mrf.mxu1  ;;  %v7561_v14 = vpop.f32.mrf.mxu0 }
 0x389   : > { %8118 = vst [vmem:[#allocation22_spill] sm:$0xff] %v7559_v9  ;;  %8119 = vst [vmem:[#allocation23_spill] sm:$0xff] %v7561_v14  ;;  %v7576_v14 = vrot.slane %v2801_v50, %v8077_v21 }
 0x38a   : > { %v2625_v43 = vpop.f32.mrf.mxu0  ;;  %v5521_v39 = vpop.f32.mrf.mxu1 }
 0x38b   : > { %v2626_v52 = vadd.f32 %v2625_v43, %v7468_v0 }
 0x38c   : > { %v2627_v34 = vpop.f32.mrf.mxu0  ;;  %v2738_v27 = vpop.f32.mrf.mxu1 }
 0x38d   : > { %v2739_v54 = vadd.f32 %v2738_v27, %v2400_v22  ;;  %v2628_v49 = vadd.f32 %v2627_v34, %v2289_v48  ;;  %v2818_v18 = vadd.f32 %v7572_v12, %v2626_v52 }
 0x38e   : > { %v2629_v32 = vpop.f32.mrf.mxu0  ;;  %v5522_v51 = vpop.f32.mrf.mxu1 }
 0x38f   : > { %v2630_v9 = vadd.f32 %v2629_v32, %v7470_v28  ;;  %v2820_v48 = vadd.f32 %v7576_v14, %v2739_v54  ;;  %v2819_v27 = vadd.f32 %v7568_v15, %v2628_v49  ;;  %v2750_v50 = vadd.f32 %v5522_v51, %v5490_v24 }
 0x390   : > { %v2631_v31 = vpop.f32.mrf.mxu0  ;;  %v2741_v60 = vpop.f32.mrf.mxu1  ;;  %v2747_v32 = vadd.f32 %v5521_v39, %v5489_v19  ;;  %v2866_v24 = vmax.f32 %v2818_v18, 0.0  ;;  %v5873_v39 = vld [vmem:[%s8045_s9 + $0xb0] ss:$12 sps:$4 sm:$0xff]  }
 0x391   : > { %v2632_v22 = vadd.f32 %v2631_v31, %v7472_v63  ;;  %v2742_v34 = vadd.f32 %v2741_v60, %v2403_v38  ;;  %v2821_v0 = vadd.f32 %v7572_v12, %v2630_v9  ;;  %v2868_v53 = vmax.f32 %v2820_v48, 0.0 }
 0x392   : > { %v2635_v43 = vpop.f32.mrf.mxu0  ;;  %v7583_v44 = vpop.f32.mrf.mxu1  ;;  %v2867_v31 = vmax.f32 %v2819_v27, 0.0  ;;  %v2829_v52 = vadd.f32 %v7576_v14, %v2750_v50  ;;  %v2826_v18 = vadd.f32 %v7576_v14, %v2747_v32  ;;  %v5876_v50 = vld [vmem:[%s8045_s9 + $0x98] ss:$12 sps:$4 sm:$0xff]  }
 0x393   : > { %v2822_v21 = vadd.f32 %v7568_v15, %v2632_v22  ;;  %v2823_v28 = vadd.f32 %v7576_v14, %v2742_v34  ;;  %v2869_v63 = vmax.f32 %v2821_v0, 0.0  ;;  %v2636_v9 = vadd.f32 %v2635_v43, %v7474_v20 }
 0x394   : > { %v2637_v7 = vpop.f32.mrf.mxu0  ;;  %v2754_v54 = vpop.f32.mrf.mxu1  ;;  %v2877_v0 = vmax.f32 %v2829_v52, 0.0 }
 0x395   : > { %v2870_v38 = vmax.f32 %v2822_v21, 0.0  ;;  %v2871_v60 = vmax.f32 %v2823_v28, 0.0  ;;  %v2638_v49 = vadd.f32 %v2637_v7, %v7476_v16  ;;  %v5875_v7 = vld [vmem:[%s8045_s9 + $0x158] ss:$12 sps:$4 sm:$0xff]   ;;  %v7605_v20 = vpack.c.bf16 %v2869_v63, %v2866_v24 }
 0x396   : > { %v2639_v56 = vpop.f32.mrf.mxu0  ;;  %v7590_v55 = vpop.f32.mrf.mxu1  ;;  %v2755_v28 = vadd.f32 %v2754_v54, %v7517_v4  ;;  %v5880_v4 = vld [vmem:[%s8045_s9 + $0x200] ss:$12 sps:$4 sm:$0xff]  }
 0x397   : > { %v7593_v51 = vpack.c.bf16 %v2871_v60, %v2868_v53  ;;  %v2640_v19 = vadd.f32 %v2639_v56, %v7481_v57  ;;  %v7599_v22 = vpack.c.bf16 %v2870_v38, %v2867_v31  ;;  %v5877_v56 = vld [vmem:[%s8045_s9 + $0x218] ss:$12 sps:$4 sm:$0xff]   ;;  %v2824_v53 = vadd.f32 %v7572_v12, %v2636_v9 }
 0x398   : > { %v2641_v21 = vpop.f32.mrf.mxu0  ;;  %v2757_v48 = vpop.f32.mrf.mxu1  ;;  %v2825_v34 = vadd.f32 %v7568_v15, %v2638_v49  ;;  %v2874_v60 = vmax.f32 %v2826_v18, 0.0 }
 0x399   : > { %v2827_v16 = vadd.f32 %v7572_v12, %v2640_v19  ;;  %v2642_v57 = vadd.f32 %v2641_v21, %v7483_v35  ;;  %3581 = vmatmul.mubr.bf16.vlgmr.msra.gmra.mxu1 %v7593_v51  ;;  %3467 = vmatprep.mubr.bf16.mxu0 %v7599_v22  ;;  %v2758_v35 = vadd.f32 %v2757_v48, %v7527_v23  ;;  %v5878_v23 = vld [vmem:[%s8045_s9 + $0x140] ss:$12 sps:$4 sm:$0xff]   ;;  %v2872_v54 = vmax.f32 %v2824_v53, 0.0 }
 0x39a   : > { %v2645_v27 = vpop.f32.mrf.mxu0  ;;  %3590 = vmatprep.mubr.bf16.mxu1 %v8093_v1  ;;  %3468 = vmatmul.mubr.bf16.vlgmr.msra.gmra.mxu0 %v7605_v20  ;;  %v7624_v63 = vpop.f32.mrf.mxu1  ;;  %v2873_v49 = vmax.f32 %v2825_v34, 0.0  ;;  %v2832_v21 = vadd.f32 %v7576_v14, %v2755_v28  ;;  %v5883_v34 = vld [vmem:[%s8045_s9 + $0x1e8] ss:$12 sps:$4 sm:$0xff]  }
 0x39b   : > { %v2828_v43 = vadd.f32 %v7568_v15, %v2642_v57  ;;  %5272 = vmatpush3.bf16.msra.mxu1 %v5873_v39  ;;  %v2875_v32 = vmax.f32 %v2827_v16, 0.0  ;;  %5536 = vmatpush3.bf16.msra.mxu0 %v7488_v29  ;;  %v2646_v24 = vadd.f32 %v2645_v27, %v7490_v30  ;;  %v2835_v29 = vadd.f32 %v7576_v14, %v2758_v35  ;;  %v5882_v35 = vld [vmem:[%s8045_s9 + $0x68] ss:$12 sps:$4 sm:$0xff]  }
 0x39c   : > { %v2647_v38 = vpop.f32.mrf.mxu0  ;;  %5273 = vmatprep.subr.bf16.mxu1 %v5875_v7  ;;  %5537 = vmatprep.subr.bf16.mxu0 %v5877_v56  ;;  %v7637_v39 = vpack.c.bf16 %v2877_v0, %v2874_v60  ;;  %v7643_v48 = vpop.f32.mrf.mxu1  ;;  %v2766_v0 = vadd.f32 %v7590_v55, %v7521_v5  ;;  %v5884_v5 = vld [vmem:[%s8045_s9 + $0x110] ss:$12 sps:$4 sm:$0xff]   ;;  %v2880_v55 = vmax.f32 %v2832_v21, 0.0 }
 0x39d   : > { %v2876_v31 = vmax.f32 %v2828_v43, 0.0  ;;  %v2648_v9 = vadd.f32 %v2647_v38, %v7493_v62  ;;  %v5879_v62 = vld [vmem:[%s8045_s9 + $0x80] ss:$12 sps:$4 sm:$0xff]   ;;  %v7647_v30 = vpack.c.bf16 %v2875_v32, %v2872_v54  ;;  %v2883_v43 = vmax.f32 %v2835_v29, 0.0 }
 0x39e   : > { %v2649_v52 = vpop.f32.mrf.mxu0  ;;  %v7671_v32 = vpop.f32.mrf.mxu1 }
 0x39f   : > { %v2650_v19 = vadd.f32 %v2649_v52, %v7495_v3  ;;  %5274 = vmatpush3.bf16.msra.mxu1 %v5876_v50  ;;  %v7645_v18 = vpack.c.bf16 %v2876_v31, %v2873_v49  ;;  %5538 = vmatpush3.bf16.msra.mxu0 %v5877_v56  ;;  %v5881_v3 = vld [vmem:[%s8045_s9 + $0x128] ss:$12 sps:$4 sm:$0xff]   ;;  %v2831_v16 = vadd.f32 %v7568_v15, %v2648_v9 }
 0x3a0   : > { %v2651_v7 = vpop.f32.mrf.mxu0  ;;  %5275 = vmatprep.subr.bf16.mxu1 %v5878_v23  ;;  %5539 = vmatprep.subr.bf16.mxu0 %v5880_v4  ;;  %v2830_v56 = vadd.f32 %v7572_v12, %v2646_v24  ;;  %v2763_v50 = vadd.f32 %v7583_v44, %v7513_v36  ;;  %v5886_v36 = vld [vmem:[%s8045_s9 + $0x1d0] ss:$12 sps:$4 sm:$0xff]   ;;  %v7685_v52 = vpack.c.bf16 %v2883_v43, %v2880_v55  ;;  %v2773_v29 = vpop.f32.mrf.mxu1 }
 0x3a1   : > { %v2833_v57 = vadd.f32 %v7572_v12, %v2650_v19  ;;  %v2652_v53 = vadd.f32 %v2651_v7, %v7497_v42  ;;  %3591 = vmatmul.mubr.bf16.gmra.mxu1 %v7637_v39  ;;  %3477 = vmatprep.mubr.bf16.mxu0 %v7645_v18  ;;  %v2879_v23 = vmax.f32 %v2831_v16, 0.0  ;;  %v5889_v16 = vld [vmem:[%s8045_s9 + $0x1b8] ss:$12 sps:$4 sm:$0xff]  }
 0x3a2   : > { %v2655_v27 = vpop.f32.mrf.mxu0  ;;  %3600 = vmatprep.mubr.bf16.mxu1 %v8093_v1  ;;  %3478 = vmatmul.mubr.bf16.gmra.mxu0 %v7647_v30  ;;  %v2878_v9 = vmax.f32 %v2830_v56, 0.0  ;;  %v2774_v56 = vadd.f32 %v2773_v29, %v7545_v46  ;;  %v5890_v46 = vld [vmem:[%s8045_s9 + $0xe0] ss:$12 sps:$4 sm:$0xff]  }
 0x3a3   : > { %v2834_v42 = vadd.f32 %v7568_v15, %v2652_v53  ;;  %5276 = vmatpush3.bf16.msra.mxu1 %v5879_v62  ;;  %v2881_v28 = vmax.f32 %v2833_v57, 0.0  ;;  %5540 = vmatpush3.bf16.msra.mxu0 %v5880_v4  ;;  %v2656_v54 = vadd.f32 %v2655_v27, %v7499_v41  ;;  %v2841_v4 = vadd.f32 %v7576_v14, %v2766_v0 }
 0x3a4   : > { %v2657_v38 = vpop.f32.mrf.mxu0  ;;  %5277 = vmatprep.subr.bf16.mxu1 %v5881_v3  ;;  %5541 = vmatprep.subr.bf16.mxu0 %v5883_v34  ;;  %v2838_v41 = vadd.f32 %v7576_v14, %v2763_v50  ;;  %v2771_v0 = vadd.f32 %v7643_v48, %v7537_v2  ;;  %v5892_v2 = vld [vmem:[%s8045_s9 + $0x1a0] ss:$12 sps:$4 sm:$0xff]   ;;  %v2847_v48 = vadd.f32 %v7576_v14, %v2774_v56 }
 0x3a5   : > { %v2882_v60 = vmax.f32 %v2834_v42, 0.0  ;;  %v2658_v31 = vadd.f32 %v2657_v38, %v7501_v33  ;;  %v5885_v33 = vld [vmem:[%s8045_s9 + $0x50] ss:$12 sps:$4 sm:$0xff]   ;;  %v7691_v62 = vpack.c.bf16 %v2881_v28, %v2878_v9  ;;  %v2836_v57 = vadd.f32 %v7572_v12, %v2656_v54 }
 0x3a6   : > { %v2659_v44 = vpop.f32.mrf.mxu0 }
 0x3a7   : > { %v2660_v49 = vadd.f32 %v2659_v44, %v7503_v8  ;;  %v7683_v24 = vpack.c.bf16 %v2882_v60, %v2879_v23  ;;  %5278 = vmatpush3.bf16.msra.mxu1 %v5882_v35  ;;  %5542 = vmatpush3.bf16.msra.mxu0 %v5883_v34  ;;  %v5887_v8 = vld [vmem:[%s8045_s9 + $0xf8] ss:$12 sps:$4 sm:$0xff]   ;;  %v2837_v21 = vadd.f32 %v7568_v15, %v2658_v31  ;;  %v2889_v34 = vmax.f32 %v2841_v4, 0.0 }
 0x3a8   : > { %v2661_v19 = vpop.f32.mrf.mxu0  ;;  %5279 = vmatprep.subr.bf16.mxu1 %v5884_v5  ;;  %5543 = vmatprep.subr.bf16.mxu0 %v5886_v36  ;;  %v2886_v35 = vmax.f32 %v2838_v41, 0.0  ;;  %v2884_v5 = vmax.f32 %v2836_v57, 0.0  ;;  %v2782_v41 = vadd.f32 %v7671_v32, %v7541_v26 }
 0x3a9   : > { %v2839_v7 = vadd.f32 %v7572_v12, %v2660_v49  ;;  %v2662_v3 = vadd.f32 %v2661_v19, %v7505_v11  ;;  %3487 = vmatprep.mubr.bf16.mxu0 %v7683_v24  ;;  %3601 = vmatmul.mubr.bf16.gmra.mxu1 %v7685_v52  ;;  %v5888_v11 = vld [vmem:[%s8045_s9 + $0x38] ss:$12 sps:$4 sm:$0xff]   ;;  %v2885_v50 = vmax.f32 %v2837_v21, 0.0  ;;  %v5895_v21 = vld [vmem:[%s8045_s9 + $0x8] ss:$12 sps:$4 sm:$0xff]  }
 0x3aa   : > { %v2665_v53 = vpop.f32.mrf.mxu0  ;;  %3610 = vmatprep.mubr.bf16.mxu1 %v8093_v1  ;;  %3488 = vmatmul.mubr.bf16.gmra.mxu0 %v7691_v62  ;;  %v7726_v9 = vpack.c.bf16 %v2889_v34, %v2886_v35  ;;  %v2853_v56 = vadd.f32 %v7576_v14, %v2782_v41 }
 0x3ab   : > { %v2840_v27 = vadd.f32 %v7568_v15, %v2662_v3  ;;  %5280 = vmatpush3.bf16.msra.mxu1 %v5885_v33  ;;  %v2887_v43 = vmax.f32 %v2839_v7, 0.0  ;;  %5544 = vmatpush3.bf16.msra.mxu0 %v5886_v36  ;;  %v2666_v55 = vadd.f32 %v2665_v53, %v7507_v10  ;;  %v2844_v10 = vadd.f32 %v7576_v14, %v2771_v0  ;;  %v5893_v33 = vld [vmem:[%s8045_s9 + $0x188] ss:$12 sps:$4 sm:$0xff]  }
 0x3ac   : > { %v2667_v42 = vpop.f32.mrf.mxu0  ;;  %5281 = vmatprep.subr.bf16.mxu1 %v5887_v8  ;;  %5545 = vmatprep.subr.bf16.mxu0 %v5889_v16  ;;  %v2895_v8 = vmax.f32 %v2847_v48, 0.0  ;;  %v2779_v7 = vadd.f32 %v7624_v63, %v7531_v6  ;;  %v5898_v3 = vld [vmem:[#allocation6 + $0x74] ss:$8 sps:$4 sm:$0xff]  }
 0x3ad   : > { %v2888_v28 = vmax.f32 %v2840_v27, 0.0  ;;  %v2668_v38 = vadd.f32 %v2667_v42, %v7509_v13  ;;  %v5891_v13 = vld [vmem:[%s8045_s9 + $0x20] ss:$12 sps:$4 sm:$0xff]   ;;  %v7732_v44 = vpack.c.bf16 %v2887_v43, %v2884_v5  ;;  %v2842_v29 = vadd.f32 %v7572_v12, %v2666_v55 }
 0x3ae   : > { %v2669_v23 = vpop.f32.mrf.mxu0  ;;  %v2850_v42 = vadd.f32 %v7576_v14, %v2779_v7 }
 0x3af   : > { %v2670_v60 = vadd.f32 %v2669_v23, %v7511_v61  ;;  %v7724_v31 = vpack.c.bf16 %v2888_v28, %v2885_v50  ;;  %5282 = vmatpush3.bf16.msra.mxu1 %v5888_v11  ;;  %5546 = vmatpush3.bf16.msra.mxu0 %v5889_v16  ;;  %v5894_v61 = vld [vmem:[%s8045_s9 + $0xc8] ss:$12 sps:$4 sm:$0xff]   ;;  %v2843_v36 = vadd.f32 %v7568_v15, %v2668_v38  ;;  %v2892_v16 = vmax.f32 %v2844_v10, 0.0 }
 0x3b0   : > { %v2671_v54 = vpop.f32.mrf.mxu0  ;;  %5283 = vmatprep.subr.bf16.mxu1 %v5890_v46  ;;  %5547 = vmatprep.subr.bf16.mxu0 %v5892_v2  ;;  %v2890_v27 = vmax.f32 %v2842_v29, 0.0  ;;  %v2898_v5 = vmax.f32 %v2850_v42, 0.0 }
 0x3b1   : > { %v2845_v4 = vadd.f32 %v7572_v12, %v2670_v60  ;;  %v2672_v49 = vadd.f32 %v2671_v54, %v7515_v45  ;;  %3497 = vmatprep.mubr.bf16.mxu0 %v7724_v31  ;;  %3611 = vmatmul.mubr.bf16.gmra.mxu1 %v7726_v9  ;;  %v2891_v57 = vmax.f32 %v2843_v36, 0.0  ;;  %v7762_v63 = vpack.c.bf16 %v2895_v8, %v2892_v16 }
 0x3b2   : > { %v2675_v19 = vpop.f32.mrf.mxu0  ;;  %3620 = vmatprep.mubr.bf16.mxu1 %v8093_v1  ;;  %3498 = vmatmul.mubr.bf16.gmra.mxu0 %v7732_v44 }
 0x3b3   : > { %v2846_v45 = vadd.f32 %v7568_v15, %v2672_v49  ;;  %5284 = vmatpush3.bf16.msra.mxu1 %v5891_v13  ;;  %v2893_v26 = vmax.f32 %v2845_v4, 0.0  ;;  %5548 = vmatpush3.bf16.msra.mxu0 %v5892_v2  ;;  %v2676_v0 = vadd.f32 %v2675_v19, %v7519_v47  ;;  %v8120_v19 = vld [vmem:[#allocation13_spill] sm:$0xff] }
 0x3b4   : > { %v2677_v32 = vpop.f32.mrf.mxu0  ;;  %5285 = vmatprep.subr.bf16.mxu1 %v5894_v61  ;;  %5549 = vmatprep.subr.bf16.mxu0 %v5893_v33 }
 0x3b5   : > { %v2894_v53 = vmax.f32 %v2846_v45, 0.0  ;;  %v2678_v34 = vadd.f32 %v2677_v32, %v7523_v40  ;;  %v7765_v35 = vpack.c.bf16 %v2893_v26, %v2890_v27  ;;  %v2848_v28 = vadd.f32 %v7572_v12, %v2676_v0  ;;  %v8123_v0 = vld [vmem:[#allocation16_spill] sm:$0xff] }
 0x3b6   : > { %v2679_v11 = vpop.f32.mrf.mxu0 }
 0x3b7   : > { %v2680_v43 = vadd.f32 %v2679_v11, %v7525_v37  ;;  %v7760_v6 = vpack.c.bf16 %v2894_v53, %v2891_v57  ;;  %5286 = vmatpush3.bf16.msra.mxu1 %v5895_v21  ;;  %5550 = vmatpush3.bf16.msra.mxu0 %v5893_v33  ;;  %v2849_v40 = vadd.f32 %v7568_v15, %v2678_v34  ;;  %v2901_v37 = vmax.f32 %v2853_v56, 0.0  ;;  %v8121_v53 = vld [vmem:[#allocation17_spill] sm:$0xff]  ;;  %v8122_v56 = vld [vmem:[#allocation19_spill] sm:$0xff] }
 0x3b8   : > { %v2681_v46 = vpop.f32.mrf.mxu0  ;;  %4227 = vmatprep.subr.bf16.mxu1 %v5898_v3  ;;  %v2896_v48 = vmax.f32 %v2848_v28, 0.0 }
 0x3b9   : > { %v2851_v50 = vadd.f32 %v7572_v12, %v2680_v43  ;;  %v2682_v47 = vadd.f32 %v2681_v46, %v7529_v59  ;;  %3507 = vmatprep.mubr.bf16.mxu0 %v7760_v6  ;;  %3621 = vmatmul.mubr.bf16.gmra.mxu1 %v7762_v63  ;;  %v2897_v55 = vmax.f32 %v2849_v40, 0.0  ;;  %v7778_v59 = vpack.c.bf16 %v2901_v37, %v2898_v5  ;;  %v8124_v40 = vld [vmem:[#allocation20_spill] sm:$0xff]  ;;  %v8125_v5 = vld [vmem:[#allocation22_spill] sm:$0xff] }
 0x3ba   : > { %3630 = vmatprep.mubr.bf16.mxu1 %v8093_v1  ;;  %3508 = vmatmul.mubr.bf16.gmra.mxu0 %v7765_v35 }
 0x3bb   : > { %v2852_v38 = vadd.f32 %v7568_v15, %v2682_v47  ;;  %v2899_v23 = vmax.f32 %v2851_v50, 0.0 }
 0x3bd   : > { %v2900_v2 = vmax.f32 %v2852_v38, 0.0  ;;  %v7782_v13 = vpack.c.bf16 %v2899_v23, %v2896_v48  ;;  %v8126_v23 = vld [vmem:[#allocation23_spill] sm:$0xff] }
 0x3bf   : > { %v7776_v60 = vpack.c.bf16 %v2900_v2, %v2897_v55 }
 0x3c1   : > { %3517 = vmatprep.mubr.bf16.mxu0 %v7776_v60  ;;  %3631 = vmatmul.mubr.bf16.gmra.mxu1 %v7778_v59 }
 0x3c2   : > { %3640 = vmatprep.mubr.bf16.mxu1 %v8093_v1  ;;  %3518 = vmatmul.mubr.bf16.gmra.mxu0 %v7782_v13 }
 0x3d5   : > { %v2685_v10 = vpop.f32.mrf.mxu0 }
 0x3d6   : > { %v2686_v36 = vadd.f32 %v2685_v10, %v7533_v17 }
 0x3d7   : > { %v2687_v54 = vpop.f32.mrf.mxu0 }
 0x3d8   : > { %v2688_v61 = vadd.f32 %v2687_v54, %v7535_v25  ;;  %v2854_v45 = vadd.f32 %v7572_v12, %v2686_v36  ;;  %v8127_v54 = vld [vmem:[#allocation21_spill] sm:$0xff] }
 0x3d9   : > { %v2689_v4 = vpop.f32.mrf.mxu0 }
 0x3da   : > { %v2690_v49 = vadd.f32 %v2689_v4, %v7539_v58  ;;  %v2855_v41 = vadd.f32 %v7568_v15, %v2688_v61  ;;  %v2902_v17 = vmax.f32 %v2854_v45, 0.0 }
 0x3db   : > { %v2691_v33 = vpop.f32.mrf.mxu0 }
 0x3dc   : > { %v2857_v29 = vadd.f32 %v7572_v12, %v2690_v49  ;;  %v2692_v8 = vadd.f32 %v2691_v33, %v8120_v19  ;;  %v2903_v26 = vmax.f32 %v2855_v41, 0.0  ;;  %v8128_v49 = vld [vmem:[#allocation18_spill] sm:$0xff] }
 0x3de   : > { %v2858_v21 = vadd.f32 %v7568_v15, %v2692_v8  ;;  %v2905_v7 = vmax.f32 %v2857_v29, 0.0 }
 0x3e0   : > { %v2906_v32 = vmax.f32 %v2858_v21, 0.0  ;;  %v2695_v25 = vpop.f32.mrf.mxu0  ;;  %v5533_v3 = vpop.f32.mrf.mxu1  ;;  %v7798_v11 = vpack.c.bf16 %v2905_v7, %v2902_v17 }
 0x3e1   : > { %v2696_v43 = vadd.f32 %v2695_v25, %v8123_v0  ;;  %v2795_v33 = vadd.f32 %v5533_v3, %v8128_v49  ;;  %v5929_v0 = vld [vmem:[#allocation6 + $0xc0] ss:$8 sps:$4 sm:$0xff]  }
 0x3e2   : > { %v2697_v16 = vpop.f32.mrf.mxu0  ;;  %v2786_v57 = vpop.f32.mrf.mxu1  ;;  %v7794_v58 = vpack.c.bf16 %v2906_v32, %v2903_v26  ;;  %v7849_v49 = vld [vmem:[%s8046_s10] sm:$0x7] }
 0x3e3   : > { %v2698_v34 = vadd.f32 %v2697_v16, %v8121_v53  ;;  %v2787_v27 = vadd.f32 %v2786_v57, %v8122_v56  ;;  %v2860_v48 = vadd.f32 %v7572_v12, %v2696_v43  ;;  %v2862_v25 = vadd.f32 %v7576_v14, %v2795_v33  ;;  %v5901_v16 = vld [vmem:[#allocation6 + $0x64] ss:$8 sps:$4 sm:$0xff]   ;;  %v5904_v57 = vld [vmem:[#allocation6 + $0x54] ss:$8 sps:$4 sm:$0xff]   ;;  %v5917_v53 = vld [vmem:[#allocation6] ss:$8 sps:$4 sm:$0xff]  }
 0x3e4   : > { %v2699_v42 = vpop.f32.mrf.mxu0  ;;  %v5534_v46 = vpop.f32.mrf.mxu1  ;;  %3527 = vmatprep.mubr.bf16.mxu0 %v7794_v58  ;;  %v5923_v56 = vld [vmem:[#allocation6 + $0xe0] ss:$8 sps:$4 sm:$0xff]   ;;  %v5934_v43 = vld [vmem:[#allocation6 + $0xb4] ss:$8 sps:$4 sm:$0xff]  }
 0x3e5   : > { %3528 = vmatmul.mubr.bf16.gmra.mxu0 %v7798_v11  ;;  %v2700_v50 = vadd.f32 %v2699_v42, %v8124_v40  ;;  %v2861_v28 = vadd.f32 %v7568_v15, %v2698_v34  ;;  %v2856_v38 = vadd.f32 %v7576_v14, %v2787_v27  ;;  %v2798_v61 = vadd.f32 %v5534_v46, %v8127_v54  ;;  %v5925_v34 = vld [vmem:[#allocation6 + $0xe4] ss:$8 sps:$4 sm:$0xff]   ;;  %v5928_v27 = vld [vmem:[#allocation6 + $0xd4] ss:$8 sps:$4 sm:$0xff]   ;;  %v5944_v46 = vld [vmem:[#allocation6 + $0x170] ss:$8 sps:$4 sm:$0xff]  }
 0x3e6   : > { %v2701_v47 = vpop.f32.mrf.mxu0  ;;  %v2789_v37 = vpop.f32.mrf.mxu1  ;;  %v2908_v21 = vmax.f32 %v2860_v48, 0.0  ;;  %v2910_v3 = vmax.f32 %v2862_v25, 0.0  ;;  %v5946_v42 = vld [vmem:[#allocation6 + $0x174] ss:$8 sps:$4 sm:$0xff]   ;;  %v5935_v40 = vld [vmem:[#allocation6 + $0xa0] ss:$8 sps:$4 sm:$0xff]  }
 0x3e7   : > { %v2702_v55 = vadd.f32 %v2701_v47, %v8125_v5  ;;  %v2790_v2 = vadd.f32 %v2789_v37, %v8126_v23  ;;  %v2863_v10 = vadd.f32 %v7572_v12, %v2700_v50  ;;  %v2909_v29 = vmax.f32 %v2861_v28, 0.0  ;;  %4340 = vmatprep.subr.bf16.mxu0 %v5946_v42  ;;  %v5947_v50 = vld [vmem:[#allocation6 + $0x160] ss:$8 sps:$4 sm:$0xff]   ;;  %v5938_v47 = vld [vmem:[#allocation6 + $0x90] ss:$8 sps:$4 sm:$0xff]  }
 0x3e8   : > { %v2904_v19 = vmax.f32 %v2856_v38, 0.0  ;;  %v2865_v7 = vadd.f32 %v7576_v14, %v2798_v61  ;;  %v5943_v37 = vld [vmem:[#allocation6 + $0x84] ss:$8 sps:$4 sm:$0xff]   ;;  %v5950_v28 = vld [vmem:[#allocation6 + $0x150] ss:$8 sps:$4 sm:$0xff]  }
 0x3e9   : > { %v2864_v36 = vadd.f32 %v7568_v15, %v2702_v55  ;;  %v2859_v4 = vadd.f32 %v7576_v14, %v2790_v2  ;;  %v2911_v41 = vmax.f32 %v2863_v10, 0.0  ;;  %v5896_v14 = vld [vmem:[#allocation6 + $0x70] ss:$8 sps:$4 sm:$0xff]   ;;  %v5941_v38 = vld [vmem:[#allocation6 + $0x80] ss:$8 sps:$4 sm:$0xff]  }
 0x3ea   : > { %v2913_v15 = vmax.f32 %v2865_v7, 0.0  ;;  %v5955_v5 = vld [vmem:[#allocation6 + $0x144] ss:$8 sps:$4 sm:$0xff]   ;;  %v5953_v55 = vld [vmem:[#allocation6 + $0x140] ss:$8 sps:$4 sm:$0xff]  }
 0x3eb   : > { %v2912_v8 = vmax.f32 %v2864_v36, 0.0  ;;  %v2907_v45 = vmax.f32 %v2859_v4, 0.0  ;;  %v7817_v12 = vpack.c.bf16 %v2911_v41, %v2908_v21  ;;  %v5958_v23 = vld [vmem:[#allocation6 + $0x134] ss:$8 sps:$4 sm:$0xff]   ;;  %v5956_v2 = vld [vmem:[#allocation6 + $0x130] ss:$8 sps:$4 sm:$0xff]  }
 0x3ec   : > { %v2937_v17 = vpack.c.bf16 %v2913_v15, %v2910_v3  ;;  %v5961_v48 = vld [vmem:[#allocation6 + $0x124] ss:$8 sps:$4 sm:$0xff]   ;;  %v5959_v10 = vld [vmem:[#allocation6 + $0x120] ss:$8 sps:$4 sm:$0xff]   ;;  %v5964_v54 = vld [vmem:[#allocation6 + $0x114] ss:$8 sps:$4 sm:$0xff]  }
 0x3ed   : > { %v7815_v26 = vpack.c.bf16 %v2912_v8, %v2909_v29  ;;  %v2934_v32 = vpack.c.bf16 %v2907_v45, %v2904_v19  ;;  %v5962_v61 = vld [vmem:[#allocation6 + $0x110] ss:$8 sps:$4 sm:$0xff]   ;;  %v5967_v36 = vld [vmem:[#allocation6 + $0x104] ss:$8 sps:$4 sm:$0xff]   ;;  %v5965_v4 = vld [vmem:[#allocation6 + $0x100] ss:$8 sps:$4 sm:$0xff]  }
 0x3ee   : > { %v8129_v41 = vld [vmem:[#allocation14_spill] sm:$0xff]  ;;  %v8130_v19 = vld [vmem:[#allocation12_spill] sm:$0xff] }
 0x3ef   : > { %3537 = vmatprep.mubr.bf16.mxu0 %v7815_v26  ;;  %3641 = vmatmul.mubr.bf16.gmra.mxu1 %v2934_v32  ;;  %v7853_v29 = vrot.slane %v7849_v49, %v8129_v41  ;;  %v7857_v8 = vrot.slane %v7849_v49, %v8130_v19 }
 0x3f0   : > { %3538 = vmatmul.mubr.bf16.gmra.mxu0 %v7817_v12  ;;  %3650 = vmatprep.mubr.bf16.mxu1 %v8093_v1 }
 0x3f1   : > { %5551 = vmatprep.mubr.bf16.mxu0 %v7593_v51  ;;  %v5899_v51 = vld [vmem:[#allocation6 + $0x60] ss:$8 sps:$4 sm:$0xff]  }
 0x3f7   : > { %3651 = vmatmul.mubr.bf16.gmra.mxu1 %v2937_v17 }
 0x3f8   : > { %3693 = vmatprep.mubr.bf16.mxu1 %v7599_v22  ;;  %5552 = vmatmul.mubr.bf16.vlgmr.msra.gmra.mxu0 %v7637_v39  ;;  %v5902_v22 = vld [vmem:[#allocation6 + $0x50] ss:$8 sps:$4 sm:$0xff]   ;;  %v5907_v39 = vld [vmem:[#allocation6 + $0x44] ss:$8 sps:$4 sm:$0xff]  }
 0x3f9   : > { %5555 = vmatprep.mubr.bf16.mxu0 %v7685_v52  ;;  %v5908_v52 = vld [vmem:[#allocation6 + $0x30] ss:$8 sps:$4 sm:$0xff]   ;;  %4341 = vmatpush1.bf16.msra.mxu0 %v5944_v46 }
 0x3ff   : > { %3694 = vmatmul.mubr.bf16.vlgmr.msra.gmra.mxu1 %v7605_v20  ;;  %v5905_v20 = vld [vmem:[#allocation6 + $0x40] ss:$8 sps:$4 sm:$0xff]  }
 0x400   : > { %3701 = vmatprep.mubr.bf16.mxu1 %v7645_v18  ;;  %5556 = vmatmul.mubr.bf16.gmra.mxu0 %v7726_v9  ;;  %v5910_v18 = vld [vmem:[#allocation6 + $0x34] ss:$8 sps:$4 sm:$0xff]   ;;  %v5913_v9 = vld [vmem:[#allocation6 + $0x24] ss:$8 sps:$4 sm:$0xff]  }
 0x401   : > { %5559 = vmatprep.mubr.bf16.mxu0 %v7762_v63  ;;  %4228 = vmatpush1.bf16.msra.mxu1 %v5896_v14  ;;  %v5914_v63 = vld [vmem:[#allocation6 + $0x10] ss:$8 sps:$4 sm:$0xff]  }
 0x402   : > { %4229 = vmatprep.subr.bf16.mxu1 %v5901_v16 }
 0x405   : > { %4230 = vmatpush1.bf16.msra.mxu1 %v5899_v51 }
 0x406   : > { %4231 = vmatprep.subr.bf16.mxu1 %v5904_v57 }
 0x407   : > { %3702 = vmatmul.mubr.bf16.gmra.mxu1 %v7647_v30  ;;  %v5911_v30 = vld [vmem:[#allocation6 + $0x20] ss:$8 sps:$4 sm:$0xff]  }
 0x408   : > { %3709 = vmatprep.mubr.bf16.mxu1 %v7683_v24  ;;  %5560 = vmatmul.mubr.bf16.gmra.mxu0 %v7778_v59  ;;  %v5916_v24 = vld [vmem:[#allocation6 + $0x14] ss:$8 sps:$4 sm:$0xff]   ;;  %v5919_v59 = vld [vmem:[#allocation6 + $0x4] ss:$8 sps:$4 sm:$0xff]  }
 0x409   : > { %5563 = vmatprep.mubr.bf16.mxu0 %v2934_v32  ;;  %4232 = vmatpush1.bf16.msra.mxu1 %v5902_v22 }
 0x40a   : > { %4233 = vmatprep.subr.bf16.mxu1 %v5907_v39 }
 0x40d   : > { %4234 = vmatpush1.bf16.msra.mxu1 %v5905_v20 }
 0x40e   : > { %4235 = vmatprep.subr.bf16.mxu1 %v5910_v18 }
 0x40f   : > { %3710 = vmatmul.mubr.bf16.gmra.mxu1 %v7691_v62  ;;  %v5922_v62 = vld [vmem:[#allocation6 + $0xf4] ss:$8 sps:$4 sm:$0xff]  }
 0x410   : > { %3717 = vmatprep.mubr.bf16.mxu1 %v7724_v31  ;;  %5564 = vmatmul.mubr.bf16.gmra.mxu0 %v2937_v17  ;;  %v5920_v31 = vld [vmem:[#allocation6 + $0xf0] ss:$8 sps:$4 sm:$0xff]  }
 0x411   : > { %4236 = vmatpush1.bf16.msra.mxu1 %v5908_v52  ;;  %4372 = vmatprep.mubr.bf16.mxu0 %v8093_v1 }
 0x412   : > { %4237 = vmatprep.subr.bf16.mxu1 %v5913_v9 }
 0x415   : > { %4238 = vmatpush1.bf16.msra.mxu1 %v5911_v30 }
 0x416   : > { %4239 = vmatprep.subr.bf16.mxu1 %v5916_v24 }
 0x417   : > { %3718 = vmatmul.mubr.bf16.gmra.mxu1 %v7732_v44  ;;  %v5926_v44 = vld [vmem:[#allocation6 + $0xd0] ss:$8 sps:$4 sm:$0xff]  }
 0x418   : > { %3725 = vmatprep.mubr.bf16.mxu1 %v7760_v6  ;;  %v5931_v6 = vld [vmem:[#allocation6 + $0xc4] ss:$8 sps:$4 sm:$0xff]  }
 0x419   : > { %4240 = vmatpush1.bf16.msra.mxu1 %v5914_v63 }
 0x41a   : > { %4241 = vmatprep.subr.bf16.mxu1 %v5919_v59 }
 0x41d   : > { %4242 = vmatpush1.bf16.msra.mxu1 %v5917_v53 }
 0x41e   : > { %4243 = vmatprep.subr.bf16.mxu1 %v5922_v62 }
 0x41f   : > { %3726 = vmatmul.mubr.bf16.gmra.mxu1 %v7765_v35  ;;  %v5932_v35 = vld [vmem:[#allocation6 + $0xb0] ss:$8 sps:$4 sm:$0xff]  }
 0x420   : > { %3733 = vmatprep.mubr.bf16.mxu1 %v7776_v60  ;;  %v5937_v60 = vld [vmem:[#allocation6 + $0xa4] ss:$8 sps:$4 sm:$0xff]  }
 0x421   : > { %4244 = vmatpush2.bf16.msra.mxu1 %v5920_v31 }
 0x422   : > { %4245 = vmatprep.subr.bf16.mxu1 %v5925_v34 }
 0x425   : > { %4246 = vmatpush2.bf16.msra.mxu1 %v5923_v56 }
 0x426   : > { %4247 = vmatprep.subr.bf16.mxu1 %v5928_v27 }
 0x427   : > { %3734 = vmatmul.mubr.bf16.gmra.mxu1 %v7782_v13  ;;  %v5940_v13 = vld [vmem:[#allocation6 + $0x94] ss:$8 sps:$4 sm:$0xff]  }
 0x428   : > { %3741 = vmatprep.mubr.bf16.mxu1 %v7794_v58  ;;  %v5949_v58 = vld [vmem:[#allocation6 + $0x164] ss:$8 sps:$4 sm:$0xff]  }
 0x429   : > { %4248 = vmatpush2.bf16.msra.mxu1 %v5926_v44  ;;  %4342 = vmatprep.subr.bf16.mxu0 %v5949_v58 }
 0x42a   : > { %4249 = vmatprep.subr.bf16.mxu1 %v5931_v6  ;;  %4343 = vmatpush1.bf16.msra.mxu0 %v5947_v50 }
 0x42d   : > { %4250 = vmatpush2.bf16.msra.mxu1 %v5929_v0 }
 0x42e   : > { %4251 = vmatprep.subr.bf16.mxu1 %v5934_v43 }
 0x42f   : > { %3742 = vmatmul.mubr.bf16.gmra.mxu1 %v7798_v11  ;;  %v5952_v11 = vld [vmem:[#allocation6 + $0x154] ss:$8 sps:$4 sm:$0xff]  }
 0x430   : > { %3749 = vmatprep.mubr.bf16.mxu1 %v7815_v26  ;;  %4344 = vmatprep.subr.bf16.mxu0 %v5952_v11 }
 0x431   : > { %4252 = vmatpush2.bf16.msra.mxu1 %v5932_v35  ;;  %4345 = vmatpush1.bf16.msra.mxu0 %v5950_v28 }
 0x432   : > { %4253 = vmatprep.subr.bf16.mxu1 %v5937_v60  ;;  %4346 = vmatprep.subr.bf16.mxu0 %v5955_v5 }
 0x435   : > { %4254 = vmatpush2.bf16.msra.mxu1 %v5935_v40  ;;  %4347 = vmatpush1.bf16.msra.mxu0 %v5953_v55 }
 0x436   : > { %4255 = vmatprep.subr.bf16.mxu1 %v5940_v13  ;;  %4348 = vmatprep.subr.bf16.mxu0 %v5958_v23 }
 0x437   : > { %3750 = vmatmul.mubr.bf16.gmra.mxu1 %v7817_v12 }
 0x439   : > { %4256 = vmatpush2.bf16.msra.mxu1 %v5938_v47  ;;  %4349 = vmatpush1.bf16.msra.mxu0 %v5956_v2 }
 0x43a   : > { %4257 = vmatprep.subr.bf16.mxu1 %v5943_v37  ;;  %4350 = vmatprep.subr.bf16.mxu0 %v5961_v48 }
 0x43d   : > { %4258 = vmatpush2.bf16.msra.mxu1 %v5941_v38  ;;  %4351 = vmatpush1.bf16.msra.mxu0 %v5959_v10 }
 0x43e   : > { %4352 = vmatprep.subr.bf16.mxu0 %v5964_v54 }
 0x441   : > { %4353 = vmatpush1.bf16.msra.mxu0 %v5962_v61 }
 0x442   : > { %4354 = vmatprep.subr.bf16.mxu0 %v5967_v36 }
 0x445   : > { %4355 = vmatpush1.bf16.msra.mxu0 %v5965_v4 }
 0x459   : > { %v3582_v33 = vpop.f32.mrf.mxu1 }
 0x45a   : > { %v3469_v45 = vpop.f32.mrf.mxu0 }
 0x45b   : > { %v3584_v21 = vpop.f32.mrf.mxu1  ;;  %v3470_v12 = vadd.f32 %v3469_v45, %v7857_v8 }
 0x45c   : > { %v3471_v7 = vpop.f32.mrf.mxu0 }
 0x45d   : > { %v3586_v26 = vpop.f32.mrf.mxu1  ;;  %v3472_v32 = vadd.f32 %v3471_v7, %v7853_v29  ;;  %v3583_v22 = vadd.f32 %v3582_v33, %v3470_v12 }
 0x45e   : > { %v3473_v25 = vpop.f32.mrf.mxu0 }
 0x45f   : > { %v3588_v15 = vpop.f32.mrf.mxu1  ;;  %v3474_v3 = vadd.f32 %v3473_v25, %v7857_v8  ;;  %v3585_v16 = vadd.f32 %v3584_v21, %v3472_v32  ;;  %v3855_v53 = vmax.f32 %v3583_v22, 0.0 }
 0x460   : > { %v3475_v17 = vpop.f32.mrf.mxu0 }
 0x461   : > { %v3592_v14 = vpop.f32.mrf.mxu1  ;;  %v3587_v51 = vadd.f32 %v3586_v26, %v3474_v3  ;;  %v3476_v57 = vadd.f32 %v3475_v17, %v7853_v29  ;;  %v3856_v24 = vmax.f32 %v3585_v16, 0.0 }
 0x462   : > { %v3479_v39 = vpop.f32.mrf.mxu0 }
 0x463   : > { %v3594_v20 = vpop.f32.mrf.mxu1  ;;  %v3589_v18 = vadd.f32 %v3588_v15, %v3476_v57  ;;  %v3858_v52 = vmax.f32 %v3587_v51, 0.0  ;;  %v3480_v62 = vadd.f32 %v3479_v39, %v7857_v8 }
 0x464   : > { %v3481_v9 = vpop.f32.mrf.mxu0 }
 0x465   : > { %v3596_v30 = vpop.f32.mrf.mxu1  ;;  %v3859_v63 = vmax.f32 %v3589_v18, 0.0  ;;  %v3482_v59 = vadd.f32 %v3481_v9, %v7853_v29  ;;  %v3903_v44 = vpack.c.bf16 %v3858_v52, %v3855_v53  ;;  %v3593_v42 = vadd.f32 %v3592_v14, %v3480_v62 }
 0x466   : > { %v3483_v31 = vpop.f32.mrf.mxu0 }
 0x467   : > { %v3598_v34 = vpop.f32.mrf.mxu1  ;;  %v3484_v56 = vadd.f32 %v3483_v31, %v7857_v8  ;;  %v3904_v27 = vpack.c.bf16 %v3859_v63, %v3856_v24  ;;  %v3595_v43 = vadd.f32 %v3594_v20, %v3482_v59  ;;  %v3861_v38 = vmax.f32 %v3593_v42, 0.0 }
 0x468   : > { %v3485_v6 = vpop.f32.mrf.mxu0 }
 0x469   : > { %v3602_v0 = vpop.f32.mrf.mxu1  ;;  %v3597_v35 = vadd.f32 %v3596_v30, %v3484_v56  ;;  %v3486_v60 = vadd.f32 %v3485_v6, %v7853_v29  ;;  %4259 = vmatprep.mubr.bf16.mxu1 %v3904_v27  ;;  %v3862_v37 = vmax.f32 %v3595_v43, 0.0 }
 0x46a   : > { %v3489_v46 = vpop.f32.mrf.mxu0  ;;  %4260 = vmatmul.mubr.bf16.vlgmr.msra.gmra.mxu1 %v3903_v44 }
 0x46b   : > { %v3604_v40 = vpop.f32.mrf.mxu1  ;;  %v3599_v13 = vadd.f32 %v3598_v34, %v3486_v60  ;;  %v3864_v58 = vmax.f32 %v3597_v35, 0.0  ;;  %v3490_v5 = vadd.f32 %v3489_v46, %v7857_v8 }
 0x46c   : > { %v3491_v50 = vpop.f32.mrf.mxu0 }
 0x46d   : > { %v3606_v47 = vpop.f32.mrf.mxu1  ;;  %v3865_v11 = vmax.f32 %v3599_v13, 0.0  ;;  %v3492_v28 = vadd.f32 %v3491_v50, %v7853_v29  ;;  %v3906_v10 = vpack.c.bf16 %v3864_v58, %v3861_v38  ;;  %v3603_v45 = vadd.f32 %v3602_v0, %v3490_v5 }
 0x46e   : > { %v3493_v55 = vpop.f32.mrf.mxu0 }
 0x46f   : > { %v3608_v23 = vpop.f32.mrf.mxu1  ;;  %v3494_v2 = vadd.f32 %v3493_v55, %v7857_v8  ;;  %v3907_v48 = vpack.c.bf16 %v3865_v11, %v3862_v37  ;;  %v3605_v36 = vadd.f32 %v3604_v40, %v3492_v28  ;;  %v3867_v14 = vmax.f32 %v3603_v45, 0.0 }
 0x470   : > { %v3495_v54 = vpop.f32.mrf.mxu0 }
 0x471   : > { %v3612_v61 = vpop.f32.mrf.mxu1  ;;  %v3607_v4 = vadd.f32 %v3606_v47, %v3494_v2  ;;  %v3496_v33 = vadd.f32 %v3495_v54, %v7853_v29  ;;  %4269 = vmatprep.mubr.bf16.mxu1 %v3907_v48  ;;  %v3868_v15 = vmax.f32 %v3605_v36, 0.0 }
 0x472   : > { %v3499_v21 = vpop.f32.mrf.mxu0  ;;  %4270 = vmatmul.mubr.bf16.gmra.mxu1 %v3906_v10 }
 0x473   : > { %v3614_v7 = vpop.f32.mrf.mxu1  ;;  %v3609_v26 = vadd.f32 %v3608_v23, %v3496_v33  ;;  %v3870_v32 = vmax.f32 %v3607_v4, 0.0  ;;  %v3500_v16 = vadd.f32 %v3499_v21, %v7857_v8 }
 0x474   : > { %v3501_v12 = vpop.f32.mrf.mxu0 }
 0x475   : > { %v3616_v25 = vpop.f32.mrf.mxu1  ;;  %v3871_v3 = vmax.f32 %v3609_v26, 0.0  ;;  %v3502_v17 = vadd.f32 %v3501_v12, %v7853_v29  ;;  %v3909_v20 = vpack.c.bf16 %v3870_v32, %v3867_v14  ;;  %v3613_v63 = vadd.f32 %v3612_v61, %v3500_v16 }
 0x476   : > { %v3503_v51 = vpop.f32.mrf.mxu0 }
 0x477   : > { %v3618_v57 = vpop.f32.mrf.mxu1  ;;  %v3504_v22 = vadd.f32 %v3503_v51, %v7857_v8  ;;  %v3910_v39 = vpack.c.bf16 %v3871_v3, %v3868_v15  ;;  %v3615_v9 = vadd.f32 %v3614_v7, %v3502_v17  ;;  %v3873_v0 = vmax.f32 %v3613_v63, 0.0 }
 0x478   : > { %v3505_v18 = vpop.f32.mrf.mxu0 }
 0x479   : > { %v3622_v52 = vpop.f32.mrf.mxu1  ;;  %v3617_v30 = vadd.f32 %v3616_v25, %v3504_v22  ;;  %v3506_v24 = vadd.f32 %v3505_v18, %v7853_v29  ;;  %4279 = vmatprep.mubr.bf16.mxu1 %v3910_v39  ;;  %v3874_v27 = vmax.f32 %v3615_v9, 0.0 }
 0x47a   : > { %v3509_v59 = vpop.f32.mrf.mxu0  ;;  %4280 = vmatmul.mubr.bf16.gmra.mxu1 %v3909_v20 }
 0x47b   : > { %v3624_v53 = vpop.f32.mrf.mxu1  ;;  %v3619_v62 = vadd.f32 %v3618_v57, %v3506_v24  ;;  %v3876_v31 = vmax.f32 %v3617_v30, 0.0  ;;  %v3510_v43 = vadd.f32 %v3509_v59, %v7857_v8 }
 0x47c   : > { %v3511_v34 = vpop.f32.mrf.mxu0 }
 0x47d   : > { %v3626_v56 = vpop.f32.mrf.mxu1  ;;  %v3877_v44 = vmax.f32 %v3619_v62, 0.0  ;;  %v3512_v6 = vadd.f32 %v3511_v34, %v7853_v29  ;;  %v3912_v40 = vpack.c.bf16 %v3876_v31, %v3873_v0  ;;  %v3623_v11 = vadd.f32 %v3622_v52, %v3510_v43 }
 0x47e   : > { %v3513_v35 = vpop.f32.mrf.mxu0 }
 0x47f   : > { %v3628_v60 = vpop.f32.mrf.mxu1  ;;  %v3514_v42 = vadd.f32 %v3513_v35, %v7857_v8  ;;  %v3913_v46 = vpack.c.bf16 %v3877_v44, %v3874_v27  ;;  %v3625_v50 = vadd.f32 %v3624_v53, %v3512_v6  ;;  %v3879_v54 = vmax.f32 %v3623_v11, 0.0 }
 0x480   : > { %v3515_v13 = vpop.f32.mrf.mxu0 }
 0x481   : > { %v3632_v58 = vpop.f32.mrf.mxu1  ;;  %v3627_v47 = vadd.f32 %v3626_v56, %v3514_v42  ;;  %v3516_v37 = vadd.f32 %v3515_v13, %v7853_v29  ;;  %4289 = vmatprep.mubr.bf16.mxu1 %v3913_v46  ;;  %v3880_v2 = vmax.f32 %v3625_v50, 0.0 }
 0x482   : > { %v3519_v28 = vpop.f32.mrf.mxu0  ;;  %4290 = vmatmul.mubr.bf16.gmra.mxu1 %v3912_v40 }
 0x483   : > { %v3634_v38 = vpop.f32.mrf.mxu1  ;;  %v3629_v5 = vadd.f32 %v3628_v60, %v3516_v37  ;;  %v3882_v55 = vmax.f32 %v3627_v47, 0.0  ;;  %v3520_v61 = vadd.f32 %v3519_v28, %v7857_v8 }
 0x484   : > { %v3521_v23 = vpop.f32.mrf.mxu0 }
 0x485   : > { %v3883_v48 = vmax.f32 %v3629_v5, 0.0  ;;  %v3522_v10 = vadd.f32 %v3521_v23, %v7853_v29  ;;  %v3636_v36 = vpop.f32.mrf.mxu1  ;;  %v3915_v21 = vpack.c.bf16 %v3882_v55, %v3879_v54  ;;  %v3633_v25 = vadd.f32 %v3632_v58, %v3520_v61 }
 0x486   : > { %v3523_v4 = vpop.f32.mrf.mxu0 }
 0x487   : > { %v3524_v33 = vadd.f32 %v3523_v4, %v7857_v8  ;;  %v3916_v45 = vpack.c.bf16 %v3883_v48, %v3880_v2  ;;  %v3635_v26 = vadd.f32 %v3634_v38, %v3522_v10  ;;  %v3638_v15 = vpop.f32.mrf.mxu1  ;;  %v3885_v51 = vmax.f32 %v3633_v25, 0.0 }
 0x488   : > { %v3525_v7 = vpop.f32.mrf.mxu0 }
 0x489   : > { %v3637_v32 = vadd.f32 %v3636_v36, %v3524_v33  ;;  %v3526_v12 = vadd.f32 %v3525_v7, %v7853_v29  ;;  %4299 = vmatprep.mubr.bf16.mxu1 %v3916_v45  ;;  %v3886_v14 = vmax.f32 %v3635_v26, 0.0  ;;  %v8131_v45 = vld [vmem:[#allocation15_spill] sm:$0xff] }
 0x48a   : > { %4300 = vmatmul.mubr.bf16.gmra.mxu1 %v3915_v21  ;;  %v8132_v21 = vsub.s32 2, %v8131_v45 }
 0x48b   : > { %v3639_v3 = vadd.f32 %v3638_v15, %v3526_v12  ;;  %v3888_v17 = vmax.f32 %v3637_v32, 0.0 }
 0x48d   : > { %v3889_v16 = vmax.f32 %v3639_v3, 0.0  ;;  %v3918_v22 = vpack.c.bf16 %v3888_v17, %v3885_v51 }
 0x48f   : > { %v3919_v57 = vpack.c.bf16 %v3889_v16, %v3886_v14 }
 0x491   : > { %4309 = vmatprep.mubr.bf16.mxu1 %v3919_v57 }
 0x492   : > { %4310 = vmatmul.mubr.bf16.gmra.mxu1 %v3918_v22 }
 0x4a5   : > { %v3529_v39 = vpop.f32.mrf.mxu0 }
 0x4a6   : > { %v3530_v62 = vadd.f32 %v3529_v39, %v7857_v8 }
 0x4a7   : > { %v3531_v20 = vpop.f32.mrf.mxu0 }
 0x4a8   : > { %v3532_v63 = vadd.f32 %v3531_v20, %v7853_v29 }
 0x4a9   : > { %v3533_v18 = vpop.f32.mrf.mxu0 }
 0x4aa   : > { %v3534_v59 = vadd.f32 %v3533_v18, %v7857_v8 }
 0x4ab   : > { %v3535_v52 = vpop.f32.mrf.mxu0 }
 0x4ac   : > { %v3536_v34 = vadd.f32 %v3535_v52, %v7853_v29 }
 0x4af   : > { %v3642_v9 = vpop.f32.mrf.mxu1 }
 0x4b0   : > { %v3539_v30 = vpop.f32.mrf.mxu0  ;;  %v3643_v44 = vadd.f32 %v3642_v9, %v3530_v62 }
 0x4b1   : > { %v3644_v24 = vpop.f32.mrf.mxu1  ;;  %v3540_v11 = vadd.f32 %v3539_v30, %v7857_v8 }
 0x4b2   : > { %v3541_v53 = vpop.f32.mrf.mxu0  ;;  %v3645_v56 = vadd.f32 %v3644_v24, %v3532_v63  ;;  %v3891_v40 = vmax.f32 %v3643_v44, 0.0 }
 0x4b3   : > { %v3646_v31 = vpop.f32.mrf.mxu1  ;;  %v3542_v50 = vadd.f32 %v3541_v53, %v7853_v29 }
 0x4b4   : > { %v3647_v27 = vadd.f32 %v3646_v31, %v3534_v59  ;;  %v3543_v6 = vpop.f32.mrf.mxu0  ;;  %v3892_v42 = vmax.f32 %v3645_v56, 0.0 }
 0x4b5   : > { %v3648_v0 = vpop.f32.mrf.mxu1  ;;  %v3544_v47 = vadd.f32 %v3543_v6, %v7857_v8  ;;  %v7894_v8 = vrot.slane %v7849_v49, %v8132_v21 }
 0x4b6   : > { %v3649_v43 = vadd.f32 %v3648_v0, %v3536_v34  ;;  %v3894_v35 = vmax.f32 %v3647_v27, 0.0  ;;  %v3545_v13 = vpop.f32.mrf.mxu0 }
 0x4b7   : > { %v3652_v60 = vpop.f32.mrf.mxu1  ;;  %v3546_v5 = vadd.f32 %v3545_v13, %v7853_v29 }
 0x4b8   : > { %v3895_v46 = vmax.f32 %v3649_v43, 0.0  ;;  %v3921_v28 = vpack.c.bf16 %v3894_v35, %v3891_v40  ;;  %v3653_v2 = vadd.f32 %v3652_v60, %v3540_v11  ;;  %v5553_v48 = vpop.f32.mrf.mxu0 }
 0x4b9   : > { %v3654_v58 = vpop.f32.mrf.mxu1 }
 0x4ba   : > { %v3922_v37 = vpack.c.bf16 %v3895_v46, %v3892_v42  ;;  %v3655_v55 = vadd.f32 %v3654_v58, %v3542_v50  ;;  %v3897_v7 = vmax.f32 %v3653_v2, 0.0  ;;  %v3792_v26 = vpop.f32.mrf.mxu0  ;;  %v5970_v2 = vld [vmem:[#allocation7 + $0x70] sm:$0xff]  }
 0x4bb   : > { %v3656_v38 = vpop.f32.mrf.mxu1 }
 0x4bc   : > { %v3657_v23 = vadd.f32 %v3656_v38, %v3544_v47  ;;  %4319 = vmatprep.mubr.bf16.mxu1 %v3922_v37  ;;  %v3898_v4 = vmax.f32 %v3655_v55, 0.0  ;;  %v5554_v17 = vpop.f32.mrf.mxu0  ;;  %v5968_v55 = vld [vmem:[#allocation7 + $0x78] sm:$0xff]  }
 0x4bd   : > { %v3658_v10 = vpop.f32.mrf.mxu1  ;;  %4320 = vmatmul.mubr.bf16.gmra.mxu1 %v3921_v28  ;;  %5351 = vmatprep.subr.bf16.mxu0 %v5968_v55 }
 0x4be   : > { %v3659_v54 = vadd.f32 %v3658_v10, %v3546_v5  ;;  %v3900_v61 = vmax.f32 %v3657_v23, 0.0  ;;  %v3795_v49 = vpop.f32.mrf.mxu0  ;;  %v5969_v23 = vld [vmem:[#allocation7 + $0x38] sm:$0xff]  }
 0x4bf   : > { %v5287_v36 = vpop.f32.mrf.mxu1 }
 0x4c0   : > { %v3901_v33 = vmax.f32 %v3659_v54, 0.0  ;;  %v3924_v25 = vpack.c.bf16 %v3900_v61, %v3897_v7  ;;  %v5557_v63 = vpop.f32.mrf.mxu0  ;;  %v5972_v7 = vld [vmem:[#allocation7 + $0x68] sm:$0xff]  }
 0x4c1   : > { %v5288_v29 = vpop.f32.mrf.mxu1 }
 0x4c2   : > { %v3925_v32 = vpack.c.bf16 %v3901_v33, %v3898_v4  ;;  %v5289_v12 = vadd.f32 %v5288_v29, %v5287_v36  ;;  %v3808_v27 = vpop.f32.mrf.mxu0  ;;  %v5971_v33 = vld [vmem:[#allocation7 + $0x30] sm:$0xff]  }
 0x4c3   : > { %v5290_v15 = vpop.f32.mrf.mxu1 }
 0x4c4   : > { %v3696_v3 = vadd.f32 %v5289_v12, %v7894_v8  ;;  %4329 = vmatprep.mubr.bf16.mxu1 %v3925_v32  ;;  %v5558_v46 = vpop.f32.mrf.mxu0 }
 0x4c5   : > { %v5291_v14 = vpop.f32.mrf.mxu1  ;;  %4330 = vmatmul.mubr.bf16.gmra.mxu1 %v3924_v25 }
 0x4c6   : > { %v5292_v16 = vadd.f32 %v5291_v14, %v5290_v15  ;;  %v3793_v57 = vadd.f32 %v3792_v26, %v3696_v3  ;;  %v3811_v11 = vpop.f32.mrf.mxu0  ;;  %v5973_v15 = vld [vmem:[#allocation7 + $0x28] sm:$0xff]   ;;  %v5974_v14 = vld [vmem:[#allocation7 + $0x60] sm:$0xff]  }
 0x4c7   : > { %v5293_v51 = vpop.f32.mrf.mxu1 }
 0x4c8   : > { %v3699_v22 = vadd.f32 %v5292_v16, %v7894_v8  ;;  %v3857_v9 = vmax.f32 %v3793_v57, 0.0  ;;  %v5561_v36 = vpop.f32.mrf.mxu0 }
 0x4c9   : > { %v5294_v39 = vpop.f32.mrf.mxu1 }
 0x4ca   : > { %v3796_v20 = vadd.f32 %v3795_v49, %v3699_v22  ;;  %v5295_v18 = vadd.f32 %v5294_v39, %v5293_v51  ;;  %v3824_v12 = vpop.f32.mrf.mxu0 }
 0x4cb   : > { %v5296_v52 = vpop.f32.mrf.mxu1 }
 0x4cc   : > { %v3860_v30 = vmax.f32 %v3796_v20, 0.0  ;;  %v3704_v24 = vadd.f32 %v5295_v18, %v7894_v8  ;;  %v5562_v49 = vpop.f32.mrf.mxu0  ;;  %v5975_v20 = vld [vmem:[#allocation7 + $0x20] sm:$0xff]  }
 0x4cd   : > { %v5297_v59 = vpop.f32.mrf.mxu1 }
 0x4ce   : > { %v3905_v53 = vpack.c.bf16 %v3860_v30, %v3857_v9  ;;  %v5298_v62 = vadd.f32 %v5297_v59, %v5296_v52  ;;  %v3801_v34 = vadd.f32 %v5553_v48, %v3704_v24 }
 0x4cf   : > { %v5299_v31 = vpop.f32.mrf.mxu1 }
 0x4d0   : > { %v3707_v56 = vadd.f32 %v5298_v62, %v7894_v8  ;;  %4373 = vmatmul.mubr.bf16.vlgmr.msra.gmra.mxu0 %v3905_v53  ;;  %v3863_v35 = vmax.f32 %v3801_v34, 0.0 }
 0x4d1   : > { %v5300_v44 = vpop.f32.mrf.mxu1  ;;  %4382 = vmatprep.mubr.bf16.mxu0 %v8093_v1  ;;  %5352 = vmatpush3.bf16.msra.mxu0 %v5969_v23 }
 0x4d2   : > { %v3804_v6 = vadd.f32 %v5554_v17, %v3707_v56  ;;  %v5301_v0 = vadd.f32 %v5300_v44, %v5299_v31  ;;  %5353 = vmatprep.subr.bf16.mxu0 %v5970_v2 }
 0x4d3   : > { %v5302_v43 = vpop.f32.mrf.mxu1 }
 0x4d4   : > { %v3866_v60 = vmax.f32 %v3804_v6, 0.0  ;;  %v3712_v42 = vadd.f32 %v5301_v0, %v7894_v8 }
 0x4d5   : > { %v5303_v40 = vpop.f32.mrf.mxu1  ;;  %5354 = vmatpush3.bf16.msra.mxu0 %v5971_v33 }
 0x4d6   : > { %v5304_v13 = vadd.f32 %v5303_v40, %v5302_v43  ;;  %v3908_v58 = vpack.c.bf16 %v3866_v60, %v3863_v35  ;;  %v3809_v47 = vadd.f32 %v3808_v27, %v3712_v42  ;;  %5355 = vmatprep.subr.bf16.mxu0 %v5972_v7 }
 0x4d7   : > { %v5305_v50 = vpop.f32.mrf.mxu1 }
 0x4d8   : > { %v3715_v37 = vadd.f32 %v5304_v13, %v7894_v8  ;;  %4383 = vmatmul.mubr.bf16.gmra.mxu0 %v3908_v58  ;;  %v3869_v10 = vmax.f32 %v3809_v47, 0.0 }
 0x4d9   : > { %v5306_v28 = vpop.f32.mrf.mxu1  ;;  %4392 = vmatprep.mubr.bf16.mxu0 %v8093_v1  ;;  %5356 = vmatpush3.bf16.msra.mxu0 %v5973_v15 }
 0x4da   : > { %v3812_v38 = vadd.f32 %v3811_v11, %v3715_v37  ;;  %v5307_v5 = vadd.f32 %v5306_v28, %v5305_v50  ;;  %5357 = vmatprep.subr.bf16.mxu0 %v5974_v14 }
 0x4db   : > { %v5308_v48 = vpop.f32.mrf.mxu1 }
 0x4dc   : > { %v3872_v54 = vmax.f32 %v3812_v38, 0.0  ;;  %v3720_v61 = vadd.f32 %v5307_v5, %v7894_v8 }
 0x4dd   : > { %v5309_v4 = vpop.f32.mrf.mxu1  ;;  %5358 = vmatpush3.bf16.msra.mxu0 %v5975_v20 }
 0x4de   : > { %v5310_v45 = vadd.f32 %v5309_v4, %v5308_v48  ;;  %v3911_v21 = vpack.c.bf16 %v3872_v54, %v3869_v10  ;;  %v3817_v29 = vadd.f32 %v5557_v63, %v3720_v61  ;;  %v3827_v63 = vpop.f32.mrf.mxu0 }
 0x4df   : > { %v5311_v26 = vpop.f32.mrf.mxu1 }
 0x4e0   : > { %v3723_v32 = vadd.f32 %v5310_v45, %v7894_v8  ;;  %4393 = vmatmul.mubr.bf16.gmra.mxu0 %v3911_v21  ;;  %v3875_v51 = vmax.f32 %v3817_v29, 0.0  ;;  %v5565_v44 = vpop.f32.mrf.mxu0 }
 0x4e1   : > { %v5312_v25 = vpop.f32.mrf.mxu1  ;;  %4402 = vmatprep.mubr.bf16.mxu0 %v8093_v1 }
 0x4e2   : > { %v3820_v3 = vadd.f32 %v5558_v46, %v3723_v32  ;;  %v5313_v17 = vadd.f32 %v5312_v25, %v5311_v26  ;;  %v3840_v46 = vpop.f32.mrf.mxu0  ;;  %v5976_v32 = vld [vmem:[#allocation7 + $0x58] sm:$0xff]  }
 0x4e3   : > { %v5314_v16 = vpop.f32.mrf.mxu1  ;;  %5359 = vmatprep.subr.bf16.mxu0 %v5976_v32 }
 0x4e4   : > { %v3878_v57 = vmax.f32 %v3820_v3, 0.0  ;;  %v3728_v22 = vadd.f32 %v5313_v17, %v7894_v8  ;;  %v5566_v28 = vpop.f32.mrf.mxu0 }
 0x4e5   : > { %v5315_v39 = vpop.f32.mrf.mxu1 }
 0x4e6   : > { %v5316_v18 = vadd.f32 %v5315_v39, %v5314_v16  ;;  %v3914_v52 = vpack.c.bf16 %v3878_v57, %v3875_v51  ;;  %v3825_v30 = vadd.f32 %v3824_v12, %v3728_v22  ;;  %v3843_v10 = vpop.f32.mrf.mxu0  ;;  %v5977_v12 = vld [vmem:[#allocation7 + $0x18] sm:$0xff]   ;;  %v5978_v51 = vld [vmem:[#allocation7 + $0x50] sm:$0xff]   ;;  %v5980_v22 = vld [vmem:[#allocation7 + $0x48] sm:$0xff]  }
 0x4e7   : > { %v5317_v9 = vpop.f32.mrf.mxu1  ;;  %5360 = vmatpush3.bf16.msra.mxu0 %v5977_v12  ;;  %v5979_v57 = vld [vmem:[#allocation7 + $0x10] sm:$0xff]   ;;  %v5982_v39 = vld [vmem:[#allocation7 + $0x40] sm:$0xff]  }
 0x4e8   : > { %v3731_v24 = vadd.f32 %v5316_v18, %v7894_v8  ;;  %4403 = vmatmul.mubr.bf16.gmra.mxu0 %v3914_v52  ;;  %v3881_v34 = vmax.f32 %v3825_v30, 0.0  ;;  %5361 = vmatprep.subr.bf16.mxu0 %v5978_v51 }
 0x4e9   : > { %v5318_v59 = vpop.f32.mrf.mxu1  ;;  %4412 = vmatprep.mubr.bf16.mxu0 %v8093_v1 }
 0x4ea   : > { %v3828_v53 = vadd.f32 %v3827_v63, %v3731_v24  ;;  %v5319_v62 = vadd.f32 %v5318_v59, %v5317_v9 }
 0x4eb   : > { %v5320_v31 = vpop.f32.mrf.mxu1  ;;  %5362 = vmatpush3.bf16.msra.mxu0 %v5979_v57 }
 0x4ec   : > { %v3884_v56 = vmax.f32 %v3828_v53, 0.0  ;;  %v3736_v27 = vadd.f32 %v5319_v62, %v7894_v8  ;;  %5363 = vmatprep.subr.bf16.mxu0 %v5980_v22 }
 0x4ed   : > { %v5321_v6 = vpop.f32.mrf.mxu1 }
 0x4ee   : > { %v3917_v0 = vpack.c.bf16 %v3884_v56, %v3881_v34  ;;  %v5322_v43 = vadd.f32 %v5321_v6, %v5320_v31  ;;  %v3833_v60 = vadd.f32 %v5561_v36, %v3736_v27  ;;  %v3975_v6 = vld [vmem:[%s8048_s12] sm:$0x3] }
 0x4ef   : > { %v5323_v35 = vpop.f32.mrf.mxu1 }
 0x4f0   : > { %v3739_v42 = vadd.f32 %v5322_v43, %v7894_v8  ;;  %4413 = vmatmul.mubr.bf16.gmra.mxu0 %v3917_v0  ;;  %v3887_v47 = vmax.f32 %v3833_v60, 0.0  ;;  %v7931_v0 = vrot.slane %v3975_v6, %v8129_v41  ;;  %v7934_v43 = vrot.slane %v3975_v6, %v8130_v19 }
 0x4f1   : > { %v5324_v40 = vpop.f32.mrf.mxu1  ;;  %4422 = vmatprep.mubr.bf16.mxu0 %v8093_v1 }
 0x4f2   : > { %v3836_v13 = vadd.f32 %v5562_v49, %v3739_v42  ;;  %v5325_v58 = vadd.f32 %v5324_v40, %v5323_v35  ;;  %v5981_v49 = vld [vmem:[#allocation7 + $0x8] sm:$0xff]  }
 0x4f3   : > { %v5326_v50 = vpop.f32.mrf.mxu1  ;;  %5364 = vmatpush3.bf16.msra.mxu0 %v5981_v49 }
 0x4f4   : > { %v3890_v37 = vmax.f32 %v3836_v13, 0.0  ;;  %v3744_v11 = vadd.f32 %v5325_v58, %v7894_v8  ;;  %5365 = vmatprep.subr.bf16.mxu0 %v5982_v39 }
 0x4f5   : > { %v5327_v38 = vpop.f32.mrf.mxu1 }
 0x4f6   : > { %v3920_v5 = vpack.c.bf16 %v3890_v37, %v3887_v47  ;;  %v5328_v55 = vadd.f32 %v5327_v38, %v5326_v50  ;;  %v3841_v2 = vadd.f32 %v3840_v46, %v3744_v11 }
 0x4f7   : > { %v5329_v23 = vpop.f32.mrf.mxu1 }
 0x4f8   : > { %v3747_v48 = vadd.f32 %v5328_v55, %v7894_v8  ;;  %4423 = vmatmul.mubr.bf16.gmra.mxu0 %v3920_v5  ;;  %v3893_v33 = vmax.f32 %v3841_v2, 0.0 }
 0x4f9   : > { %v5330_v54 = vpop.f32.mrf.mxu1  ;;  %4432 = vmatprep.mubr.bf16.mxu0 %v8093_v1 }
 0x4fa   : > { %v3844_v61 = vadd.f32 %v3843_v10, %v3747_v48  ;;  %v5331_v36 = vadd.f32 %v5330_v54, %v5329_v23 }
 0x4fb   : > { %v5332_v4 = vpop.f32.mrf.mxu1 }
 0x4fc   : > { %v3896_v45 = vmax.f32 %v3844_v61, 0.0  ;;  %v3752_v21 = vadd.f32 %v5331_v36, %v7894_v8 }
 0x4fd   : > { %v5333_v7 = vpop.f32.mrf.mxu1 }
 0x4fe   : > { %v3923_v26 = vpack.c.bf16 %v3896_v45, %v3893_v33  ;;  %v5334_v29 = vadd.f32 %v5333_v7, %v5332_v4  ;;  %v3849_v25 = vadd.f32 %v5565_v44, %v3752_v21 }
 0x500   : > { %v3755_v15 = vadd.f32 %v5334_v29, %v7894_v8  ;;  %4433 = vmatmul.mubr.bf16.gmra.mxu0 %v3923_v26  ;;  %v3899_v17 = vmax.f32 %v3849_v25, 0.0  ;;  %v5983_v8 = vld [vmem:[#allocation7] sm:$0xff]  }
 0x501   : > { %4442 = vmatprep.mubr.bf16.mxu0 %v8093_v1  ;;  %5366 = vmatpush3.bf16.msra.mxu0 %v5983_v8 }
 0x502   : > { %v3852_v3 = vadd.f32 %v5566_v28, %v3755_v15 }
 0x504   : > { %v3902_v14 = vmax.f32 %v3852_v3, 0.0 }
 0x506   : > { %v3926_v16 = vpack.c.bf16 %v3902_v14, %v3899_v17 }
 0x508   : > { %4443 = vmatmul.mubr.bf16.gmra.mxu0 %v3926_v16 }
 0x52a   : > { %v4261_v20 = vpop.f32.mrf.mxu1 }
 0x52b   : > { %v4262_v13 = vadd.f32 %v4261_v20, %v7934_v43 }
 0x52c   : > { %v4263_v1 = vpop.f32.mrf.mxu1 }
 0x52d   : > { %v4264_v46 = vadd.f32 %v4263_v1, %v7931_v0 }
 0x52e   : > { %v4265_v18 = vpop.f32.mrf.mxu1 }
 0x52f   : > { %v4266_v40 = vadd.f32 %v4265_v18, %v7934_v43 }
 0x530   : > { %v4267_v52 = vpop.f32.mrf.mxu1 }
 0x531   : > { %v4268_v47 = vadd.f32 %v4267_v52, %v7931_v0 }
 0x532   : > { %v4271_v9 = vpop.f32.mrf.mxu1 }
 0x533   : > { %v4272_v4 = vadd.f32 %v4271_v9, %v7934_v43 }
 0x534   : > { %v4273_v30 = vpop.f32.mrf.mxu1 }
 0x535   : > { %v4274_v54 = vadd.f32 %v4273_v30, %v7931_v0 }
 0x536   : > { %v4275_v24 = vpop.f32.mrf.mxu1 }
 0x537   : > { %v4276_v61 = vadd.f32 %v4275_v24, %v7934_v43 }
 0x538   : > { %v4277_v63 = vpop.f32.mrf.mxu1 }
 0x539   : > { %v4278_v7 = vadd.f32 %v4277_v63, %v7931_v0 }
 0x53a   : > { %v4281_v59 = vpop.f32.mrf.mxu1 }
 0x53b   : > { %v4282_v8 = vadd.f32 %v4281_v59, %v7934_v43 }
 0x53c   : > { %v4283_v53 = vpop.f32.mrf.mxu1 }
 0x53d   : > { %v4284_v22 = vadd.f32 %v4283_v53, %v7931_v0 }
 0x53e   : > { %v4285_v62 = vpop.f32.mrf.mxu1 }
 0x53f   : > { %v4286_v49 = vadd.f32 %v4285_v62, %v7934_v43 }
 0x540   : > { %v4287_v31 = vpop.f32.mrf.mxu1 }
 0x541   : > { %v4288_v52 = vadd.f32 %v4287_v31, %v7931_v0 }
 0x542   : > { %v7919_v34 = vpop.f32.mrf.mxu1 }
 0x544   : > { %v7921_v56 = vpop.f32.mrf.mxu1 }
 0x546   : > { %v7923_v27 = vpop.f32.mrf.mxu1 }
 0x547   : > { %v4296_v31 = vadd.f32 %v7923_v27, %v7934_v43 }
 0x548   : > { %v7925_v44 = vpop.f32.mrf.mxu1 }
 0x54a   : > { %v7936_v35 = vpop.f32.mrf.mxu1 }
 0x54c   : > { %v7941_v58 = vpop.f32.mrf.mxu1 }
 0x54e   : > { %v7944_v38 = vpop.f32.mrf.mxu1 }
 0x550   : > { %v7949_v33 = vpop.f32.mrf.mxu1 }
 0x552   : > { %v7952_v15 = vpop.f32.mrf.mxu1 }
 0x554   : > { %v7957_v20 = vpop.f32.mrf.mxu1 }
 0x590   : > { %v4374_v60 = vpop.f32.mrf.mxu0 }
 0x591   : > { %v4375_v11 = vadd.f32 %v4374_v60, %v4262_v13  ;;  %v4315_v60 = vpop.f32.mrf.mxu1  ;;  %v4294_v13 = vadd.f32 %v7921_v56, %v7931_v0 }
 0x592   : > { %v4376_v42 = vpop.f32.mrf.mxu0 }
 0x593   : > { %v4377_v41 = vadd.f32 %v4376_v42, %v4264_v46  ;;  %v4453_v48 = vmax.f32 %v4375_v11, 0.0 }
 0x594   : > { %v4378_v50 = vpop.f32.mrf.mxu0 }
 0x595   : > { %v4379_v37 = vadd.f32 %v4378_v50, %v4266_v40  ;;  %v4454_v23 = vmax.f32 %v4377_v41, 0.0  ;;  %v4317_v41 = vpop.f32.mrf.mxu1 }
 0x596   : > { %v4380_v19 = vpop.f32.mrf.mxu0 }
 0x597   : > { %v4381_v28 = vadd.f32 %v4380_v19, %v4268_v47  ;;  %v4455_v5 = vmax.f32 %v4379_v37, 0.0  ;;  %v4292_v47 = vadd.f32 %v7919_v34, %v7934_v43  ;;  %v4298_v19 = vadd.f32 %v7925_v44, %v7931_v0 }
 0x598   : > { %v4384_v55 = vpop.f32.mrf.mxu0  ;;  %v4306_v44 = vadd.f32 %v7944_v38, %v7934_v43 }
 0x599   : > { %v4456_v2 = vmax.f32 %v4381_v28, 0.0  ;;  %v4485_v45 = vpack.c.bf16 %v4455_v5, %v4453_v48  ;;  %v4385_v32 = vadd.f32 %v4384_v55, %v4272_v4  ;;  %v4321_v55 = vpop.f32.mrf.mxu1  ;;  %v4304_v4 = vadd.f32 %v7941_v58, %v7931_v0 }
 0x59a   : > { %v4386_v10 = vpop.f32.mrf.mxu0 }
 0x59b   : > { %v4486_v36 = vpack.c.bf16 %v4456_v2, %v4454_v23  ;;  %v4387_v26 = vadd.f32 %v4386_v10, %v4274_v54  ;;  %v4457_v51 = vmax.f32 %v4385_v32, 0.0 }
 0x59c   : > { %v4388_v21 = vpop.f32.mrf.mxu0 }
 0x59d   : > { %v4389_v29 = vadd.f32 %v4388_v21, %v4276_v61  ;;  %4668 = vmatprep.mubr.bf16.mxu0 %v4486_v36  ;;  %v4458_v14 = vmax.f32 %v4387_v26, 0.0  ;;  %v4323_v61 = vpop.f32.mrf.mxu1  ;;  %v4302_v21 = vadd.f32 %v7936_v35, %v7934_v43 }
 0x59e   : > { %v4390_v12 = vpop.f32.mrf.mxu0  ;;  %4669 = vmatmul.mubr.bf16.vlgmr.msra.gmra.mxu0 %v4485_v45 }
 0x59f   : > { %v4391_v25 = vadd.f32 %v4390_v12, %v4278_v7  ;;  %v4459_v3 = vmax.f32 %v4389_v29, 0.0  ;;  %v4308_v29 = vadd.f32 %v7949_v33, %v7931_v0  ;;  %v4316_v33 = vadd.f32 %v4315_v60, %v7934_v43 }
 0x5a0   : > { %v4394_v17 = vpop.f32.mrf.mxu0 }
 0x5a1   : > { %v4460_v16 = vmax.f32 %v4391_v25, 0.0  ;;  %v4487_v1 = vpack.c.bf16 %v4459_v3, %v4457_v51  ;;  %v4395_v24 = vadd.f32 %v4394_v17, %v4282_v8  ;;  %v4325_v25 = vpop.f32.mrf.mxu1  ;;  %v4312_v8 = vadd.f32 %v7952_v15, %v7934_v43 }
 0x5a2   : > { %v4396_v57 = vpop.f32.mrf.mxu0  ;;  %v4324_v15 = vadd.f32 %v4323_v61, %v7931_v0 }
 0x5a3   : > { %v4488_v39 = vpack.c.bf16 %v4460_v16, %v4458_v14  ;;  %v4397_v9 = vadd.f32 %v4396_v57, %v4284_v22  ;;  %v4461_v40 = vmax.f32 %v4395_v24, 0.0  ;;  %v4327_v57 = vpop.f32.mrf.mxu1 }
 0x5a4   : > { %v4398_v18 = vpop.f32.mrf.mxu0 }
 0x5a5   : > { %v4399_v30 = vadd.f32 %v4398_v18, %v4286_v49  ;;  %4676 = vmatprep.mubr.bf16.mxu0 %v4488_v39  ;;  %v4462_v62 = vmax.f32 %v4397_v9, 0.0  ;;  %v4314_v49 = vadd.f32 %v7957_v20, %v7931_v0  ;;  %v4331_v24 = vpop.f32.mrf.mxu1 }
 0x5a6   : > { %v4400_v63 = vpop.f32.mrf.mxu0  ;;  %4677 = vmatmul.mubr.bf16.gmra.mxu0 %v4487_v1 }
 0x5a7   : > { %v4401_v6 = vadd.f32 %v4400_v63, %v4288_v52  ;;  %v4463_v53 = vmax.f32 %v4399_v30, 0.0  ;;  %v4318_v52 = vadd.f32 %v4317_v41, %v7931_v0 }
 0x5a8   : > { %v4404_v42 = vpop.f32.mrf.mxu0 }
 0x5a9   : > { %v4464_v46 = vmax.f32 %v4401_v6, 0.0  ;;  %v4489_v37 = vpack.c.bf16 %v4463_v53, %v4461_v40  ;;  %v4405_v23 = vadd.f32 %v4404_v42, %v4292_v47 }
 0x5aa   : > { %v4406_v59 = vpop.f32.mrf.mxu0 }
 0x5ab   : > { %v4490_v50 = vpack.c.bf16 %v4464_v46, %v4462_v62  ;;  %v4407_v28 = vadd.f32 %v4406_v59, %v4294_v13  ;;  %v4465_v34 = vmax.f32 %v4405_v23, 0.0  ;;  %v4333_v46 = vpop.f32.mrf.mxu1  ;;  %v4326_v13 = vadd.f32 %v4325_v25, %v7934_v43 }
 0x5ac   : > { %v4408_v11 = vpop.f32.mrf.mxu0 }
 0x5ad   : > { %v4409_v5 = vadd.f32 %v4408_v11, %v4296_v31  ;;  %4684 = vmatprep.mubr.bf16.mxu0 %v4490_v50  ;;  %v4466_v10 = vmax.f32 %v4407_v28, 0.0  ;;  %v4322_v50 = vadd.f32 %v4321_v55, %v7934_v43  ;;  %v4335_v28 = vpop.f32.mrf.mxu1  ;;  %v4334_v55 = vadd.f32 %v4333_v46, %v7931_v0 }
 0x5ae   : > { %v4410_v2 = vpop.f32.mrf.mxu0  ;;  %4685 = vmatmul.mubr.bf16.gmra.mxu0 %v4489_v37  ;;  %v4328_v37 = vadd.f32 %v4327_v57, %v7931_v0 }
 0x5af   : > { %v4411_v56 = vadd.f32 %v4410_v2, %v4298_v19  ;;  %v4467_v48 = vmax.f32 %v4409_v5, 0.0 }
 0x5b0   : > { %v4414_v27 = vpop.f32.mrf.mxu0 }
 0x5b1   : > { %v4468_v54 = vmax.f32 %v4411_v56, 0.0  ;;  %v4491_v7 = vpack.c.bf16 %v4467_v48, %v4465_v34  ;;  %v4415_v3 = vadd.f32 %v4414_v27, %v4302_v21 }
 0x5b2   : > { %v4416_v36 = vpop.f32.mrf.mxu0 }
 0x5b3   : > { %v4492_v45 = vpack.c.bf16 %v4468_v54, %v4466_v10  ;;  %v4417_v32 = vadd.f32 %v4416_v36, %v4304_v4  ;;  %v4469_v22 = vmax.f32 %v4415_v3, 0.0  ;;  %v4337_v54 = vpop.f32.mrf.mxu1  ;;  %v4336_v36 = vadd.f32 %v4335_v28, %v7934_v43 }
 0x5b4   : > { %v4418_v26 = vpop.f32.mrf.mxu0 }
 0x5b5   : > { %v4419_v12 = vadd.f32 %v4418_v26, %v4306_v44  ;;  %4692 = vmatprep.mubr.bf16.mxu0 %v4492_v45  ;;  %v4470_v38 = vmax.f32 %v4417_v32, 0.0  ;;  %v4332_v44 = vadd.f32 %v4331_v24, %v7934_v43 }
 0x5b6   : > { %v4420_v17 = vpop.f32.mrf.mxu0  ;;  %4693 = vmatmul.mubr.bf16.gmra.mxu0 %v4491_v7  ;;  %v4338_v7 = vadd.f32 %v4337_v54, %v7931_v0  ;;  %v7993_v0 = vld [vmem:[%s8050_s14] ss:$0 sm:$0xff] }
 0x5b7   : > { %v4421_v58 = vadd.f32 %v4420_v17, %v4308_v29  ;;  %v4471_v14 = vmax.f32 %v4419_v12, 0.0 }
 0x5b8   : > { %v4424_v16 = vpop.f32.mrf.mxu0 }
 0x5b9   : > { %v4472_v51 = vmax.f32 %v4421_v58, 0.0  ;;  %v4493_v1 = vpack.c.bf16 %v4471_v14, %v4469_v22  ;;  %v4425_v63 = vadd.f32 %v4424_v16, %v4312_v8 }
 0x5ba   : > { %v4426_v35 = vpop.f32.mrf.mxu0 }
 0x5bb   : > { %v4494_v39 = vpack.c.bf16 %v4472_v51, %v4470_v38  ;;  %v4427_v9 = vadd.f32 %v4426_v35, %v4314_v49  ;;  %v4473_v40 = vmax.f32 %v4425_v63, 0.0 }
 0x5bc   : > { %v4428_v18 = vpop.f32.mrf.mxu0 }
 0x5bd   : > { %v4429_v30 = vadd.f32 %v4428_v18, %v4316_v33  ;;  %4700 = vmatprep.mubr.bf16.mxu0 %v4494_v39  ;;  %v4474_v62 = vmax.f32 %v4427_v9, 0.0 }
 0x5be   : > { %v4430_v6 = vpop.f32.mrf.mxu0  ;;  %4701 = vmatmul.mubr.bf16.gmra.mxu0 %v4493_v1 }
 0x5bf   : > { %v4431_v53 = vadd.f32 %v4430_v6, %v4318_v52  ;;  %v4475_v42 = vmax.f32 %v4429_v30, 0.0 }
 0x5c0   : > { %v4434_v20 = vpop.f32.mrf.mxu0 }
 0x5c1   : > { %v4476_v60 = vmax.f32 %v4431_v53, 0.0  ;;  %v4495_v47 = vpack.c.bf16 %v4475_v42, %v4473_v40  ;;  %v4435_v5 = vadd.f32 %v4434_v20, %v4322_v50 }
 0x5c2   : > { %v4436_v59 = vpop.f32.mrf.mxu0 }
 0x5c3   : > { %v4496_v31 = vpack.c.bf16 %v4476_v60, %v4474_v62  ;;  %v4437_v11 = vadd.f32 %v4436_v59, %v4324_v15  ;;  %v4477_v61 = vmax.f32 %v4435_v5, 0.0 }
 0x5c4   : > { %v4438_v41 = vpop.f32.mrf.mxu0 }
 0x5c5   : > { %v4439_v19 = vadd.f32 %v4438_v41, %v4326_v13  ;;  %4708 = vmatprep.mubr.bf16.mxu0 %v4496_v31  ;;  %v4478_v27 = vmax.f32 %v4437_v11, 0.0 }
 0x5c6   : > { %v4440_v23 = vpop.f32.mrf.mxu0  ;;  %4709 = vmatmul.mubr.bf16.gmra.mxu0 %v4495_v47 }
 0x5c7   : > { %v4441_v2 = vadd.f32 %v4440_v23, %v4328_v37  ;;  %v4479_v56 = vmax.f32 %v4439_v19, 0.0 }
 0x5c8   : > { %v4444_v48 = vpop.f32.mrf.mxu0 }
 0x5c9   : > { %v4480_v10 = vmax.f32 %v4441_v2, 0.0  ;;  %v4497_v45 = vpack.c.bf16 %v4479_v56, %v4477_v61  ;;  %v4445_v32 = vadd.f32 %v4444_v48, %v4332_v44 }
 0x5ca   : > { %v4446_v34 = vpop.f32.mrf.mxu0 }
 0x5cb   : > { %v4498_v4 = vpack.c.bf16 %v4480_v10, %v4478_v27  ;;  %v4447_v26 = vadd.f32 %v4446_v34, %v4334_v55  ;;  %v4481_v14 = vmax.f32 %v4445_v32, 0.0 }
 0x5cc   : > { %v4448_v21 = vpop.f32.mrf.mxu0 }
 0x5cd   : > { %v4449_v29 = vadd.f32 %v4448_v21, %v4336_v36  ;;  %4716 = vmatprep.mubr.bf16.mxu0 %v4498_v4  ;;  %v4482_v17 = vmax.f32 %v4447_v26, 0.0 }
 0x5ce   : > { %v4450_v12 = vpop.f32.mrf.mxu0  ;;  %4717 = vmatmul.mubr.bf16.gmra.mxu0 %v4497_v45 }
 0x5cf   : > { %v4451_v25 = vadd.f32 %v4450_v12, %v4338_v7  ;;  %v4483_v3 = vmax.f32 %v4449_v29, 0.0 }
 0x5d1   : > { %v4484_v58 = vmax.f32 %v4451_v25, 0.0  ;;  %v4499_v38 = vpack.c.bf16 %v4483_v3, %v4481_v14 }
 0x5d3   : > { %v4500_v16 = vpack.c.bf16 %v4484_v58, %v4482_v17 }
 0x5d5   : > { %4724 = vmatprep.mubr.bf16.mxu0 %v4500_v16 }
 0x5d6   : > { %4725 = vmatmul.mubr.bf16.gmra.mxu0 %v4499_v38 }
 0x65e   : > { %v5367_v43 = vpop.f32.mrf.mxu0 }
 0x660   : > { %v5368_v51 = vpop.f32.mrf.mxu0 }
 0x661   : > { %v5369_v57 = vadd.f32 %v5368_v51, %v5367_v43 }
 0x662   : > { %v5370_v22 = vpop.f32.mrf.mxu0 }
 0x663   : > { %v4671_v35 = vadd.f32 %v5369_v57, %v7993_v0 }
 0x664   : > { %v5371_v49 = vpop.f32.mrf.mxu0 }
 0x665   : > { %4733 = vst [vmem:[%s7999_s29] sm:$0xff] %v4671_v35  ;;  %v5372_v33 = vadd.f32 %v5371_v49, %v5370_v22 }
 0x666   : > { %v5373_v39 = vpop.f32.mrf.mxu0 }
 0x667   : > { %v4674_v8 = vadd.f32 %v5372_v33, %v7993_v0 }
 0x668   : > { %v5374_v1 = vpop.f32.mrf.mxu0 }
 0x669   : > { %4734 = vst [vmem:[%s7999_s29 + $0x8] sm:$0xff] %v4674_v8  ;;  %v5375_v18 = vadd.f32 %v5374_v1, %v5373_v39 }
 0x66a   : > { %v5376_v52 = vpop.f32.mrf.mxu0 }
 0x66b   : > { %v4679_v9 = vadd.f32 %v5375_v18, %v7993_v0 }
 0x66c   : > { %v5377_v30 = vpop.f32.mrf.mxu0 }
 0x66d   : > { %4735 = vst [vmem:[%s7999_s29 + $0x10] sm:$0xff] %v4679_v9  ;;  %v5378_v24 = vadd.f32 %v5377_v30, %v5376_v52 }
 0x66e   : > { %v5379_v63 = vpop.f32.mrf.mxu0 }
 0x66f   : > { %v4682_v6 = vadd.f32 %v5378_v24, %v7993_v0 }
 0x670   : > { %v5380_v53 = vpop.f32.mrf.mxu0 }
 0x671   : > { %4736 = vst [vmem:[%s7999_s29 + $0x18] sm:$0xff] %v4682_v6  ;;  %v5381_v42 = vadd.f32 %v5380_v53, %v5379_v63 }
 0x672   : > { %v5382_v20 = vpop.f32.mrf.mxu0 }
 0x673   : > { %v4687_v62 = vadd.f32 %v5381_v42, %v7993_v0 }
 0x674   : > { %v5383_v60 = vpop.f32.mrf.mxu0 }
 0x675   : > { %4737 = vst [vmem:[%s7999_s29 + $0x20] sm:$0xff] %v4687_v62  ;;  %v5384_v46 = vadd.f32 %v5383_v60, %v5382_v20 }
 0x676   : > { %v5385_v40 = vpop.f32.mrf.mxu0 }
 0x677   : > { %v4690_v59 = vadd.f32 %v5384_v46, %v7993_v0 }
 0x678   : > { %v5386_v15 = vpop.f32.mrf.mxu0 }
 0x679   : > { %4738 = vst [vmem:[%s7999_s29 + $0x28] sm:$0xff] %v4690_v59  ;;  %v5387_v13 = vadd.f32 %v5386_v15, %v5385_v40 }
 0x67a   : > { %v5388_v31 = vpop.f32.mrf.mxu0 }
 0x67b   : > { %v4695_v50 = vadd.f32 %v5387_v13, %v7993_v0 }
 0x67c   : > { %v5389_v47 = vpop.f32.mrf.mxu0 }
 0x67d   : > { %4739 = vst [vmem:[%s7999_s29 + $0x30] sm:$0xff] %v4695_v50  ;;  %v5390_v41 = vadd.f32 %v5389_v47, %v5388_v31 }
 0x67e   : > { %v5391_v37 = vpop.f32.mrf.mxu0 }
 0x67f   : > { %v4698_v11 = vadd.f32 %v5390_v41, %v7993_v0 }
 0x680   : > { %v5392_v19 = vpop.f32.mrf.mxu0 }
 0x681   : > { %4740 = vst [vmem:[%s7999_s29 + $0x38] sm:$0xff] %v4698_v11  ;;  %v5393_v28 = vadd.f32 %v5392_v19, %v5391_v37 }
 0x682   : > { %v5394_v5 = vpop.f32.mrf.mxu0 }
 0x683   : > { %v4703_v23 = vadd.f32 %v5393_v28, %v7993_v0 }
 0x684   : > { %v5395_v2 = vpop.f32.mrf.mxu0 }
 0x685   : > { %4741 = vst [vmem:[%s7999_s29 + $0x40] sm:$0xff] %v4703_v23  ;;  %v5396_v56 = vadd.f32 %v5395_v2, %v5394_v5 }
 0x686   : > { %v5397_v48 = vpop.f32.mrf.mxu0 }
 0x687   : > { %v4706_v27 = vadd.f32 %v5396_v56, %v7993_v0 }
 0x688   : > { %v5398_v10 = vpop.f32.mrf.mxu0 }
 0x689   : > { %4742 = vst [vmem:[%s7999_s29 + $0x48] sm:$0xff] %v4706_v27  ;;  %v5399_v54 = vadd.f32 %v5398_v10, %v5397_v48 }
 0x68a   : > { %v5400_v61 = vpop.f32.mrf.mxu0 }
 0x68b   : > { %v4711_v34 = vadd.f32 %v5399_v54, %v7993_v0 }
 0x68c   : > { %v5401_v55 = vpop.f32.mrf.mxu0 }
 0x68d   : > { %4743 = vst [vmem:[%s7999_s29 + $0x50] sm:$0xff] %v4711_v34  ;;  %v5402_v36 = vadd.f32 %v5401_v55, %v5400_v61 }
 0x68e   : > { %v5403_v4 = vpop.f32.mrf.mxu0 }
 0x68f   : > { %v4714_v44 = vadd.f32 %v5402_v36, %v7993_v0 }
 0x690   : > { %v5404_v45 = vpop.f32.mrf.mxu0 }
 0x691   : > { %4744 = vst [vmem:[%s7999_s29 + $0x58] sm:$0xff] %v4714_v44  ;;  %v5405_v21 = vadd.f32 %v5404_v45, %v5403_v4 }
 0x692   : > { %v5406_v7 = vpop.f32.mrf.mxu0 }
 0x693   : > { %v4719_v26 = vadd.f32 %v5405_v21, %v7993_v0 }
 0x694   : > { %v5407_v29 = vpop.f32.mrf.mxu0 }
 0x695   : > { %4745 = vst [vmem:[%s7999_s29 + $0x60] sm:$0xff] %v4719_v26  ;;  %v5408_v32 = vadd.f32 %v5407_v29, %v5406_v7 }
 0x696   : > { %v5409_v12 = vpop.f32.mrf.mxu0 }
 0x697   : > { %v4722_v25 = vadd.f32 %v5408_v32, %v7993_v0 }
 0x698   : > { %v5410_v3 = vpop.f32.mrf.mxu0 }
 0x699   : > { %4746 = vst [vmem:[%s7999_s29 + $0x68] sm:$0xff] %v4722_v25  ;;  %v5411_v17 = vadd.f32 %v5410_v3, %v5409_v12 }
 0x69a   : > { %v5412_v58 = vpop.f32.mrf.mxu0 }
 0x69b   : > { %v4727_v14 = vadd.f32 %v5411_v17, %v7993_v0 }
 0x69c   : > { %v5413_v16 = vpop.f32.mrf.mxu0 }
 0x69d   : > { %4747 = vst [vmem:[%s7999_s29 + $0x70] sm:$0xff] %v4727_v14  ;;  %v5414_v38 = vadd.f32 %v5413_v16, %v5412_v58 }
 0x69f   : > { %v4730_v43 = vadd.f32 %v5414_v38, %v7993_v0 }
 0x6a1   : > { %4748 = vst [vmem:[%s7999_s29 + $0x78] sm:$0xff] %v4730_v43 }
 0x6a2 PF: > { %s28_s18 = sadd.s32 1, %s6115_s18  }
 0x6a3   : > { %p25_p3 = scmp.ge.s32.totalorder %s28_s18, 4  }
 0x6a5   :  { %27 = sbr.rel (!%p25_p3) target bundleno = 3 (0x3), region = 133 }
 0x6aa   :  { %4771 = vsyncpa [#allocation3], 1 }
 0x6ab   :  { %4773 = vsyncpa [#allocation3 + $0x1], 1 }
 0x6ac   :  { %4774 = vsyncpa [#allocation5], 1 }
 0x6ad   :  { %4775 = vsyncpa [#allocation8], 1 }

</bundles_post_ra>
